<compile_context>
chip_gen: v5e
topology: v5e:2x2
jax: 0.10.0
libtpu: 0.0.40
codegen_flags: <defaults>
</compile_context>

<pallas_src>
import functools

import jax
import jax.numpy as jnp
from jax import lax
from jax.experimental import pallas as pl
from jax.experimental.pallas import tpu as pltpu

EPS = 1e-5
K = 3          # spatial kernel
STRIDE = 2
PAD = 1


# ----------------------------------------------------------------------------- kernel
def _rds_kernel(xq0_ref, xq1_ref, w1dw_ref, w2dw_ref, w2a_ref, w1z_ref, w2z_ref,
                sh_ref, out_ref, z0_ref, z1_ref, *, th, Wo, cin, ch, co, cp, cdtype):
    """One (batch, output-row-tile) grid step.

    xq0_ref : (3, (th+1)*Wo, cin) even-row-parity planes (kw=0,1,2), incl. 1-row halo
    xq1_ref : (3,  th   *Wo, cin) odd-row-parity planes
    z0/z1   : VMEM scratch (compute dtype) for branch-2's 1x1 Conv+BN+SiLU result
    out_ref : (th*Wo, co)         channel-shuffled output tile (co possibly lane-padded)
    """
    r0 = pl.program_id(1) * th           # first output row handled by this tile
    P = th * Wo                          # output pixels in the tile
    nck = P // cp                        # pixel chunks
    align = cp & (-cp)                   # pow2 alignment of chunk starts

    w2a = w2a_ref[...]
    s2a = sh_ref[0:1, :ch]               # packed BN/bias shifts (f32)
    s1dw = sh_ref[1:2, :cin]
    s2dw = sh_ref[2:3, :ch]
    sout = sh_ref[3:4, :co]

    def for_chunks(body):
        if nck <= 8:                     # static offsets -> aligned vector ld/st
            for j in range(nck):
                body(j * cp)
        else:
            def stepped(j, c):
                body(pl.multiple_of(j * cp, align))
                return c
            lax.fori_loop(0, nck, stepped, 0)

    # ---- phase 1: branch-2 head (1x1 Conv + BN + SiLU) per plane pixel ------------
    def head_chunk(x_ref, z_ref, q, p0, npix, mask_col, mask_row):
        z = jnp.dot(x_ref[q, pl.ds(p0, npix), :], w2a,
                    preferred_element_type=jnp.float32) + s2a
        z = z * jax.nn.sigmoid(z)                        # SiLU in f32
        if mask_col or mask_row:
            pix = p0 + lax.broadcasted_iota(jnp.int32, (npix, 1), 0)
            valid = None
            if mask_col:                                 # left zero-padding column (kw=0)
                valid = (pix % Wo) != 0
            if mask_row:                                 # top zero-padding row (tile 0 only)
                rv = jnp.logical_or(r0 > 0, pix >= Wo)
                valid = rv if valid is None else jnp.logical_and(valid, rv)
            z = jnp.where(valid, z, 0.0)
        z_ref[q, pl.ds(p0, npix), :] = z.astype(z_ref.dtype)   # bf16 scratch store

    for kw in range(K):
        mc = kw == 0
        for_chunks(lambda p0, kw=kw, mc=mc:
                   head_chunk(xq0_ref, z0_ref, kw, p0, cp, mc, True))
        head_chunk(xq0_ref, z0_ref, kw, P, Wo, mc, False)       # rp=0 halo row
        for_chunks(lambda p0, kw=kw, mc=mc:                     # rp=1: only th rows needed
                   head_chunk(xq1_ref, z1_ref, kw, p0, cp, mc, False))

    # ---- phase 2: 9-tap stride-2 depthwise + fused 1x1 tails, pixel-chunked -------
    def dw_tail_chunk(p0):
        acc1 = jnp.zeros((cp, cin), jnp.float32)
        acc2 = jnp.zeros((cp, ch), jnp.float32)
        for kh in range(K):
            dr = kh // 2
            for kw in range(K):
                k = kh * K + kw
                if kh % 2 == 0:          # rp = 0 planes (halo row used at dr=1)
                    xk = xq0_ref[kw, pl.ds(p0 + dr * Wo, cp), :]
                    zk = z0_ref[kw, pl.ds(p0 + dr * Wo, cp), :]
                else:                    # rp = 1 planes (dr always 0)
                    xk = xq1_ref[kw, pl.ds(p0, cp), :]
                    zk = z1_ref[kw, pl.ds(p0, cp), :]
                acc1 = acc1 + xk.astype(jnp.float32) * w1dw_ref[k:k + 1, :]
                acc2 = acc2 + zk.astype(jnp.float32) * w2dw_ref[k:k + 1, :]
        h1 = (acc1 + s1dw).astype(cdtype)                # + dw bias / BN shift
        h2 = (acc2 + s2dw).astype(cdtype)
        # fused tails: 1x1 Conv + BN + SiLU, ChannelShuffle(2) folded into the
        # zero-interleaved (and lane-padded) weights -> lane-dense store
        o = jnp.dot(h1, w1z_ref[...], preferred_element_type=jnp.float32)
        o = o + jnp.dot(h2, w2z_ref[...], preferred_element_type=jnp.float32)
        o = o + sout
        out_ref[pl.ds(p0, cp), :] = (o * jax.nn.sigmoid(o)).astype(out_ref.dtype)

    for_chunks(dw_tail_chunk)


# ----------------------------------------------------------------------------- glue
def _fold_bn(w, b, gamma, beta):
    """Fold eval-mode BatchNorm (mean=0, var=1 buffers) into conv weight / shift."""
    s = gamma / jnp.sqrt(1.0 + EPS)
    return (w * s).astype(jnp.float32), (b * s + beta).astype(jnp.float32)


def _row_tile(Ho, Wo, target_pixels):
    """Largest divisor of Ho whose tile is sublane friendly and <= target pixels."""
    if Ho * Wo <= target_pixels:
        return Ho
    best = None
    for d in range(1, Ho + 1):
        if Ho % d or (d * Wo) % 8:
            continue
        if d * Wo <= target_pixels:
            best = d
        else:
            if best is None:
                best = d                 # smallest legal tile if none fits the target
            break
    return Ho if best is None else best


def _chunk_pixels(P, target):
    """Largest multiple-of-8 divisor of P that is <= target (P itself if small)."""
    if P <= target or P % 8:
        return P
    best = 8
    for c in range(8, target + 1, 8):
        if P % c == 0:
            best = c
    return best


def _round_up(x, m):
    return (x + m - 1) // m * m


def residual_downsample(x_nhwc, p, *, compute_dtype=jnp.bfloat16, out_dtype=None,
                        tile_pixels=2048, chunk_pixels=512):
    """ResidualDownsample forward (inference-mode BN), NHWC activations."""
    B, H, W, cin = x_nhwc.shape
    ch = p['w1pw'].shape[-1]
    co = 2 * ch
    out_dtype = compute_dtype if out_dtype is None else out_dtype
    # TODO(synk): odd spatial sizes would need a ragged last plane row/col.
    assert H % 2 == 0 and W % 2 == 0, "even spatial dims expected"
    Ho, Wo = H // 2, W // 2

    # fold inference-mode BatchNorms into the conv weights / shifts
    w1dw, s1dw = _fold_bn(p['w1dw'].reshape(K * K, cin), p['b1dw'], p['bn1_g'], p['bn1_b'])
    w1pw, s1pw = _fold_bn(p['w1pw'], p['b1pw'], p['bn1p_g'], p['bn1p_b'])
    w2a, s2a = _fold_bn(p['w2a'], p['b2a'], p['bn2a_g'], p['bn2a_b'])
    w2dw, s2dw = _fold_bn(p['w2dw'].reshape(K * K, ch), p['b2dw'], p['bn2b_g'], p['bn2b_b'])
    w2c, s2c = _fold_bn(p['w2c'], p['b2c'], p['bn2c_g'], p['bn2c_b'])

    # lane-dense output: pad co to the next multiple of 128 when the waste is small
    co_pad = _round_up(co, 128)
    co_hbm = co_pad if co_pad - co <= co // 4 else co

    # ChannelShuffle(groups=2) of concat([b1, b2]) == interleave branch channels;
    # fold the interleave (and lane padding) into zero-filled tail weight columns.
    w1z = jnp.zeros((cin, co_hbm), jnp.float32).at[:, 0:co:2].set(w1pw)
    w2z = jnp.zeros((ch, co_hbm), jnp.float32).at[:, 1:co:2].set(w2c)
    sout = jnp.zeros((co_hbm,), jnp.float32).at[0:co:2].set(s1pw).at[1:co:2].set(s2c)

    cmax = max(cin, ch, co_hbm)
    pad1 = lambda v: jnp.pad(v, (0, cmax - v.shape[0]))
    sh = jnp.stack([pad1(s2a), pad1(s1dw), pad1(s2dw), pad1(sout)])   # (4, cmax)

    th = _row_tile(Ho, Wo, tile_pixels)
    nT = Ho // th
    P = th * Wo
    cp = _chunk_pixels(P, chunk_pixels)

    # (row-parity, kw) planes: plane[rp,kw][ho, wo] == xpad[2*ho+rp, 2*wo+kw], so every
    # 3x3/stride-2 tap of a run of output pixels is a contiguous slice.
    xpad = jnp.pad(x_nhwc, ((0, 0), (PAD, PAD), (PAD, PAD), (0, 0)))
    plane = lambda rp, kw: xpad[:, rp::2, kw:kw + 2 * Wo:2, :]        # (B, Ho+1, Wo, cin)
    pln0 = jnp.stack([plane(0, kw) for kw in range(K)], axis=1)       # (B, 3, Ho+1, Wo, cin)
    pln1 = jnp.stack([plane(1, kw) for kw in range(K)], axis=1)
    # rp=0 planes need a 1-row halo per tile -> duplicate it so blocks stay disjoint
    xq0 = jnp.stack([pln0[:, :, t * th:t * th + th + 1] for t in range(nT)], axis=1)
    xq0 = xq0.reshape(B, nT, K, (th + 1) * Wo, cin).astype(compute_dtype)
    xq1 = pln1[:, :, :Ho].reshape(B, K, Ho * Wo, cin).astype(compute_dtype)

    w2a_c = w2a.astype(compute_dtype)
    w1z_c = w1z.astype(compute_dtype)
    w2z_c = w2z.astype(compute_dtype)

    # VMEM budget: double-buffered ins/outs + single-buffered z scratch + headroom
    ci = jnp.dtype(compute_dtype).itemsize
    oi = jnp.dtype(out_dtype).itemsize
    vmem_est = (2 * K * (th + 1) * Wo * cin * ci + 2 * K * th * Wo * cin * ci
                + 2 * th * Wo * co_hbm * oi
                + K * (th + 1) * Wo * ch * ci + K * th * Wo * ch * ci)
    vmem_limit = int(min(64 << 20, 2 * vmem_est + (8 << 20)))

    kernel = functools.partial(_rds_kernel, th=th, Wo=Wo, cin=cin, ch=ch,
                               co=co_hbm, cp=cp, cdtype=compute_dtype)

    out = pl.pallas_call(
        kernel,
        out_shape=jax.ShapeDtypeStruct((B, Ho * Wo, co_hbm), out_dtype),
        grid=(B, nT),
        in_specs=[
            pl.BlockSpec((None, None, K, (th + 1) * Wo, cin), lambda b, t: (b, t, 0, 0, 0)),
            pl.BlockSpec((None, K, th * Wo, cin), lambda b, t: (b, 0, t, 0)),
            pl.BlockSpec((K * K, cin), lambda b, t: (0, 0)),
            pl.BlockSpec((K * K, ch), lambda b, t: (0, 0)),
            pl.BlockSpec((cin, ch), lambda b, t: (0, 0)),
            pl.BlockSpec((cin, co_hbm), lambda b, t: (0, 0)),
            pl.BlockSpec((ch, co_hbm), lambda b, t: (0, 0)),
            pl.BlockSpec((4, cmax), lambda b, t: (0, 0)),
        ],
        out_specs=pl.BlockSpec((None, th * Wo, co_hbm), lambda b, t: (b, t, 0)),
        scratch_shapes=[pltpu.VMEM((K, (th + 1) * Wo, ch), compute_dtype),
                        pltpu.VMEM((K, th * Wo, ch), compute_dtype)],
        compiler_params=pltpu.CompilerParams(
            dimension_semantics=("parallel", "parallel"),
            vmem_limit_bytes=vmem_limit),
    )(xq0, xq1, w1dw, w2dw, w2a_c, w1z_c, w2z_c, sh)

    if co_hbm != co:
        out = out[..., :co]                    # drop lane padding
    return out.reshape(B, Ho, Wo, co)          # free metadata reshape back to NHWC


# ----------------------------------------------------------------------------- params / reference
def init_params(key, cin, cout):
    ch = cout // 2
    ks = iter(jax.random.split(key, 24))

    def w(shape, scale=0.3):
        return jax.random.normal(next(ks), shape, jnp.float32) * scale

    return {
        # branch1: DWConv3x3 s2 -> BN -> ConvBnSilu(1x1)
        'w1dw': w((K, K, cin)), 'b1dw': w((cin,), 0.1),
        'bn1_g': 1.0 + w((cin,), 0.1), 'bn1_b': w((cin,), 0.1),
        'w1pw': w((cin, ch)), 'b1pw': w((ch,), 0.1),
        'bn1p_g': 1.0 + w((ch,), 0.1), 'bn1p_b': w((ch,), 0.1),
        # branch2: ConvBnSilu(1x1) -> DWConv3x3 s2 -> BN -> ConvBnSilu(1x1)
        'w2a': w((cin, ch)), 'b2a': w((ch,), 0.1),
        'bn2a_g': 1.0 + w((ch,), 0.1), 'bn2a_b': w((ch,), 0.1),
        'w2dw': w((K, K, ch)), 'b2dw': w((ch,), 0.1),
        'bn2b_g': 1.0 + w((ch,), 0.1), 'bn2b_b': w((ch,), 0.1),
        'w2c': w((ch, ch)), 'b2c': w((ch,), 0.1),
        'bn2c_g': 1.0 + w((ch,), 0.1), 'bn2c_b': w((ch,), 0.1),
    }


def ref_forward(x, p):
    """Pure-JAX reference (lax conv based), inference-mode BN."""
    hp = jax.lax.Precision.HIGHEST
    silu = lambda v: v * jax.nn.sigmoid(v)

    def bn(y, g, b):
        return y * (g / jnp.sqrt(1.0 + EPS)) + b

    def conv1x1(y, W, b):
        return jnp.einsum('bhwc,cd->bhwd', y, W, precision=hp) + b

    def dwconv(y, w, b):
        C = y.shape[-1]
        out = jax.lax.conv_general_dilated(
            y, w.reshape(K, K, 1, C), window_strides=(STRIDE, STRIDE),
            padding=((PAD, PAD), (PAD, PAD)),
            dimension_numbers=('NHWC', 'HWIO', 'NHWC'),
            feature_group_count=C, precision=hp)
        return out + b

    b1 = silu(bn(conv1x1(bn(dwconv(x, p['w1dw'], p['b1dw']), p['bn1_g'], p['bn1_b']),
                         p['w1pw'], p['b1pw']), p['bn1p_g'], p['bn1p_b']))
    y = silu(bn(conv1x1(x, p['w2a'], p['b2a']), p['bn2a_g'], p['bn2a_b']))
    b2 = silu(bn(conv1x1(bn(dwconv(y, p['w2dw'], p['b2dw']), p['bn2b_g'], p['bn2b_b']),
                         p['w2c'], p['b2c']), p['bn2c_g'], p['bn2c_b']))
    B, Ho, Wo, Ch = b1.shape
    return jnp.stack([b1, b2], axis=-1).reshape(B, Ho, Wo, 2 * Ch)


# ----------------------------------------------------------------------------- main
if __name__ == "__main__":
    B, Cin, H, W = 2, 4, 16, 16
    Cout = 8

    key = jax.random.PRNGKey(0)
    kp, kx = jax.random.split(key)
    params = init_params(kp, Cin, Cout)
    x = jax.random.normal(kx, (B, H, W, Cin), jnp.float32)   # NHWC (== NCHW permuted)

    ref = jax.block_until_ready(ref_forward(x, params))

    # f32 path: tight numerical check against the pure-JAX reference
    out32 = jax.block_until_ready(
        residual_downsample(x, params, compute_dtype=jnp.float32))
    assert out32.shape == (B, H // 2, W // 2, Cout), out32.shape
    err32 = float(jnp.max(jnp.abs(out32 - ref)))
    assert err32 < 3e-3, f"f32 max abs error {err32}"

    # bf16 activation / weight / output path (default perf config): loose sanity check
    out16 = jax.block_until_ready(residual_downsample(x, params))
    err16 = float(jnp.max(jnp.abs(out16.astype(jnp.float32) - ref)))
    assert err16 < 1.5e-1, f"bf16 max abs error {err16}"

    print("KERNEL_OK")
</pallas_src>

<mosaic_0001>
module attributes {stable_mosaic.version = 11 : i64} {
  func.func @_rds_kernel(%arg0: i32, %arg1: i32, %arg2: memref<1x1x3x72x4xf32, #tpu.memory_space<vmem>>, %arg3: memref<1x3x64x4xf32, #tpu.memory_space<vmem>>, %arg4: memref<9x4xf32, #tpu.memory_space<vmem>>, %arg5: memref<9x4xf32, #tpu.memory_space<vmem>>, %arg6: memref<4x4xf32, #tpu.memory_space<vmem>>, %arg7: memref<4x8xf32, #tpu.memory_space<vmem>>, %arg8: memref<4x8xf32, #tpu.memory_space<vmem>>, %arg9: memref<4x8xf32, #tpu.memory_space<vmem>>, %arg10: memref<1x64x8xf32, #tpu.memory_space<vmem>>, %arg11: memref<3x72x4xf32, #tpu.memory_space<vmem>>, %arg12: memref<3x64x4xf32, #tpu.memory_space<vmem>>) attributes {dimension_semantics = [#tpu.dimension_semantics<parallel>, #tpu.dimension_semantics<parallel>], iteration_bounds = array<i64: 2, 1>, scalar_prefetch = 0 : i64, scratch_operands = 2 : i64, tpu.core_type = #tpu.core_type<tc>, window_params = [{transform_indices = @transform_0, window_bounds = array<i64: 1, 1, 3, 72, 4>}, {transform_indices = @transform_1, window_bounds = array<i64: 1, 3, 64, 4>}, {pipeline_mode = #tpu.pipeline_mode<synchronous>, transform_indices = @transform_2, window_bounds = array<i64: 9, 4>}, {pipeline_mode = #tpu.pipeline_mode<synchronous>, transform_indices = @transform_3, window_bounds = array<i64: 9, 4>}, {pipeline_mode = #tpu.pipeline_mode<synchronous>, transform_indices = @transform_4, window_bounds = array<i64: 4, 4>}, {pipeline_mode = #tpu.pipeline_mode<synchronous>, transform_indices = @transform_5, window_bounds = array<i64: 4, 8>}, {pipeline_mode = #tpu.pipeline_mode<synchronous>, transform_indices = @transform_6, window_bounds = array<i64: 4, 8>}, {pipeline_mode = #tpu.pipeline_mode<synchronous>, transform_indices = @transform_7, window_bounds = array<i64: 4, 8>}, {transform_indices = @transform_8, window_bounds = array<i64: 1, 64, 8>}]} {
    %c8_i32 = arith.constant 8 : i32
    %0 = arith.muli %arg1, %c8_i32 : i32
    %c0 = arith.constant 0 : index
    %c0_0 = arith.constant 0 : index
    %1 = vector.load %arg6[%c0, %c0_0] : memref<4x4xf32, #tpu.memory_space<vmem>>, vector<4x4xf32>
    %c0_1 = arith.constant 0 : index
    %c0_2 = arith.constant 0 : index
    %2 = vector.load %arg9[%c0_1, %c0_2] : memref<4x8xf32, #tpu.memory_space<vmem>>, vector<1x4xf32>
    %c1 = arith.constant 1 : index
    %c0_3 = arith.constant 0 : index
    %3 = vector.load %arg9[%c1, %c0_3] : memref<4x8xf32, #tpu.memory_space<vmem>>, vector<1x4xf32>
    %c2 = arith.constant 2 : index
    %c0_4 = arith.constant 0 : index
    %4 = vector.load %arg9[%c2, %c0_4] : memref<4x8xf32, #tpu.memory_space<vmem>>, vector<1x4xf32>
    %c3 = arith.constant 3 : index
    %c0_5 = arith.constant 0 : index
    %5 = vector.load %arg9[%c3, %c0_5] : memref<4x8xf32, #tpu.memory_space<vmem>>, vector<1x8xf32>
    %c0_6 = arith.constant 0 : index
    %c0_7 = arith.constant 0 : index
    %c0_8 = arith.constant 0 : index
    %c0_9 = arith.constant 0 : index
    %c0_10 = arith.constant 0 : index
    %6 = vector.load %arg2[%c0_6, %c0_7, %c0_8, %c0_9, %c0_10] : memref<1x1x3x72x4xf32, #tpu.memory_space<vmem>>, vector<1x1x1x64x4xf32>
    %7 = vector.shape_cast %6 : vector<1x1x1x64x4xf32> to vector<64x4xf32>
    %cst = arith.constant dense<0.000000e+00> : vector<64x4xf32>
    %8 = tpu.matmul %7, %1, %cst {dimension_numbers = #tpu.dot_dimension_numbers<[1], [0], [0], [1], [0, 0, 1, 1], [], []>} : vector<64x4xf32>, vector<4x4xf32>, vector<64x4xf32> -> vector<64x4xf32>
    %9 = vector.broadcast %2 : vector<1x4xf32> to vector<64x4xf32>
    %10 = arith.addf %8, %9 : vector<64x4xf32>
    %11 = arith.negf %10 : vector<64x4xf32>
    %12 = math.exp %11 : vector<64x4xf32>
    %cst_11 = arith.constant 1.000000e+00 : f32
    %13 = vector.broadcast %cst_11 : f32 to vector<64x4xf32>
    %14 = arith.addf %13, %12 : vector<64x4xf32>
    %15 = arith.divf %13, %14 : vector<64x4xf32>
    %16 = arith.mulf %10, %15 : vector<64x4xf32>
    %17 = tpu.iota {dimensions = array<i32: 0>} : vector<64x1xi32>
    %c0_i32 = arith.constant 0 : i32
    %18 = vector.broadcast %c0_i32 : i32 to vector<64x1xi32>
    %19 = arith.addi %18, %17 : vector<64x1xi32>
    %c8_i32_12 = arith.constant 8 : i32
    %c0_i32_13 = arith.constant 0 : i32
    %20 = arith.cmpi eq, %c8_i32_12, %c0_i32_13 : i32
    %c1_i32 = arith.constant 1 : i32
    %21 = arith.select %20, %c1_i32, %c8_i32_12 : i32
    %22 = vector.broadcast %21 : i32 to vector<64x1xi32>
    %23 = arith.remsi %19, %22 : vector<64x1xi32>
    %c0_i32_14 = arith.constant 0 : i32
    %24 = vector.broadcast %c0_i32_14 : i32 to vector<64x1xi32>
    %25 = arith.cmpi ne, %23, %24 : vector<64x1xi32>
    %c0_i32_15 = arith.constant 0 : i32
    %26 = vector.broadcast %c0_i32_15 : i32 to vector<64x1xi32>
    %27 = arith.cmpi slt, %23, %26 : vector<64x1xi32>
    %c0_i32_16 = arith.constant 0 : i32
    %28 = arith.cmpi slt, %21, %c0_i32_16 : i32
    %29 = vector.broadcast %28 : i1 to vector<64x1xi1>
    %30 = vector.broadcast %29 : vector<64x1xi1> to vector<64x1xi1>
    %31 = arith.xori %27, %30 : vector<64x1xi1>
    %32 = arith.andi %31, %25 : vector<64x1xi1>
    %33 = vector.broadcast %21 : i32 to vector<64x1xi32>
    %34 = arith.addi %23, %33 : vector<64x1xi32>
    %35 = arith.select %32, %34, %23 : vector<64x1xi1>, vector<64x1xi32>
    %c0_i32_17 = arith.constant 0 : i32
    %36 = vector.broadcast %c0_i32_17 : i32 to vector<64x1xi32>
    %37 = arith.cmpi ne, %35, %36 : vector<64x1xi32>
    %c0_i32_18 = arith.constant 0 : i32
    %38 = arith.cmpi sgt, %0, %c0_i32_18 : i32
    %c8_i32_19 = arith.constant 8 : i32
    %39 = vector.broadcast %c8_i32_19 : i32 to vector<64x1xi32>
    %40 = arith.cmpi sge, %19, %39 : vector<64x1xi32>
    %41 = vector.broadcast %38 : i1 to vector<64x1xi1>
    %42 = arith.ori %41, %40 : vector<64x1xi1>
    %43 = arith.andi %37, %42 : vector<64x1xi1>
    %cst_20 = arith.constant 0.000000e+00 : f32
    %44 = vector.shape_cast %43 : vector<64x1xi1> to vector<64x1xi1>
    %45 = vector.broadcast %44 : vector<64x1xi1> to vector<64x4xi1>
    %46 = vector.broadcast %cst_20 : f32 to vector<64x4xf32>
    %47 = arith.select %45, %16, %46 : vector<64x4xi1>, vector<64x4xf32>
    %c0_21 = arith.constant 0 : index
    %c0_22 = arith.constant 0 : index
    %c0_23 = arith.constant 0 : index
    %48 = vector.load %arg11[%c0_21, %c0_22, %c0_23] : memref<3x72x4xf32, #tpu.memory_space<vmem>>, vector<1x64x4xf32>
    %49 = vector.shape_cast %48 : vector<1x64x4xf32> to vector<64x4xf32>
    %50 = vector.shape_cast %47 : vector<64x4xf32> to vector<1x64x4xf32>
    tpu.vector_store %arg11[%c0_21, %c0_22, %c0_23], %50 {strides = array<i32>} : memref<3x72x4xf32, #tpu.memory_space<vmem>>, vector<1x64x4xf32>,
    %c0_24 = arith.constant 0 : index
    %c0_25 = arith.constant 0 : index
    %c0_26 = arith.constant 0 : index
    %c64 = arith.constant 64 : index
    %c0_27 = arith.constant 0 : index
    %51 = vector.load %arg2[%c0_24, %c0_25, %c0_26, %c64, %c0_27] : memref<1x1x3x72x4xf32, #tpu.memory_space<vmem>>, vector<1x1x1x8x4xf32>
    %52 = vector.shape_cast %51 : vector<1x1x1x8x4xf32> to vector<8x4xf32>
    %cst_28 = arith.constant dense<0.000000e+00> : vector<8x4xf32>
    %53 = tpu.matmul %52, %1, %cst_28 {dimension_numbers = #tpu.dot_dimension_numbers<[1], [0], [0], [1], [0, 0, 1, 1], [], []>} : vector<8x4xf32>, vector<4x4xf32>, vector<8x4xf32> -> vector<8x4xf32>
    %54 = vector.broadcast %2 : vector<1x4xf32> to vector<8x4xf32>
    %55 = arith.addf %53, %54 : vector<8x4xf32>
    %56 = arith.negf %55 : vector<8x4xf32>
    %57 = math.exp %56 : vector<8x4xf32>
    %cst_29 = arith.constant 1.000000e+00 : f32
    %58 = vector.broadcast %cst_29 : f32 to vector<8x4xf32>
    %59 = arith.addf %58, %57 : vector<8x4xf32>
    %60 = arith.divf %58, %59 : vector<8x4xf32>
    %61 = arith.mulf %55, %60 : vector<8x4xf32>
    %62 = tpu.iota {dimensions = array<i32: 0>} : vector<8x1xi32>
    %c64_i32 = arith.constant 64 : i32
    %63 = vector.broadcast %c64_i32 : i32 to vector<8x1xi32>
    %64 = arith.addi %63, %62 : vector<8x1xi32>
    %c8_i32_30 = arith.constant 8 : i32
    %c0_i32_31 = arith.constant 0 : i32
    %65 = arith.cmpi eq, %c8_i32_30, %c0_i32_31 : i32
    %c1_i32_32 = arith.constant 1 : i32
    %66 = arith.select %65, %c1_i32_32, %c8_i32_30 : i32
    %67 = vector.broadcast %66 : i32 to vector<8x1xi32>
    %68 = arith.remsi %64, %67 : vector<8x1xi32>
    %c0_i32_33 = arith.constant 0 : i32
    %69 = vector.broadcast %c0_i32_33 : i32 to vector<8x1xi32>
    %70 = arith.cmpi ne, %68, %69 : vector<8x1xi32>
    %c0_i32_34 = arith.constant 0 : i32
    %71 = vector.broadcast %c0_i32_34 : i32 to vector<8x1xi32>
    %72 = arith.cmpi slt, %68, %71 : vector<8x1xi32>
    %c0_i32_35 = arith.constant 0 : i32
    %73 = arith.cmpi slt, %66, %c0_i32_35 : i32
    %74 = vector.broadcast %73 : i1 to vector<8x1xi1>
    %75 = vector.broadcast %74 : vector<8x1xi1> to vector<8x1xi1>
    %76 = arith.xori %72, %75 : vector<8x1xi1>
    %77 = arith.andi %76, %70 : vector<8x1xi1>
    %78 = vector.broadcast %66 : i32 to vector<8x1xi32>
    %79 = arith.addi %68, %78 : vector<8x1xi32>
    %80 = arith.select %77, %79, %68 : vector<8x1xi1>, vector<8x1xi32>
    %c0_i32_36 = arith.constant 0 : i32
    %81 = vector.broadcast %c0_i32_36 : i32 to vector<8x1xi32>
    %82 = arith.cmpi ne, %80, %81 : vector<8x1xi32>
    %cst_37 = arith.constant 0.000000e+00 : f32
    %83 = vector.shape_cast %82 : vector<8x1xi1> to vector<8x1xi1>
    %84 = vector.broadcast %83 : vector<8x1xi1> to vector<8x4xi1>
    %85 = vector.broadcast %cst_37 : f32 to vector<8x4xf32>
    %86 = arith.select %84, %61, %85 : vector<8x4xi1>, vector<8x4xf32>
    %c0_38 = arith.constant 0 : index
    %c64_39 = arith.constant 64 : index
    %c0_40 = arith.constant 0 : index
    %87 = vector.load %arg11[%c0_38, %c64_39, %c0_40] : memref<3x72x4xf32, #tpu.memory_space<vmem>>, vector<1x8x4xf32>
    %88 = vector.shape_cast %87 : vector<1x8x4xf32> to vector<8x4xf32>
    %89 = vector.shape_cast %86 : vector<8x4xf32> to vector<1x8x4xf32>
    tpu.vector_store %arg11[%c0_38, %c64_39, %c0_40], %89 {strides = array<i32>} : memref<3x72x4xf32, #tpu.memory_space<vmem>>, vector<1x8x4xf32>,
    %c0_41 = arith.constant 0 : index
    %c0_42 = arith.constant 0 : index
    %c0_43 = arith.constant 0 : index
    %c0_44 = arith.constant 0 : index
    %90 = vector.load %arg3[%c0_41, %c0_42, %c0_43, %c0_44] : memref<1x3x64x4xf32, #tpu.memory_space<vmem>>, vector<1x1x64x4xf32>
    %91 = vector.shape_cast %90 : vector<1x1x64x4xf32> to vector<64x4xf32>
    %cst_45 = arith.constant dense<0.000000e+00> : vector<64x4xf32>
    %92 = tpu.matmul %91, %1, %cst_45 {dimension_numbers = #tpu.dot_dimension_numbers<[1], [0], [0], [1], [0, 0, 1, 1], [], []>} : vector<64x4xf32>, vector<4x4xf32>, vector<64x4xf32> -> vector<64x4xf32>
    %93 = vector.broadcast %2 : vector<1x4xf32> to vector<64x4xf32>
    %94 = arith.addf %92, %93 : vector<64x4xf32>
    %95 = arith.negf %94 : vector<64x4xf32>
    %96 = math.exp %95 : vector<64x4xf32>
    %cst_46 = arith.constant 1.000000e+00 : f32
    %97 = vector.broadcast %cst_46 : f32 to vector<64x4xf32>
    %98 = arith.addf %97, %96 : vector<64x4xf32>
    %99 = arith.divf %97, %98 : vector<64x4xf32>
    %100 = arith.mulf %94, %99 : vector<64x4xf32>
    %101 = tpu.iota {dimensions = array<i32: 0>} : vector<64x1xi32>
    %c0_i32_47 = arith.constant 0 : i32
    %102 = vector.broadcast %c0_i32_47 : i32 to vector<64x1xi32>
    %103 = arith.addi %102, %101 : vector<64x1xi32>
    %c8_i32_48 = arith.constant 8 : i32
    %c0_i32_49 = arith.constant 0 : i32
    %104 = arith.cmpi eq, %c8_i32_48, %c0_i32_49 : i32
    %c1_i32_50 = arith.constant 1 : i32
    %105 = arith.select %104, %c1_i32_50, %c8_i32_48 : i32
    %106 = vector.broadcast %105 : i32 to vector<64x1xi32>
    %107 = arith.remsi %103, %106 : vector<64x1xi32>
    %c0_i32_51 = arith.constant 0 : i32
    %108 = vector.broadcast %c0_i32_51 : i32 to vector<64x1xi32>
    %109 = arith.cmpi ne, %107, %108 : vector<64x1xi32>
    %c0_i32_52 = arith.constant 0 : i32
    %110 = vector.broadcast %c0_i32_52 : i32 to vector<64x1xi32>
    %111 = arith.cmpi slt, %107, %110 : vector<64x1xi32>
    %c0_i32_53 = arith.constant 0 : i32
    %112 = arith.cmpi slt, %105, %c0_i32_53 : i32
    %113 = vector.broadcast %112 : i1 to vector<64x1xi1>
    %114 = vector.broadcast %113 : vector<64x1xi1> to vector<64x1xi1>
    %115 = arith.xori %111, %114 : vector<64x1xi1>
    %116 = arith.andi %115, %109 : vector<64x1xi1>
    %117 = vector.broadcast %105 : i32 to vector<64x1xi32>
    %118 = arith.addi %107, %117 : vector<64x1xi32>
    %119 = arith.select %116, %118, %107 : vector<64x1xi1>, vector<64x1xi32>
    %c0_i32_54 = arith.constant 0 : i32
    %120 = vector.broadcast %c0_i32_54 : i32 to vector<64x1xi32>
    %121 = arith.cmpi ne, %119, %120 : vector<64x1xi32>
    %cst_55 = arith.constant 0.000000e+00 : f32
    %122 = vector.shape_cast %121 : vector<64x1xi1> to vector<64x1xi1>
    %123 = vector.broadcast %122 : vector<64x1xi1> to vector<64x4xi1>
    %124 = vector.broadcast %cst_55 : f32 to vector<64x4xf32>
    %125 = arith.select %123, %100, %124 : vector<64x4xi1>, vector<64x4xf32>
    %c0_56 = arith.constant 0 : index
    %c0_57 = arith.constant 0 : index
    %c0_58 = arith.constant 0 : index
    %126 = vector.load %arg12[%c0_56, %c0_57, %c0_58] : memref<3x64x4xf32, #tpu.memory_space<vmem>>, vector<1x64x4xf32>
    %127 = vector.shape_cast %126 : vector<1x64x4xf32> to vector<64x4xf32>
    %128 = vector.shape_cast %125 : vector<64x4xf32> to vector<1x64x4xf32>
    tpu.vector_store %arg12[%c0_56, %c0_57, %c0_58], %128 {strides = array<i32>} : memref<3x64x4xf32, #tpu.memory_space<vmem>>, vector<1x64x4xf32>,
    %c0_59 = arith.constant 0 : index
    %c0_60 = arith.constant 0 : index
    %c1_61 = arith.constant 1 : index
    %c0_62 = arith.constant 0 : index
    %c0_63 = arith.constant 0 : index
    %129 = vector.load %arg2[%c0_59, %c0_60, %c1_61, %c0_62, %c0_63] : memref<1x1x3x72x4xf32, #tpu.memory_space<vmem>>, vector<1x1x1x64x4xf32>
    %130 = vector.shape_cast %129 : vector<1x1x1x64x4xf32> to vector<64x4xf32>
    %cst_64 = arith.constant dense<0.000000e+00> : vector<64x4xf32>
    %131 = tpu.matmul %130, %1, %cst_64 {dimension_numbers = #tpu.dot_dimension_numbers<[1], [0], [0], [1], [0, 0, 1, 1], [], []>} : vector<64x4xf32>, vector<4x4xf32>, vector<64x4xf32> -> vector<64x4xf32>
    %132 = vector.broadcast %2 : vector<1x4xf32> to vector<64x4xf32>
    %133 = arith.addf %131, %132 : vector<64x4xf32>
    %134 = arith.negf %133 : vector<64x4xf32>
    %135 = math.exp %134 : vector<64x4xf32>
    %cst_65 = arith.constant 1.000000e+00 : f32
    %136 = vector.broadcast %cst_65 : f32 to vector<64x4xf32>
    %137 = arith.addf %136, %135 : vector<64x4xf32>
    %138 = arith.divf %136, %137 : vector<64x4xf32>
    %139 = arith.mulf %133, %138 : vector<64x4xf32>
    %140 = tpu.iota {dimensions = array<i32: 0>} : vector<64x1xi32>
    %c0_i32_66 = arith.constant 0 : i32
    %141 = vector.broadcast %c0_i32_66 : i32 to vector<64x1xi32>
    %142 = arith.addi %141, %140 : vector<64x1xi32>
    %c0_i32_67 = arith.constant 0 : i32
    %143 = arith.cmpi sgt, %0, %c0_i32_67 : i32
    %c8_i32_68 = arith.constant 8 : i32
    %144 = vector.broadcast %c8_i32_68 : i32 to vector<64x1xi32>
    %145 = arith.cmpi sge, %142, %144 : vector<64x1xi32>
    %146 = vector.broadcast %143 : i1 to vector<64x1xi1>
    %147 = arith.ori %146, %145 : vector<64x1xi1>
    %cst_69 = arith.constant 0.000000e+00 : f32
    %148 = vector.shape_cast %147 : vector<64x1xi1> to vector<64x1xi1>
    %149 = vector.broadcast %148 : vector<64x1xi1> to vector<64x4xi1>
    %150 = vector.broadcast %cst_69 : f32 to vector<64x4xf32>
    %151 = arith.select %149, %139, %150 : vector<64x4xi1>, vector<64x4xf32>
    %c1_70 = arith.constant 1 : index
    %c0_71 = arith.constant 0 : index
    %c0_72 = arith.constant 0 : index
    %152 = vector.load %arg11[%c1_70, %c0_71, %c0_72] : memref<3x72x4xf32, #tpu.memory_space<vmem>>, vector<1x64x4xf32>
    %153 = vector.shape_cast %152 : vector<1x64x4xf32> to vector<64x4xf32>
    %154 = vector.shape_cast %151 : vector<64x4xf32> to vector<1x64x4xf32>
    tpu.vector_store %arg11[%c1_70, %c0_71, %c0_72], %154 {strides = array<i32>} : memref<3x72x4xf32, #tpu.memory_space<vmem>>, vector<1x64x4xf32>,
    %c0_73 = arith.constant 0 : index
    %c0_74 = arith.constant 0 : index
    %c1_75 = arith.constant 1 : index
    %c64_76 = arith.constant 64 : index
    %c0_77 = arith.constant 0 : index
    %155 = vector.load %arg2[%c0_73, %c0_74, %c1_75, %c64_76, %c0_77] : memref<1x1x3x72x4xf32, #tpu.memory_space<vmem>>, vector<1x1x1x8x4xf32>
    %156 = vector.shape_cast %155 : vector<1x1x1x8x4xf32> to vector<8x4xf32>
    %cst_78 = arith.constant dense<0.000000e+00> : vector<8x4xf32>
    %157 = tpu.matmul %156, %1, %cst_78 {dimension_numbers = #tpu.dot_dimension_numbers<[1], [0], [0], [1], [0, 0, 1, 1], [], []>} : vector<8x4xf32>, vector<4x4xf32>, vector<8x4xf32> -> vector<8x4xf32>
    %158 = vector.broadcast %2 : vector<1x4xf32> to vector<8x4xf32>
    %159 = arith.addf %157, %158 : vector<8x4xf32>
    %160 = arith.negf %159 : vector<8x4xf32>
    %161 = math.exp %160 : vector<8x4xf32>
    %cst_79 = arith.constant 1.000000e+00 : f32
    %162 = vector.broadcast %cst_79 : f32 to vector<8x4xf32>
    %163 = arith.addf %162, %161 : vector<8x4xf32>
    %164 = arith.divf %162, %163 : vector<8x4xf32>
    %165 = arith.mulf %159, %164 : vector<8x4xf32>
    %c1_80 = arith.constant 1 : index
    %c64_81 = arith.constant 64 : index
    %c0_82 = arith.constant 0 : index
    %166 = vector.load %arg11[%c1_80, %c64_81, %c0_82] : memref<3x72x4xf32, #tpu.memory_space<vmem>>, vector<1x8x4xf32>
    %167 = vector.shape_cast %166 : vector<1x8x4xf32> to vector<8x4xf32>
    %168 = vector.shape_cast %165 : vector<8x4xf32> to vector<1x8x4xf32>
    tpu.vector_store %arg11[%c1_80, %c64_81, %c0_82], %168 {strides = array<i32>} : memref<3x72x4xf32, #tpu.memory_space<vmem>>, vector<1x8x4xf32>,
    %c0_83 = arith.constant 0 : index
    %c1_84 = arith.constant 1 : index
    %c0_85 = arith.constant 0 : index
    %c0_86 = arith.constant 0 : index
    %169 = vector.load %arg3[%c0_83, %c1_84, %c0_85, %c0_86] : memref<1x3x64x4xf32, #tpu.memory_space<vmem>>, vector<1x1x64x4xf32>
    %170 = vector.shape_cast %169 : vector<1x1x64x4xf32> to vector<64x4xf32>
    %cst_87 = arith.constant dense<0.000000e+00> : vector<64x4xf32>
    %171 = tpu.matmul %170, %1, %cst_87 {dimension_numbers = #tpu.dot_dimension_numbers<[1], [0], [0], [1], [0, 0, 1, 1], [], []>} : vector<64x4xf32>, vector<4x4xf32>, vector<64x4xf32> -> vector<64x4xf32>
    %172 = vector.broadcast %2 : vector<1x4xf32> to vector<64x4xf32>
    %173 = arith.addf %171, %172 : vector<64x4xf32>
    %174 = arith.negf %173 : vector<64x4xf32>
    %175 = math.exp %174 : vector<64x4xf32>
    %cst_88 = arith.constant 1.000000e+00 : f32
    %176 = vector.broadcast %cst_88 : f32 to vector<64x4xf32>
    %177 = arith.addf %176, %175 : vector<64x4xf32>
    %178 = arith.divf %176, %177 : vector<64x4xf32>
    %179 = arith.mulf %173, %178 : vector<64x4xf32>
    %c1_89 = arith.constant 1 : index
    %c0_90 = arith.constant 0 : index
    %c0_91 = arith.constant 0 : index
    %180 = vector.load %arg12[%c1_89, %c0_90, %c0_91] : memref<3x64x4xf32, #tpu.memory_space<vmem>>, vector<1x64x4xf32>
    %181 = vector.shape_cast %180 : vector<1x64x4xf32> to vector<64x4xf32>
    %182 = vector.shape_cast %179 : vector<64x4xf32> to vector<1x64x4xf32>
    tpu.vector_store %arg12[%c1_89, %c0_90, %c0_91], %182 {strides = array<i32>} : memref<3x64x4xf32, #tpu.memory_space<vmem>>, vector<1x64x4xf32>,
    %c0_92 = arith.constant 0 : index
    %c0_93 = arith.constant 0 : index
    %c2_94 = arith.constant 2 : index
    %c0_95 = arith.constant 0 : index
    %c0_96 = arith.constant 0 : index
    %183 = vector.load %arg2[%c0_92, %c0_93, %c2_94, %c0_95, %c0_96] : memref<1x1x3x72x4xf32, #tpu.memory_space<vmem>>, vector<1x1x1x64x4xf32>
    %184 = vector.shape_cast %183 : vector<1x1x1x64x4xf32> to vector<64x4xf32>
    %cst_97 = arith.constant dense<0.000000e+00> : vector<64x4xf32>
    %185 = tpu.matmul %184, %1, %cst_97 {dimension_numbers = #tpu.dot_dimension_numbers<[1], [0], [0], [1], [0, 0, 1, 1], [], []>} : vector<64x4xf32>, vector<4x4xf32>, vector<64x4xf32> -> vector<64x4xf32>
    %186 = vector.broadcast %2 : vector<1x4xf32> to vector<64x4xf32>
    %187 = arith.addf %185, %186 : vector<64x4xf32>
    %188 = arith.negf %187 : vector<64x4xf32>
    %189 = math.exp %188 : vector<64x4xf32>
    %cst_98 = arith.constant 1.000000e+00 : f32
    %190 = vector.broadcast %cst_98 : f32 to vector<64x4xf32>
    %191 = arith.addf %190, %189 : vector<64x4xf32>
    %192 = arith.divf %190, %191 : vector<64x4xf32>
    %193 = arith.mulf %187, %192 : vector<64x4xf32>
    %194 = tpu.iota {dimensions = array<i32: 0>} : vector<64x1xi32>
    %c0_i32_99 = arith.constant 0 : i32
    %195 = vector.broadcast %c0_i32_99 : i32 to vector<64x1xi32>
    %196 = arith.addi %195, %194 : vector<64x1xi32>
    %c0_i32_100 = arith.constant 0 : i32
    %197 = arith.cmpi sgt, %0, %c0_i32_100 : i32
    %c8_i32_101 = arith.constant 8 : i32
    %198 = vector.broadcast %c8_i32_101 : i32 to vector<64x1xi32>
    %199 = arith.cmpi sge, %196, %198 : vector<64x1xi32>
    %200 = vector.broadcast %197 : i1 to vector<64x1xi1>
    %201 = arith.ori %200, %199 : vector<64x1xi1>
    %cst_102 = arith.constant 0.000000e+00 : f32
    %202 = vector.shape_cast %201 : vector<64x1xi1> to vector<64x1xi1>
    %203 = vector.broadcast %202 : vector<64x1xi1> to vector<64x4xi1>
    %204 = vector.broadcast %cst_102 : f32 to vector<64x4xf32>
    %205 = arith.select %203, %193, %204 : vector<64x4xi1>, vector<64x4xf32>
    %c2_103 = arith.constant 2 : index
    %c0_104 = arith.constant 0 : index
    %c0_105 = arith.constant 0 : index
    %206 = vector.load %arg11[%c2_103, %c0_104, %c0_105] : memref<3x72x4xf32, #tpu.memory_space<vmem>>, vector<1x64x4xf32>
    %207 = vector.shape_cast %206 : vector<1x64x4xf32> to vector<64x4xf32>
    %208 = vector.shape_cast %205 : vector<64x4xf32> to vector<1x64x4xf32>
    tpu.vector_store %arg11[%c2_103, %c0_104, %c0_105], %208 {strides = array<i32>} : memref<3x72x4xf32, #tpu.memory_space<vmem>>, vector<1x64x4xf32>,
    %c0_106 = arith.constant 0 : index
    %c0_107 = arith.constant 0 : index
    %c2_108 = arith.constant 2 : index
    %c64_109 = arith.constant 64 : index
    %c0_110 = arith.constant 0 : index
    %209 = vector.load %arg2[%c0_106, %c0_107, %c2_108, %c64_109, %c0_110] : memref<1x1x3x72x4xf32, #tpu.memory_space<vmem>>, vector<1x1x1x8x4xf32>
    %210 = vector.shape_cast %209 : vector<1x1x1x8x4xf32> to vector<8x4xf32>
    %cst_111 = arith.constant dense<0.000000e+00> : vector<8x4xf32>
    %211 = tpu.matmul %210, %1, %cst_111 {dimension_numbers = #tpu.dot_dimension_numbers<[1], [0], [0], [1], [0, 0, 1, 1], [], []>} : vector<8x4xf32>, vector<4x4xf32>, vector<8x4xf32> -> vector<8x4xf32>
    %212 = vector.broadcast %2 : vector<1x4xf32> to vector<8x4xf32>
    %213 = arith.addf %211, %212 : vector<8x4xf32>
    %214 = arith.negf %213 : vector<8x4xf32>
    %215 = math.exp %214 : vector<8x4xf32>
    %cst_112 = arith.constant 1.000000e+00 : f32
    %216 = vector.broadcast %cst_112 : f32 to vector<8x4xf32>
    %217 = arith.addf %216, %215 : vector<8x4xf32>
    %218 = arith.divf %216, %217 : vector<8x4xf32>
    %219 = arith.mulf %213, %218 : vector<8x4xf32>
    %c2_113 = arith.constant 2 : index
    %c64_114 = arith.constant 64 : index
    %c0_115 = arith.constant 0 : index
    %220 = vector.load %arg11[%c2_113, %c64_114, %c0_115] : memref<3x72x4xf32, #tpu.memory_space<vmem>>, vector<1x8x4xf32>
    %221 = vector.shape_cast %220 : vector<1x8x4xf32> to vector<8x4xf32>
    %222 = vector.shape_cast %219 : vector<8x4xf32> to vector<1x8x4xf32>
    tpu.vector_store %arg11[%c2_113, %c64_114, %c0_115], %222 {strides = array<i32>} : memref<3x72x4xf32, #tpu.memory_space<vmem>>, vector<1x8x4xf32>,
    %c0_116 = arith.constant 0 : index
    %c2_117 = arith.constant 2 : index
    %c0_118 = arith.constant 0 : index
    %c0_119 = arith.constant 0 : index
    %223 = vector.load %arg3[%c0_116, %c2_117, %c0_118, %c0_119] : memref<1x3x64x4xf32, #tpu.memory_space<vmem>>, vector<1x1x64x4xf32>
    %224 = vector.shape_cast %223 : vector<1x1x64x4xf32> to vector<64x4xf32>
    %cst_120 = arith.constant dense<0.000000e+00> : vector<64x4xf32>
    %225 = tpu.matmul %224, %1, %cst_120 {dimension_numbers = #tpu.dot_dimension_numbers<[1], [0], [0], [1], [0, 0, 1, 1], [], []>} : vector<64x4xf32>, vector<4x4xf32>, vector<64x4xf32> -> vector<64x4xf32>
    %226 = vector.broadcast %2 : vector<1x4xf32> to vector<64x4xf32>
    %227 = arith.addf %225, %226 : vector<64x4xf32>
    %228 = arith.negf %227 : vector<64x4xf32>
    %229 = math.exp %228 : vector<64x4xf32>
    %cst_121 = arith.constant 1.000000e+00 : f32
    %230 = vector.broadcast %cst_121 : f32 to vector<64x4xf32>
    %231 = arith.addf %230, %229 : vector<64x4xf32>
    %232 = arith.divf %230, %231 : vector<64x4xf32>
    %233 = arith.mulf %227, %232 : vector<64x4xf32>
    %c2_122 = arith.constant 2 : index
    %c0_123 = arith.constant 0 : index
    %c0_124 = arith.constant 0 : index
    %234 = vector.load %arg12[%c2_122, %c0_123, %c0_124] : memref<3x64x4xf32, #tpu.memory_space<vmem>>, vector<1x64x4xf32>
    %235 = vector.shape_cast %234 : vector<1x64x4xf32> to vector<64x4xf32>
    %236 = vector.shape_cast %233 : vector<64x4xf32> to vector<1x64x4xf32>
    tpu.vector_store %arg12[%c2_122, %c0_123, %c0_124], %236 {strides = array<i32>} : memref<3x64x4xf32, #tpu.memory_space<vmem>>, vector<1x64x4xf32>,
    %cst_125 = arith.constant 0.000000e+00 : f32
    %237 = vector.broadcast %cst_125 : f32 to vector<64x4xf32>
    %cst_126 = arith.constant 0.000000e+00 : f32
    %238 = vector.broadcast %cst_126 : f32 to vector<64x4xf32>
    %c0_127 = arith.constant 0 : index
    %c0_128 = arith.constant 0 : index
    %c0_129 = arith.constant 0 : index
    %c0_130 = arith.constant 0 : index
    %c0_131 = arith.constant 0 : index
    %239 = vector.load %arg2[%c0_127, %c0_128, %c0_129, %c0_130, %c0_131] : memref<1x1x3x72x4xf32, #tpu.memory_space<vmem>>, vector<1x1x1x64x4xf32>
    %240 = vector.shape_cast %239 : vector<1x1x1x64x4xf32> to vector<64x4xf32>
    %c0_132 = arith.constant 0 : index
    %c0_133 = arith.constant 0 : index
    %c0_134 = arith.constant 0 : index
    %241 = vector.load %arg11[%c0_132, %c0_133, %c0_134] : memref<3x72x4xf32, #tpu.memory_space<vmem>>, vector<1x64x4xf32>
    %242 = vector.shape_cast %241 : vector<1x64x4xf32> to vector<64x4xf32>
    %c0_135 = arith.constant 0 : index
    %c0_136 = arith.constant 0 : index
    %243 = vector.load %arg4[%c0_135, %c0_136] : memref<9x4xf32, #tpu.memory_space<vmem>>, vector<1x4xf32>
    %244 = vector.broadcast %243 : vector<1x4xf32> to vector<64x4xf32>
    %245 = arith.mulf %240, %244 : vector<64x4xf32>
    %246 = arith.addf %237, %245 : vector<64x4xf32>
    %c0_137 = arith.constant 0 : index
    %c0_138 = arith.constant 0 : index
    %247 = vector.load %arg5[%c0_137, %c0_138] : memref<9x4xf32, #tpu.memory_space<vmem>>, vector<1x4xf32>
    %248 = vector.broadcast %247 : vector<1x4xf32> to vector<64x4xf32>
    %249 = arith.mulf %242, %248 : vector<64x4xf32>
    %250 = arith.addf %238, %249 : vector<64x4xf32>
    %c0_139 = arith.constant 0 : index
    %c0_140 = arith.constant 0 : index
    %c1_141 = arith.constant 1 : index
    %c0_142 = arith.constant 0 : index
    %c0_143 = arith.constant 0 : index
    %251 = vector.load %arg2[%c0_139, %c0_140, %c1_141, %c0_142, %c0_143] : memref<1x1x3x72x4xf32, #tpu.memory_space<vmem>>, vector<1x1x1x64x4xf32>
    %252 = vector.shape_cast %251 : vector<1x1x1x64x4xf32> to vector<64x4xf32>
    %c1_144 = arith.constant 1 : index
    %c0_145 = arith.constant 0 : index
    %c0_146 = arith.constant 0 : index
    %253 = vector.load %arg11[%c1_144, %c0_145, %c0_146] : memref<3x72x4xf32, #tpu.memory_space<vmem>>, vector<1x64x4xf32>
    %254 = vector.shape_cast %253 : vector<1x64x4xf32> to vector<64x4xf32>
    %c1_147 = arith.constant 1 : index
    %c0_148 = arith.constant 0 : index
    %255 = vector.load %arg4[%c1_147, %c0_148] : memref<9x4xf32, #tpu.memory_space<vmem>>, vector<1x4xf32>
    %256 = vector.broadcast %255 : vector<1x4xf32> to vector<64x4xf32>
    %257 = arith.mulf %252, %256 : vector<64x4xf32>
    %258 = arith.addf %246, %257 : vector<64x4xf32>
    %c1_149 = arith.constant 1 : index
    %c0_150 = arith.constant 0 : index
    %259 = vector.load %arg5[%c1_149, %c0_150] : memref<9x4xf32, #tpu.memory_space<vmem>>, vector<1x4xf32>
    %260 = vector.broadcast %259 : vector<1x4xf32> to vector<64x4xf32>
    %261 = arith.mulf %254, %260 : vector<64x4xf32>
    %262 = arith.addf %250, %261 : vector<64x4xf32>
    %c0_151 = arith.constant 0 : index
    %c0_152 = arith.constant 0 : index
    %c2_153 = arith.constant 2 : index
    %c0_154 = arith.constant 0 : index
    %c0_155 = arith.constant 0 : index
    %263 = vector.load %arg2[%c0_151, %c0_152, %c2_153, %c0_154, %c0_155] : memref<1x1x3x72x4xf32, #tpu.memory_space<vmem>>, vector<1x1x1x64x4xf32>
    %264 = vector.shape_cast %263 : vector<1x1x1x64x4xf32> to vector<64x4xf32>
    %c2_156 = arith.constant 2 : index
    %c0_157 = arith.constant 0 : index
    %c0_158 = arith.constant 0 : index
    %265 = vector.load %arg11[%c2_156, %c0_157, %c0_158] : memref<3x72x4xf32, #tpu.memory_space<vmem>>, vector<1x64x4xf32>
    %266 = vector.shape_cast %265 : vector<1x64x4xf32> to vector<64x4xf32>
    %c2_159 = arith.constant 2 : index
    %c0_160 = arith.constant 0 : index
    %267 = vector.load %arg4[%c2_159, %c0_160] : memref<9x4xf32, #tpu.memory_space<vmem>>, vector<1x4xf32>
    %268 = vector.broadcast %267 : vector<1x4xf32> to vector<64x4xf32>
    %269 = arith.mulf %264, %268 : vector<64x4xf32>
    %270 = arith.addf %258, %269 : vector<64x4xf32>
    %c2_161 = arith.constant 2 : index
    %c0_162 = arith.constant 0 : index
    %271 = vector.load %arg5[%c2_161, %c0_162] : memref<9x4xf32, #tpu.memory_space<vmem>>, vector<1x4xf32>
    %272 = vector.broadcast %271 : vector<1x4xf32> to vector<64x4xf32>
    %273 = arith.mulf %266, %272 : vector<64x4xf32>
    %274 = arith.addf %262, %273 : vector<64x4xf32>
    %c0_163 = arith.constant 0 : index
    %c0_164 = arith.constant 0 : index
    %c0_165 = arith.constant 0 : index
    %c0_166 = arith.constant 0 : index
    %275 = vector.load %arg3[%c0_163, %c0_164, %c0_165, %c0_166] : memref<1x3x64x4xf32, #tpu.memory_space<vmem>>, vector<1x1x64x4xf32>
    %276 = vector.shape_cast %275 : vector<1x1x64x4xf32> to vector<64x4xf32>
    %c0_167 = arith.constant 0 : index
    %c0_168 = arith.constant 0 : index
    %c0_169 = arith.constant 0 : index
    %277 = vector.load %arg12[%c0_167, %c0_168, %c0_169] : memref<3x64x4xf32, #tpu.memory_space<vmem>>, vector<1x64x4xf32>
    %278 = vector.shape_cast %277 : vector<1x64x4xf32> to vector<64x4xf32>
    %c3_170 = arith.constant 3 : index
    %c0_171 = arith.constant 0 : index
    %279 = vector.load %arg4[%c3_170, %c0_171] : memref<9x4xf32, #tpu.memory_space<vmem>>, vector<1x4xf32>
    %280 = vector.broadcast %279 : vector<1x4xf32> to vector<64x4xf32>
    %281 = arith.mulf %276, %280 : vector<64x4xf32>
    %282 = arith.addf %270, %281 : vector<64x4xf32>
    %c3_172 = arith.constant 3 : index
    %c0_173 = arith.constant 0 : index
    %283 = vector.load %arg5[%c3_172, %c0_173] : memref<9x4xf32, #tpu.memory_space<vmem>>, vector<1x4xf32>
    %284 = vector.broadcast %283 : vector<1x4xf32> to vector<64x4xf32>
    %285 = arith.mulf %278, %284 : vector<64x4xf32>
    %286 = arith.addf %274, %285 : vector<64x4xf32>
    %c0_174 = arith.constant 0 : index
    %c1_175 = arith.constant 1 : index
    %c0_176 = arith.constant 0 : index
    %c0_177 = arith.constant 0 : index
    %287 = vector.load %arg3[%c0_174, %c1_175, %c0_176, %c0_177] : memref<1x3x64x4xf32, #tpu.memory_space<vmem>>, vector<1x1x64x4xf32>
    %288 = vector.shape_cast %287 : vector<1x1x64x4xf32> to vector<64x4xf32>
    %c1_178 = arith.constant 1 : index
    %c0_179 = arith.constant 0 : index
    %c0_180 = arith.constant 0 : index
    %289 = vector.load %arg12[%c1_178, %c0_179, %c0_180] : memref<3x64x4xf32, #tpu.memory_space<vmem>>, vector<1x64x4xf32>
    %290 = vector.shape_cast %289 : vector<1x64x4xf32> to vector<64x4xf32>
    %c4 = arith.constant 4 : index
    %c0_181 = arith.constant 0 : index
    %291 = vector.load %arg4[%c4, %c0_181] : memref<9x4xf32, #tpu.memory_space<vmem>>, vector<1x4xf32>
    %292 = vector.broadcast %291 : vector<1x4xf32> to vector<64x4xf32>
    %293 = arith.mulf %288, %292 : vector<64x4xf32>
    %294 = arith.addf %282, %293 : vector<64x4xf32>
    %c4_182 = arith.constant 4 : index
    %c0_183 = arith.constant 0 : index
    %295 = vector.load %arg5[%c4_182, %c0_183] : memref<9x4xf32, #tpu.memory_space<vmem>>, vector<1x4xf32>
    %296 = vector.broadcast %295 : vector<1x4xf32> to vector<64x4xf32>
    %297 = arith.mulf %290, %296 : vector<64x4xf32>
    %298 = arith.addf %286, %297 : vector<64x4xf32>
    %c0_184 = arith.constant 0 : index
    %c2_185 = arith.constant 2 : index
    %c0_186 = arith.constant 0 : index
    %c0_187 = arith.constant 0 : index
    %299 = vector.load %arg3[%c0_184, %c2_185, %c0_186, %c0_187] : memref<1x3x64x4xf32, #tpu.memory_space<vmem>>, vector<1x1x64x4xf32>
    %300 = vector.shape_cast %299 : vector<1x1x64x4xf32> to vector<64x4xf32>
    %c2_188 = arith.constant 2 : index
    %c0_189 = arith.constant 0 : index
    %c0_190 = arith.constant 0 : index
    %301 = vector.load %arg12[%c2_188, %c0_189, %c0_190] : memref<3x64x4xf32, #tpu.memory_space<vmem>>, vector<1x64x4xf32>
    %302 = vector.shape_cast %301 : vector<1x64x4xf32> to vector<64x4xf32>
    %c5 = arith.constant 5 : index
    %c0_191 = arith.constant 0 : index
    %303 = vector.load %arg4[%c5, %c0_191] : memref<9x4xf32, #tpu.memory_space<vmem>>, vector<1x4xf32>
    %304 = vector.broadcast %303 : vector<1x4xf32> to vector<64x4xf32>
    %305 = arith.mulf %300, %304 : vector<64x4xf32>
    %306 = arith.addf %294, %305 : vector<64x4xf32>
    %c5_192 = arith.constant 5 : index
    %c0_193 = arith.constant 0 : index
    %307 = vector.load %arg5[%c5_192, %c0_193] : memref<9x4xf32, #tpu.memory_space<vmem>>, vector<1x4xf32>
    %308 = vector.broadcast %307 : vector<1x4xf32> to vector<64x4xf32>
    %309 = arith.mulf %302, %308 : vector<64x4xf32>
    %310 = arith.addf %298, %309 : vector<64x4xf32>
    %c0_194 = arith.constant 0 : index
    %c0_195 = arith.constant 0 : index
    %c0_196 = arith.constant 0 : index
    %c8 = arith.constant 8 : index
    %c0_197 = arith.constant 0 : index
    %311 = vector.load %arg2[%c0_194, %c0_195, %c0_196, %c8, %c0_197] : memref<1x1x3x72x4xf32, #tpu.memory_space<vmem>>, vector<1x1x1x64x4xf32>
    %312 = vector.shape_cast %311 : vector<1x1x1x64x4xf32> to vector<64x4xf32>
    %c0_198 = arith.constant 0 : index
    %c8_199 = arith.constant 8 : index
    %c0_200 = arith.constant 0 : index
    %313 = vector.load %arg11[%c0_198, %c8_199, %c0_200] : memref<3x72x4xf32, #tpu.memory_space<vmem>>, vector<1x64x4xf32>
    %314 = vector.shape_cast %313 : vector<1x64x4xf32> to vector<64x4xf32>
    %c6 = arith.constant 6 : index
    %c0_201 = arith.constant 0 : index
    %315 = vector.load %arg4[%c6, %c0_201] : memref<9x4xf32, #tpu.memory_space<vmem>>, vector<1x4xf32>
    %316 = vector.broadcast %315 : vector<1x4xf32> to vector<64x4xf32>
    %317 = arith.mulf %312, %316 : vector<64x4xf32>
    %318 = arith.addf %306, %317 : vector<64x4xf32>
    %c6_202 = arith.constant 6 : index
    %c0_203 = arith.constant 0 : index
    %319 = vector.load %arg5[%c6_202, %c0_203] : memref<9x4xf32, #tpu.memory_space<vmem>>, vector<1x4xf32>
    %320 = vector.broadcast %319 : vector<1x4xf32> to vector<64x4xf32>
    %321 = arith.mulf %314, %320 : vector<64x4xf32>
    %322 = arith.addf %310, %321 : vector<64x4xf32>
    %c0_204 = arith.constant 0 : index
    %c0_205 = arith.constant 0 : index
    %c1_206 = arith.constant 1 : index
    %c8_207 = arith.constant 8 : index
    %c0_208 = arith.constant 0 : index
    %323 = vector.load %arg2[%c0_204, %c0_205, %c1_206, %c8_207, %c0_208] : memref<1x1x3x72x4xf32, #tpu.memory_space<vmem>>, vector<1x1x1x64x4xf32>
    %324 = vector.shape_cast %323 : vector<1x1x1x64x4xf32> to vector<64x4xf32>
    %c1_209 = arith.constant 1 : index
    %c8_210 = arith.constant 8 : index
    %c0_211 = arith.constant 0 : index
    %325 = vector.load %arg11[%c1_209, %c8_210, %c0_211] : memref<3x72x4xf32, #tpu.memory_space<vmem>>, vector<1x64x4xf32>
    %326 = vector.shape_cast %325 : vector<1x64x4xf32> to vector<64x4xf32>
    %c7 = arith.constant 7 : index
    %c0_212 = arith.constant 0 : index
    %327 = vector.load %arg4[%c7, %c0_212] : memref<9x4xf32, #tpu.memory_space<vmem>>, vector<1x4xf32>
    %328 = vector.broadcast %327 : vector<1x4xf32> to vector<64x4xf32>
    %329 = arith.mulf %324, %328 : vector<64x4xf32>
    %330 = arith.addf %318, %329 : vector<64x4xf32>
    %c7_213 = arith.constant 7 : index
    %c0_214 = arith.constant 0 : index
    %331 = vector.load %arg5[%c7_213, %c0_214] : memref<9x4xf32, #tpu.memory_space<vmem>>, vector<1x4xf32>
    %332 = vector.broadcast %331 : vector<1x4xf32> to vector<64x4xf32>
    %333 = arith.mulf %326, %332 : vector<64x4xf32>
    %334 = arith.addf %322, %333 : vector<64x4xf32>
    %c0_215 = arith.constant 0 : index
    %c0_216 = arith.constant 0 : index
    %c2_217 = arith.constant 2 : index
    %c8_218 = arith.constant 8 : index
    %c0_219 = arith.constant 0 : index
    %335 = vector.load %arg2[%c0_215, %c0_216, %c2_217, %c8_218, %c0_219] : memref<1x1x3x72x4xf32, #tpu.memory_space<vmem>>, vector<1x1x1x64x4xf32>
    %336 = vector.shape_cast %335 : vector<1x1x1x64x4xf32> to vector<64x4xf32>
    %c2_220 = arith.constant 2 : index
    %c8_221 = arith.constant 8 : index
    %c0_222 = arith.constant 0 : index
    %337 = vector.load %arg11[%c2_220, %c8_221, %c0_222] : memref<3x72x4xf32, #tpu.memory_space<vmem>>, vector<1x64x4xf32>
    %338 = vector.shape_cast %337 : vector<1x64x4xf32> to vector<64x4xf32>
    %c8_223 = arith.constant 8 : index
    %c0_224 = arith.constant 0 : index
    %339 = vector.load %arg4[%c8_223, %c0_224] : memref<9x4xf32, #tpu.memory_space<vmem>>, vector<1x4xf32>
    %340 = vector.broadcast %339 : vector<1x4xf32> to vector<64x4xf32>
    %341 = arith.mulf %336, %340 : vector<64x4xf32>
    %342 = arith.addf %330, %341 : vector<64x4xf32>
    %c8_225 = arith.constant 8 : index
    %c0_226 = arith.constant 0 : index
    %343 = vector.load %arg5[%c8_225, %c0_226] : memref<9x4xf32, #tpu.memory_space<vmem>>, vector<1x4xf32>
    %344 = vector.broadcast %343 : vector<1x4xf32> to vector<64x4xf32>
    %345 = arith.mulf %338, %344 : vector<64x4xf32>
    %346 = arith.addf %334, %345 : vector<64x4xf32>
    %347 = vector.broadcast %3 : vector<1x4xf32> to vector<64x4xf32>
    %348 = arith.addf %342, %347 : vector<64x4xf32>
    %349 = vector.broadcast %4 : vector<1x4xf32> to vector<64x4xf32>
    %350 = arith.addf %346, %349 : vector<64x4xf32>
    %c0_227 = arith.constant 0 : index
    %c0_228 = arith.constant 0 : index
    %351 = vector.load %arg7[%c0_227, %c0_228] : memref<4x8xf32, #tpu.memory_space<vmem>>, vector<4x8xf32>
    %cst_229 = arith.constant dense<0.000000e+00> : vector<64x8xf32>
    %352 = tpu.matmul %348, %351, %cst_229 {dimension_numbers = #tpu.dot_dimension_numbers<[1], [0], [0], [1], [0, 0, 1, 1], [], []>} : vector<64x4xf32>, vector<4x8xf32>, vector<64x8xf32> -> vector<64x8xf32>
    %c0_230 = arith.constant 0 : index
    %c0_231 = arith.constant 0 : index
    %353 = vector.load %arg8[%c0_230, %c0_231] : memref<4x8xf32, #tpu.memory_space<vmem>>, vector<4x8xf32>
    %cst_232 = arith.constant dense<0.000000e+00> : vector<64x8xf32>
    %354 = tpu.matmul %350, %353, %cst_232 {dimension_numbers = #tpu.dot_dimension_numbers<[1], [0], [0], [1], [0, 0, 1, 1], [], []>} : vector<64x4xf32>, vector<4x8xf32>, vector<64x8xf32> -> vector<64x8xf32>
    %355 = arith.addf %352, %354 : vector<64x8xf32>
    %356 = vector.broadcast %5 : vector<1x8xf32> to vector<64x8xf32>
    %357 = arith.addf %355, %356 : vector<64x8xf32>
    %358 = arith.negf %357 : vector<64x8xf32>
    %359 = math.exp %358 : vector<64x8xf32>
    %cst_233 = arith.constant 1.000000e+00 : f32
    %360 = vector.broadcast %cst_233 : f32 to vector<64x8xf32>
    %361 = arith.addf %360, %359 : vector<64x8xf32>
    %362 = arith.divf %360, %361 : vector<64x8xf32>
    %363 = arith.mulf %357, %362 : vector<64x8xf32>
    %c0_234 = arith.constant 0 : index
    %c0_235 = arith.constant 0 : index
    %c0_236 = arith.constant 0 : index
    %364 = vector.load %arg10[%c0_234, %c0_235, %c0_236] : memref<1x64x8xf32, #tpu.memory_space<vmem>>, vector<1x64x8xf32>
    %365 = vector.shape_cast %364 : vector<1x64x8xf32> to vector<64x8xf32>
    %366 = vector.shape_cast %363 : vector<64x8xf32> to vector<1x64x8xf32>
    tpu.vector_store %arg10[%c0_234, %c0_235, %c0_236], %366 {strides = array<i32>} : memref<1x64x8xf32, #tpu.memory_space<vmem>>, vector<1x64x8xf32>,
    return
  }
  func.func @transform_0(%arg0: i32, %arg1: i32) -> (i32, i32, i32, i32, i32) {
    %c0_i32 = arith.constant 0 : i32
    %c0_i32_0 = arith.constant 0 : i32
    %c0_i32_1 = arith.constant 0 : i32
    %c0_i32_2 = arith.constant 0 : i32
    return %arg0, %arg1, %c0_i32, %c0_i32_0, %c0_i32_1 : i32, i32, i32, i32, i32
  }
  func.func @transform_1(%arg0: i32, %arg1: i32) -> (i32, i32, i32, i32) {
    %c0_i32 = arith.constant 0 : i32
    %c0_i32_0 = arith.constant 0 : i32
    %c0_i32_1 = arith.constant 0 : i32
    return %arg0, %c0_i32, %arg1, %c0_i32_0 : i32, i32, i32, i32
  }
  func.func @transform_2(%arg0: i32, %arg1: i32) -> (i32, i32) {
    %c0_i32 = arith.constant 0 : i32
    %c0_i32_0 = arith.constant 0 : i32
    %c0_i32_1 = arith.constant 0 : i32
    return %c0_i32, %c0_i32_0 : i32, i32
  }
  func.func @transform_3(%arg0: i32, %arg1: i32) -> (i32, i32) {
    %c0_i32 = arith.constant 0 : i32
    %c0_i32_0 = arith.constant 0 : i32
    %c0_i32_1 = arith.constant 0 : i32
    return %c0_i32, %c0_i32_0 : i32, i32
  }
  func.func @transform_4(%arg0: i32, %arg1: i32) -> (i32, i32) {
    %c0_i32 = arith.constant 0 : i32
    %c0_i32_0 = arith.constant 0 : i32
    %c0_i32_1 = arith.constant 0 : i32
    return %c0_i32, %c0_i32_0 : i32, i32
  }
  func.func @transform_5(%arg0: i32, %arg1: i32) -> (i32, i32) {
    %c0_i32 = arith.constant 0 : i32
    %c0_i32_0 = arith.constant 0 : i32
    %c0_i32_1 = arith.constant 0 : i32
    return %c0_i32, %c0_i32_0 : i32, i32
  }
  func.func @transform_6(%arg0: i32, %arg1: i32) -> (i32, i32) {
    %c0_i32 = arith.constant 0 : i32
    %c0_i32_0 = arith.constant 0 : i32
    %c0_i32_1 = arith.constant 0 : i32
    return %c0_i32, %c0_i32_0 : i32, i32
  }
  func.func @transform_7(%arg0: i32, %arg1: i32) -> (i32, i32) {
    %c0_i32 = arith.constant 0 : i32
    %c0_i32_0 = arith.constant 0 : i32
    %c0_i32_1 = arith.constant 0 : i32
    return %c0_i32, %c0_i32_0 : i32, i32
  }
  func.func @transform_8(%arg0: i32, %arg1: i32) -> (i32, i32, i32) {
    %c0_i32 = arith.constant 0 : i32
    %c0_i32_0 = arith.constant 0 : i32
    return %arg0, %arg1, %c0_i32 : i32, i32, i32
  }
}

</mosaic_0001>

<bundles_post_ra>
// kernel: tpu_custom_call.1
= control target key start
LH: loop header
LB: loop body
LE: loop exit
PB: predicated region body
PF: predicated region fallthrough
CT: control target
= control target key end

     0   :  { %s3650_s27 = smov 0   ;;  %s3652_s28 = smov 0   ;;  %s5555_s0 = inlined_call_operand.vmem [shape: f32[2,1,3,72,4], index: 0, kind: input, shape index: {}]   ;;  %s5556_s1 = inlined_call_operand.vmem [shape: f32[2,3,64,4], index: 1, kind: input, shape index: {}]   ;;  %s5557_s2 = inlined_call_operand.vmem [shape: f32[9,4], index: 2, kind: input, shape index: {}]   ;;  %s5558_s3 = inlined_call_operand.vmem [shape: f32[9,4], index: 3, kind: input, shape index: {}]   ;;  %s5559_s4 = inlined_call_operand.vmem [shape: f32[4,4], index: 4, kind: input, shape index: {}]   ;;  %s5560_s5 = inlined_call_operand.vmem [shape: f32[4,8], index: 5, kind: input, shape index: {}]   ;;  %s5561_s6 = inlined_call_operand.vmem [shape: f32[4,8], index: 6, kind: input, shape index: {}]   ;;  %s5562_s7 = inlined_call_operand.vmem [shape: f32[4,8], index: 7, kind: input, shape index: {}]   ;;  %s5563_s8 = inlined_call_operand.vmem [shape: f32[2,64,8], index: 8, kind: output, shape index: {}]  }
   0x1   :  { %s3654_s29 = smov 0  }
   0x2 LB: > { %s30_s30 = sadd.s32 1, %s3598_s28  ;;  %p3090_p0 = scmp.ge.s32.totalorder %s3602_s29, 1  ;;  %s3602_s29 = sphi %s3654_s29, %s18_s29   ;;  %s3598_s28 = sphi %s3652_s28, %s5781_s28   ;;  %s3594_s27 = sphi %s3650_s27, %s5780_s27  }
   0x3   : > { %p32_p1 = scmp.ge.s32.totalorder %s30_s30, 2  ;;  %p299_p2 = scmp.lt.s32.totalorder %s3602_s29, 3 }
   0x5   : > { %s5783_s30 = smov (%p32_p1, %s30_s30), 0  ;;  %p300_p3 = pnand %p3090_p0, %p299_p2 }
   0x6   : > { %p350_p4 = scmp.lt.s32.totalorder (!%p300_p3), %s3594_s27, 1 }
   0x7   : > { %303 = sbr.rel (%p300_p3) target bundleno = 638 (0x27e), region = 52 }
   0xc   : > { %v380_v0 = vld [vmem:[%s5559_s4] sm:$0xf]  ;;  %vm5564_vm0 = vcmask 1043456   ;;  %s5785_s27 = smov (!%p350_p4, %s3594_s27), 1  ;;  %vm5565_vm1 = vcmask 31744   ;;  %v624_v58 = vlaneseq }
   0xd   : > { %3095 = vmatpush.msk.msra.mxu0 %vm5564_vm0, %v380_v0  ;;  %3140 = vmatpush.msk.msra.mxu3 %vm5564_vm0, %v380_v0  ;;  %s3303_s11 = smul.u32 216, %s5785_s27  ;;  %v3799_v53 = vld [vmem:[%s5562_s7] ss:$0 sm:$0xff]  ;;  %s3302_s9 = sshll.u32 %s5785_s27, 6 }
   0xe   : > { %3115 = vmatpush.msk.msra.mxu2 %vm5564_vm0, %v380_v0  ;;  %3158 = vmatpush.msk.msra.mxu1 %vm5564_vm0, %v380_v0  ;;  %s3304_s12 = smul.u32 192, %s5785_s27 }
   0xf   : > { %3112 = vmatpush.msk.msrb.mxu0 %vm5564_vm0, %v380_v0  ;;  %3223 = vmatpush.msk.msrb.mxu3 %vm5564_vm0, %v380_v0  ;;  %s3686_s15 = scalar_lea.vmem %s5555_s0, %s3303_s11 }
  0x10   : > { %3169 = vmatpush.msk.msrb.mxu1 %vm5564_vm0, %v380_v0  ;;  %3212 = vmatpush.msk.msrb.mxu2 %vm5564_vm0, %v380_v0  ;;  %v385_v1 = vld [vmem:[%s3686_s15] sm:$0xff]  ;;  %v3132_v2 = vld [vmem:[%s3686_s15 + $0x48] sm:$0xff]  ;;  %s3693_s18 = scalar_lea.vmem %s5556_s1, %s3304_s12  ;;  %v3133_v5 = vld [vmem:[%s3686_s15 + $0x50] sm:$0xff]  ;;  %s5501_s12 = scalar_lea.vmem %s5563_s8, %s3302_s9 }
  0x11   : > { %3096 = vmatmul.msk.f32.vlgmr.msra.gmra.mxu0 %vm5565_vm1, %v385_v1  ;;  %3141 = vmatmul.msk.f32.vlgmr.msra.gmra.mxu3 %vm5565_vm1, %v3132_v2  ;;  %v859_v3 = vld [vmem:[%s3693_s18] sm:$0xff]  ;;  %v386_v4 = vld [vmem:[%s3686_s15 + $0x8] sm:$0xff]  ;;  %v387_v8 = vld [vmem:[%s3686_s15 + $0x10] sm:$0xff]  ;;  %v3812_v1 = vshrl.u32 %v624_v58, 7 }
  0x12   : > { %3194 = vmatpush.msk.msra.mxu0 %vm5564_vm0, %v380_v0  ;;  %3116 = vmatmul.msk.f32.vlgmr.msra.gmra.mxu2 %vm5565_vm1, %v859_v3  ;;  %v3157_v6 = vld [vmem:[%s3686_s15 + $0x88] sm:$0xff]  ;;  %v3134_v9 = vld [vmem:[%s3686_s15 + $0x58] sm:$0xff]  ;;  %v3161_v10 = vld [vmem:[%s3693_s18 + $0x40] sm:$0xff] }
  0x13   : > { %v860_v7 = vld [vmem:[%s3693_s18 + $0x8] sm:$0xff]  ;;  %3159 = vmatmul.msk.f32.vlgmr.msra.gmra.mxu1 %vm5565_vm1, %v3157_v6  ;;  %v861_v11 = vld [vmem:[%s3693_s18 + $0x10] sm:$0xff]  ;;  %v388_v12 = vld [vmem:[%s3686_s15 + $0x18] sm:$0xff]  ;;  %v626_v6 = vadd.s32 8, %v3812_v1 }
  0x14   : > { %v3135_v13 = vld [vmem:[%s3686_s15 + $0x60] sm:$0xff]  ;;  %v3162_v14 = vld [vmem:[%s3693_s18 + $0x48] sm:$0xff]  ;;  %v862_v15 = vld [vmem:[%s3693_s18 + $0x18] sm:$0xff] }
  0x15   : > { %v389_v16 = vld [vmem:[%s3686_s15 + $0x20] sm:$0xff]  ;;  %v3136_v17 = vld [vmem:[%s3686_s15 + $0x68] sm:$0xff]  ;;  %v3163_v18 = vld [vmem:[%s3693_s18 + $0x50] sm:$0xff] }
  0x16   : > { %v863_v19 = vld [vmem:[%s3693_s18 + $0x20] sm:$0xff]  ;;  %v390_v20 = vld [vmem:[%s3686_s15 + $0x28] sm:$0xff]  ;;  %v3137_v21 = vld [vmem:[%s3686_s15 + $0x70] sm:$0xff] }
  0x17   : > { %v3164_v22 = vld [vmem:[%s3693_s18 + $0x58] sm:$0xff]  ;;  %v864_v23 = vld [vmem:[%s3693_s18 + $0x28] sm:$0xff]  ;;  %v391_v24 = vld [vmem:[%s3686_s15 + $0x30] sm:$0xff] }
  0x18   : > { %v3138_v25 = vld [vmem:[%s3686_s15 + $0x78] sm:$0xff]  ;;  %v3165_v26 = vld [vmem:[%s3693_s18 + $0x60] sm:$0xff]  ;;  %v865_v27 = vld [vmem:[%s3693_s18 + $0x30] sm:$0xff] }
  0x19   : > { %3097 = vmatmul.msk.f32.gmra.mxu0 %vm5565_vm1, %v386_v4  ;;  %3142 = vmatmul.msk.f32.gmra.mxu3 %vm5565_vm1, %v3133_v5  ;;  %v392_v28 = vld [vmem:[%s3686_s15 + $0x38] sm:$0xff]  ;;  %v3139_v29 = vld [vmem:[%s3686_s15 + $0x80] sm:$0xff]  ;;  %v3166_v30 = vld [vmem:[%s3693_s18 + $0x68] sm:$0xff] }
  0x1a   : > { %3117 = vmatmul.msk.f32.gmra.mxu2 %vm5565_vm1, %v860_v7  ;;  %v866_v31 = vld [vmem:[%s3693_s18 + $0x38] sm:$0xff]  ;;  %v797_v32 = vld [vmem:[%s3686_s15 + $0x40] sm:$0xff]  ;;  %v3167_v34 = vld [vmem:[%s3693_s18 + $0x70] sm:$0xff] }
  0x1b   : > { %3170 = vmatmul.msk.f32.vlgmr.msrb.gmra.mxu1 %vm5565_vm1, %v3161_v10  ;;  %v3215_v33 = vld [vmem:[%s3693_s18 + $0x80] sm:$0xff]  ;;  %v3186_v35 = vld [vmem:[%s3686_s15 + $0x90] sm:$0xff]  ;;  %v3216_v36 = vld [vmem:[%s3693_s18 + $0x88] sm:$0xff] }
  0x1c   : > { %v3168_v37 = vld [vmem:[%s3693_s18 + $0x78] sm:$0xff]  ;;  %v3211_v38 = vld [vmem:[%s3686_s15 + $0xd0] sm:$0xff]  ;;  %v3188_v41 = vld [vmem:[%s3686_s15 + $0xa0] sm:$0xff] }
  0x1d   : > { %v3187_v39 = vld [vmem:[%s3686_s15 + $0x98] sm:$0xff]  ;;  %v3217_v40 = vld [vmem:[%s3693_s18 + $0x90] sm:$0xff]  ;;  %v3189_v43 = vld [vmem:[%s3686_s15 + $0xa8] sm:$0xff] }
  0x1e   : > { %v3218_v42 = vld [vmem:[%s3693_s18 + $0x98] sm:$0xff]  ;;  %v3219_v44 = vld [vmem:[%s3693_s18 + $0xa0] sm:$0xff]  ;;  %v3190_v45 = vld [vmem:[%s3686_s15 + $0xb0] sm:$0xff] }
  0x1f   : > { %v3220_v46 = vld [vmem:[%s3693_s18 + $0xa8] sm:$0xff]  ;;  %v3191_v47 = vld [vmem:[%s3686_s15 + $0xb8] sm:$0xff]  ;;  %v3221_v48 = vld [vmem:[%s3693_s18 + $0xb0] sm:$0xff] }
  0x20   : > { %v3192_v49 = vld [vmem:[%s3686_s15 + $0xc0] sm:$0xff]  ;;  %v3222_v50 = vld [vmem:[%s3693_s18 + $0xb8] sm:$0xff]  ;;  %v3193_v52 = vld [vmem:[%s3686_s15 + $0xc8] sm:$0xff] }
  0x21   : > { %3098 = vmatmul.msk.f32.gmra.mxu0 %vm5565_vm1, %v387_v8  ;;  %3143 = vmatmul.msk.f32.gmra.mxu3 %vm5565_vm1, %v3134_v9 }
  0x22   : > { %3118 = vmatmul.msk.f32.gmra.mxu2 %vm5565_vm1, %v861_v11 }
  0x23   : > { %3171 = vmatmul.msk.f32.gmra.mxu1 %vm5565_vm1, %v3162_v14 }
  0x29   : > { %3099 = vmatmul.msk.f32.gmra.mxu0 %vm5565_vm1, %v388_v12  ;;  %3144 = vmatmul.msk.f32.gmra.mxu3 %vm5565_vm1, %v3135_v13 }
  0x2a   : > { %3119 = vmatmul.msk.f32.gmra.mxu2 %vm5565_vm1, %v862_v15  ;;  %v644_v15 = vand.u32 7, %v626_v6 }
  0x2b   : > { %3172 = vmatmul.msk.f32.gmra.mxu1 %vm5565_vm1, %v3163_v18 }
  0x2c   : > { %vm3840_vm2 = vcmp.ne.s32.totalorder %v644_v15, 0 }
  0x31   : > { %3100 = vmatmul.msk.f32.gmra.mxu0 %vm5565_vm1, %v389_v16  ;;  %3145 = vmatmul.msk.f32.gmra.mxu3 %vm5565_vm1, %v3136_v17  ;;  %v627_v17 = vadd.s32 16, %v3812_v1 }
  0x32   : > { %3120 = vmatmul.msk.f32.gmra.mxu2 %vm5565_vm1, %v863_v19 }
  0x33   : > { %3173 = vmatmul.msk.f32.gmra.mxu1 %vm5565_vm1, %v3164_v22 }
  0x39   : > { %3101 = vmatmul.msk.f32.gmra.mxu0 %vm5565_vm1, %v390_v20  ;;  %3146 = vmatmul.msk.f32.gmra.mxu3 %vm5565_vm1, %v3137_v21 }
  0x3a   : > { %3121 = vmatmul.msk.f32.gmra.mxu2 %vm5565_vm1, %v864_v23 }
  0x3b   : > { %3174 = vmatmul.msk.f32.gmra.mxu1 %vm5565_vm1, %v3165_v26  ;;  %v3838_v26 = vadd.s32 24, %v3812_v1 }
  0x41   : > { %3102 = vmatmul.msk.f32.gmra.mxu0 %vm5565_vm1, %v391_v24  ;;  %3147 = vmatmul.msk.f32.gmra.mxu3 %vm5565_vm1, %v3138_v25 }
  0x42   : > { %3122 = vmatmul.msk.f32.gmra.mxu2 %vm5565_vm1, %v865_v27 }
  0x43   : > { %3175 = vmatmul.msk.f32.gmra.mxu1 %vm5565_vm1, %v3166_v30 }
  0x49   : > { %3103 = vmatmul.msk.f32.gmra.mxu0 %vm5565_vm1, %v392_v28  ;;  %3148 = vmatmul.msk.f32.gmra.mxu3 %vm5565_vm1, %v3139_v29  ;;  %v651_v29 = vand.u32 7, %v627_v17 }
  0x4a   : > { %3123 = vmatmul.msk.f32.gmra.mxu2 %vm5565_vm1, %v866_v31 }
  0x4b   : > { %3176 = vmatmul.msk.f32.gmra.mxu1 %vm5565_vm1, %v3167_v34  ;;  %vm3882_vm11 = vcmp.ne.s32.totalorder %v651_v29, 0 }
  0x51   : > { %3113 = vmatmul.msk.f32.vlgmr.msrb.gmra.mxu0 %vm5565_vm1, %v797_v32  ;;  %3224 = vmatmul.msk.f32.vlgmr.msrb.gmra.mxu3 %vm5565_vm1, %v3215_v33 }
  0x52   : > { %3213 = vmatmul.msk.f32.vlgmr.msrb.gmra.mxu2 %vm5565_vm1, %v3211_v38 }
  0x53   : > { %3177 = vmatmul.msk.f32.gmra.mxu1 %vm5565_vm1, %v3168_v37 }
  0x59   : > { %3195 = vmatmul.msk.f32.vlgmr.msra.gmra.mxu0 %vm5565_vm1, %v3186_v35  ;;  %3225 = vmatmul.msk.f32.gmra.mxu3 %vm5565_vm1, %v3216_v36 }
  0x61   : > { %3196 = vmatmul.msk.f32.gmra.mxu0 %vm5565_vm1, %v3187_v39  ;;  %3226 = vmatmul.msk.f32.gmra.mxu3 %vm5565_vm1, %v3217_v40 }
  0x69   : > { %3197 = vmatmul.msk.f32.gmra.mxu0 %vm5565_vm1, %v3188_v41  ;;  %3227 = vmatmul.msk.f32.gmra.mxu3 %vm5565_vm1, %v3218_v42  ;;  %v658_v41 = vand.u32 7, %v3838_v26 }
  0x71   : > { %3198 = vmatmul.msk.f32.gmra.mxu0 %vm5565_vm1, %v3189_v43  ;;  %3228 = vmatmul.msk.f32.gmra.mxu3 %vm5565_vm1, %v3219_v44 }
  0x79   : > { %3199 = vmatmul.msk.f32.gmra.mxu0 %vm5565_vm1, %v3190_v45  ;;  %3229 = vmatmul.msk.f32.gmra.mxu3 %vm5565_vm1, %v3220_v46 }
  0x81   : > { %3200 = vmatmul.msk.f32.gmra.mxu0 %vm5565_vm1, %v3191_v47  ;;  %3230 = vmatmul.msk.f32.gmra.mxu3 %vm5565_vm1, %v3221_v48 }
  0x89   : > { %3201 = vmatmul.msk.f32.gmra.mxu0 %vm5565_vm1, %v3192_v49  ;;  %3231 = vmatmul.msk.f32.gmra.mxu3 %vm5565_vm1, %v3222_v50 }
  0x8e   : > { %v440_v51 = vpop.f32.mrf.mxu0 }
  0x90   : > { %v1412_v62 = vpop.f32.mrf.mxu1 }
  0x91   : > { %3202 = vmatmul.msk.f32.gmra.mxu0 %vm5565_vm1, %v3193_v52  ;;  %v3815_v2 = vadd.f32 %v3799_v53, %v1412_v62 }
  0x93   : > { %v3160_v8 = vmul.f32 -1.442695, %v3815_v2 }
  0x94   : > { %v1174_v54 = vpop.f32.mrf.mxu3 }
  0x95   : > { %v908_v11 = vpop.f32.mrf.mxu2 }
  0x96   : > { %v443_v55 = vpop.f32.mrf.mxu0  ;;  %v3832_v20 = vadd.f32 %v3799_v53, %v908_v11 }
  0x97   : > { %v3802_v56 = vadd.f32 %v3799_v53, %v443_v55 }
  0x98   : > { %v3124_v33 = vmul.f32 -1.442695, %v3832_v20 }
  0x99   : > { %v3105_v57 = vmul.f32 -1.442695, %v3802_v56 }
  0x9b   : > { %3351 = vpow2.f32 %v3105_v57 }
  0x9c   : > { %v1177_v59 = vpop.f32.mrf.mxu3 }
  0x9d   : > { %v3806_v60 = vadd.f32 %v3799_v53, %v1177_v59 }
  0x9e   : > { %v446_v61 = vpop.f32.mrf.mxu0 }
  0x9f   : > { %v3150_v63 = vmul.f32 -1.442695, %v3806_v60  ;;  %v3810_v0 = vadd.f32 %v3799_v53, %v446_v61 }
  0xa1   : > { %v3352_v3 = vpop.eup %3351  ;;  %3353 = vpow2.f32 %v3150_v63  ;;  %v3106_v4 = vmul.f32 -1.442695, %v3810_v0 }
  0xa2   : > { %v489_v5 = vadd.f32 1.0, %v3352_v3 }
  0xa3   : > { %3355 = vpow2.f32 %v3106_v4 }
  0xa4   : > { %3357 = vrcp.f32 %v489_v5  ;;  %v1180_v7 = vpop.f32.mrf.mxu3  ;;  %v520_v22 = vand.u32 2147483647, %v489_v5  ;;  %v522_v23 = vand.u32 2147483648, %v489_v5  ;;  %vm516_vm3 = vweird.f32 %v489_v5 }
  0xa5   : > { %v3821_v9 = vadd.f32 %v3799_v53, %v1180_v7  ;;  %3359 = vpow2.f32 %v3160_v8 }
  0xa6   : > { %v449_v10 = vpop.f32.mrf.mxu0  ;;  %vm3848_vm4 = vcmp.eq.f32.partialorder %v520_v22, 8.507059e+37  ;;  %v523_v36 = vor.u32 1.1754944e-38, %v522_v23 }
  0xa7   : > { %v3354_v12 = vpop.eup %3353  ;;  %v3151_v13 = vmul.f32 -1.442695, %v3821_v9  ;;  %v3825_v14 = vadd.f32 %v3799_v53, %v449_v10 }
  0xa8   : > { %v3827_v16 = vadd.f32 1.0, %v3354_v12 }
  0xa9   : > { %v3356_v18 = vpop.eup %3355  ;;  %3361 = vpow2.f32 %v3151_v13  ;;  %v3107_v19 = vmul.f32 -1.442695, %v3825_v14 }
  0xaa   : > { %v3358_v21 = vpop.eup %3357  ;;  %3363 = vrcp.f32 %v3827_v16  ;;  %v3835_v25 = vadd.f32 1.0, %v3356_v18  ;;  %v1256_v28 = vand.u32 2147483648, %v3827_v16  ;;  %v1254_v32 = vand.u32 2147483647, %v3827_v16 }
  0xab   : > { %v512_v24 = vmul.f32 %v3358_v21, %v489_v5  ;;  %3365 = vpow2.f32 %v3107_v19  ;;  %v3360_v34 = vpop.eup %3359  ;;  %vm517_vm5 = vweird.f32 %v3358_v21  ;;  %vm1250_vm6 = vweird.f32 %v3827_v16 }
  0xac   : > { %v1183_v30 = vpop.f32.mrf.mxu3  ;;  %3367 = vrcp.f32 %v3835_v25  ;;  %v1257_v44 = vor.u32 1.1754944e-38, %v1256_v28  ;;  %vm3864_vm7 = vcmp.eq.f32.partialorder %v1254_v32, 8.507059e+37  ;;  %v3868_v51 = vadd.f32 1.0, %v3360_v34  ;;  %vm518_vm8 = vmor %vm516_vm3, %vm517_vm5 }
  0xad   : > { %v513_v31 = vsub.f32 1.0, %v512_v24  ;;  %v3853_v37 = vadd.f32 %v3799_v53, %v1183_v30  ;;  %3369 = vpow2.f32 %v3124_v33  ;;  %v535_v52 = vand.u32 2147483647, %v3835_v25 }
  0xae   : > { %v452_v38 = vpop.f32.mrf.mxu0  ;;  %v537_v54 = vand.u32 2147483648, %v3835_v25  ;;  %vm531_vm10 = vweird.f32 %v3835_v25  ;;  %v3903_v19 = vadd.s32 32, %v3812_v1 }
  0xaf   : > { %v3362_v39 = vpop.eup %3361  ;;  %v514_v40 = vmul.f32 %v3358_v21, %v513_v31  ;;  %v3857_v42 = vadd.f32 %v3799_v53, %v452_v38  ;;  %v3152_v46 = vmul.f32 -1.442695, %v3853_v37  ;;  %vm3888_vm12 = vcmp.eq.f32.partialorder %v535_v52, 8.507059e+37 }
  0xb0   : > { %v3364_v43 = vpop.eup %3363  ;;  %v3860_v45 = vadd.f32 1.0, %v3362_v39  ;;  %v538_v15 = vor.u32 1.1754944e-38, %v537_v54 }
  0xb1   : > { %v3366_v47 = vpop.eup %3365  ;;  %v515_v48 = vadd.f32 %v3358_v21, %v514_v40  ;;  %v1246_v49 = vmul.f32 %v3364_v43, %v3827_v16  ;;  %v3108_v55 = vmul.f32 -1.442695, %v3857_v42  ;;  %vm1251_vm9 = vweird.f32 %v3364_v43 }
  0xb2   : > { %3371 = vrcp.f32 %v3860_v45  ;;  %v3368_v57 = vpop.eup %3367  ;;  %v3875_v61 = vadd.f32 1.0, %v3366_v47  ;;  %v1269_v6 = vand.u32 2147483647, %v3860_v45  ;;  %v1271_v11 = vand.u32 2147483648, %v3860_v45  ;;  %vm1252_vm13 = vmor %vm1250_vm6, %vm1251_vm9 }
  0xb3   : > { %v519_v58 = vsel %vm518_vm8, %v3358_v21, %v515_v48  ;;  %v1247_v59 = vsub.f32 1.0, %v1246_v49  ;;  %3373 = vpow2.f32 %v3152_v46  ;;  %v527_v63 = vmul.f32 %v3368_v57, %v3835_v25 }
  0xb4   : > { %v524_v62 = vsel %vm3848_vm4, %v523_v36, %v519_v58  ;;  %3375 = vrcp.f32 %v3875_v61  ;;  %v1186_v7 = vpop.f32.mrf.mxu3  ;;  %vm532_vm14 = vweird.f32 %v3368_v57  ;;  %vm1265_vm15 = vweird.f32 %v3860_v45 }
  0xb5   : > { %v617_v3 = vmul.f32 %v524_v62, %v3802_v56  ;;  %v1248_v4 = vmul.f32 %v3364_v43, %v1247_v59  ;;  %v528_v8 = vsub.f32 1.0, %v527_v63  ;;  %3377 = vrcp.f32 %v3868_v51  ;;  %v3894_v56 = vpop.eup %3369  ;;  %vm533_vm4 = vmor %vm531_vm10, %vm532_vm14  ;;  %v1486_v59 = vpop.f32.mrf.mxu1 }
  0xb6   : > { %3379 = vpow2.f32 %v3108_v55  ;;  %v3906_v21 = vadd.f32 %v3799_v53, %v1186_v7  ;;  %v455_v22 = vpop.f32.mrf.mxu0  ;;  %vm3910_vm3 = vcmp.eq.f32.partialorder %v1269_v6, 8.507059e+37  ;;  %v1272_v31 = vor.u32 1.1754944e-38, %v1271_v11 }
  0xb7   : > { %v782_v12 = vsel %vm3840_vm2, %v617_v3, 0.0  ;;  %v1249_v13 = vadd.f32 %v3364_v43, %v1248_v4  ;;  %v529_v18 = vmul.f32 %v3368_v57, %v528_v8  ;;  %v3924_v38 = vadd.f32 %v3799_v53, %v455_v22 }
  0xb8   : > { %v3372_v17 = vpop.eup %3371  ;;  %790 = vst.msk [vmem:[#allocation2 + $0x8] sm:$0xff] %vm5565_vm1, %v782_v12  ;;  %v3153_v36 = vmul.f32 -1.442695, %v3906_v21  ;;  %v552_v47 = vand.u32 2147483648, %v3875_v61  ;;  %vm3937_vm6 = vcmp.ne.s32.totalorder %v658_v41, 0  ;;  %vm546_vm9 = vweird.f32 %v3875_v61 }
  0xb9   : > { %v3374_v23 = vpop.eup %3373  ;;  %v1253_v24 = vsel %vm1252_vm13, %v3364_v43, %v1249_v13  ;;  %v1261_v28 = vmul.f32 %v3372_v17, %v3860_v45  ;;  %v530_v30 = vadd.f32 %v3368_v57, %v529_v18  ;;  %vm1266_vm5 = vweird.f32 %v3372_v17 }
  0xba   : > { %v1258_v16 = vsel %vm3864_vm7, %v1257_v44, %v1253_v24  ;;  %v3916_v32 = vadd.f32 1.0, %v3374_v23  ;;  %v3376_v33 = vpop.eup %3375  ;;  %v550_v44 = vand.u32 2147483647, %v3875_v61  ;;  %vm1267_vm8 = vmor %vm1265_vm15, %vm1266_vm5  ;;  %v665_v62 = vand.u32 7, %v3903_v19 }
  0xbb   : > { %v1351_v34 = vmul.f32 %v1258_v16, %v3806_v60  ;;  %v1262_v35 = vsub.f32 1.0, %v1261_v28  ;;  %v3926_v39 = vpop.eup %3377  ;;  %v534_v40 = vsel %vm533_vm4, %v3368_v57, %v530_v30  ;;  %v542_v43 = vmul.f32 %v3376_v33, %v3875_v61 }
  0xbc   : > { %3381 = vrcp.f32 %v3916_v32  ;;  %v3380_v60 = vpop.eup %3379  ;;  %v539_v25 = vsel %vm3888_vm12, %v538_v15, %v534_v40  ;;  %vm547_vm7 = vweird.f32 %v3376_v33  ;;  %v1284_v55 = vand.u32 2147483647, %v3916_v32 }
  0xbd   : > { %1384 = vst.msk [vmem:[#allocation2 + $0x50] sm:$0xff] %vm5565_vm1, %v1351_v34  ;;  %v1263_v46 = vmul.f32 %v3372_v17, %v1262_v35  ;;  %v618_v49 = vmul.f32 %v539_v25, %v3810_v0  ;;  %v543_v50 = vsub.f32 1.0, %v542_v43  ;;  %v3942_v52 = vadd.f32 1.0, %v3380_v60  ;;  %vm548_vm12 = vmor %vm546_vm9, %vm547_vm7  ;;  %v1189_v43 = vpop.f32.mrf.mxu3 }
  0xbe   : > { %3383 = vpow2.f32 %v3153_v36  ;;  %v3109_v57 = vmul.f32 -1.442695, %v3924_v38  ;;  %v1286_v41 = vand.u32 2147483648, %v3916_v32  ;;  %vm3954_vm10 = vcmp.eq.f32.partialorder %v550_v44, 8.507059e+37  ;;  %v3985_v16 = vpop.f32.mrf.mxu0 }
  0xbf   : > { %v1264_v54 = vadd.f32 %v3372_v17, %v1263_v46  ;;  %v783_v58 = vsel %vm3882_vm11, %v618_v49, 0.0  ;;  %v544_v26 = vmul.f32 %v3376_v33, %v543_v50  ;;  %3385 = vrcp.f32 %v3942_v52 }
  0xc0   : > { %791 = vst.msk [vmem:[#allocation2 + $0x10] sm:$0xff] %vm5565_vm1, %v783_v58  ;;  %v553_v4 = vor.u32 1.1754944e-38, %v552_v47  ;;  %3387 = vpow2.f32 %v3109_v57  ;;  %vm1280_vm13 = vweird.f32 %v3916_v32  ;;  %v3966_v61 = vadd.s32 40, %v3812_v1 }
  0xc1   : > { %v1268_v0 = vsel %vm1267_vm8, %v3372_v17, %v1264_v54  ;;  %v545_v3 = vadd.f32 %v3376_v33, %v544_v26  ;;  %vm3968_vm14 = vcmp.eq.f32.partialorder %v1284_v55, 8.507059e+37  ;;  %v1287_v11 = vor.u32 1.1754944e-38, %v1286_v41 }
  0xc2   : > { %v3382_v63 = vpop.eup %3381  ;;  %v1273_v45 = vsel %vm3910_vm3, %v1272_v31, %v1268_v0  ;;  %v1420_v12 = vmul.f32 %v3926_v39, %v3868_v51  ;;  %vm561_vm15 = vweird.f32 %v3942_v52  ;;  %v565_v17 = vand.u32 2147483647, %v3942_v52 }
  0xc3   : > { %v1352_v6 = vmul.f32 %v1273_v45, %v3821_v9  ;;  %v1276_v7 = vmul.f32 %v3382_v63, %v3916_v32  ;;  %v549_v8 = vsel %vm548_vm12, %v3376_v33, %v545_v3  ;;  %v567_v22 = vand.u32 2147483648, %v3942_v52  ;;  %v911_v45 = vpop.f32.mrf.mxu2 }
  0xc4   : > { %v3384_v13 = vpop.eup %3383  ;;  %v554_v9 = vsel %vm3954_vm10, %v553_v4, %v549_v8  ;;  %v1421_v24 = vsub.f32 1.0, %v1420_v12  ;;  %vm1281_vm3 = vweird.f32 %v3382_v63  ;;  %vm1424_vm4 = vweird.f32 %v3868_v51 }
  0xc5   : > { %1385 = vst.msk [vmem:[#allocation2 + $0x58] sm:$0xff] %vm5565_vm1, %v1352_v6  ;;  %v1277_v15 = vsub.f32 1.0, %v1276_v7  ;;  %v3386_v18 = vpop.eup %3385  ;;  %v619_v19 = vmul.f32 %v554_v9, %v3825_v14  ;;  %v3981_v23 = vadd.f32 1.0, %v3384_v13  ;;  %vm3989_vm5 = vcmp.ne.s32.totalorder %v665_v62, 0  ;;  %vm1282_vm8 = vmor %vm1280_vm13, %vm1281_vm3 }
  0xc6   : > { %v557_v29 = vmul.f32 %v3386_v18, %v3942_v52  ;;  %v3388_v30 = vpop.eup %3387  ;;  %v5586_v33 = vmov 0  ;;  %vm1425_vm7 = vweird.f32 %v3926_v39  ;;  %v1430_v14 = vand.u32 2147483648, %v3868_v51  ;;  %v461_v9 = vpop.f32.mrf.mxu0 }
  0xc7   : > { %v1278_v28 = vmul.f32 %v3382_v63, %v1277_v15  ;;  %v784_v31 = vsel %vm3937_vm6, %v619_v19, 0.0  ;;  %v5587_v33 = vsel %vm3989_vm5, 4294967295, %v5586_v33  ;;  %3389 = vrcp.f32 %v3981_v23  ;;  %vm4018_vm12 = vmor %vm1424_vm4, %vm1425_vm7 }
  0xc8   : > { %792 = vst.msk [vmem:[#allocation2 + $0x18] sm:$0xff] %vm5565_vm1, %v784_v31  ;;  %v558_v35 = vsub.f32 1.0, %v557_v29  ;;  %v3997_v36 = vadd.f32 1.0, %v3388_v30  ;;  %v1428_v40 = vand.u32 2147483647, %v3868_v51  ;;  %vm562_vm9 = vweird.f32 %v3386_v18 }
  0xc9   : > { %v1279_v34 = vadd.f32 %v3382_v63, %v1278_v28  ;;  %v1301_v44 = vand.u32 2147483648, %v3981_v23  ;;  %v672_v60 = vand.u32 7, %v3966_v61  ;;  %v1422_v25 = vmul.f32 %v3926_v39, %v1421_v24  ;;  %v1192_v28 = vpop.f32.mrf.mxu3 }
  0xca   : > { %v559_v47 = vmul.f32 %v3386_v18, %v558_v35  ;;  %v1299_v49 = vand.u32 2147483647, %v3981_v23  ;;  %3391 = vrcp.f32 %v3997_v36  ;;  %vm4010_vm10 = vcmp.eq.f32.partialorder %v565_v17, 8.507059e+37 }
  0xcb   : > { %v1283_v46 = vsel %vm1282_vm8, %v3382_v63, %v1279_v34  ;;  %v568_v32 = vor.u32 1.1754944e-38, %v567_v22  ;;  %v1431_v57 = vor.u32 1.1754944e-38, %v1430_v14  ;;  %v1423_v41 = vadd.f32 %v3926_v39, %v1422_v25  ;;  %v914_v54 = vpop.f32.mrf.mxu2 }
  0xcc   : > { %v1288_v50 = vsel %vm3968_vm14, %v1287_v11, %v1283_v46  ;;  %v560_v26 = vadd.f32 %v3386_v18, %v559_v47  ;;  %vm4024_vm13 = vcmp.eq.f32.partialorder %v1428_v40, 8.507059e+37  ;;  %vm563_vm14 = vmor %vm561_vm15, %vm562_vm9  ;;  %vm1295_vm3 = vweird.f32 %v3981_v23  ;;  %v1489_v47 = vpop.f32.mrf.mxu1 }
  0xcd   : > { %v1353_v58 = vmul.f32 %v1288_v50, %v3853_v37  ;;  %v3390_v62 = vpop.eup %3389  ;;  %v1302_v51 = vor.u32 1.1754944e-38, %v1301_v44  ;;  %v580_v63 = vand.u32 2147483647, %v3997_v36  ;;  %v4034_v37 = vadd.f32 1.0, %v3894_v56 }
  0xce   : > { %v564_v3 = vsel %vm563_vm14, %v3386_v18, %v560_v26  ;;  %v1291_v4 = vmul.f32 %v3390_v62, %v3981_v23  ;;  %vm4038_vm4 = vcmp.eq.f32.partialorder %v1299_v49, 8.507059e+37  ;;  %v1427_v52 = vsel %vm4018_vm12, %v3926_v39, %v1423_v41 }
  0xcf   : > { %1386 = vst.msk [vmem:[#allocation2 + $0x60] sm:$0xff] %vm5565_vm1, %v1353_v58  ;;  %v4046_v7 = vadd.f32 %v3799_v53, %v1189_v43  ;;  %v569_v56 = vsel %vm4010_vm10, %v568_v32, %v564_v3  ;;  %vm576_vm15 = vweird.f32 %v3997_v36  ;;  %v582_v61 = vand.u32 2147483648, %v3997_v36 }
  0xd0   : > { %v1432_v8 = vsel %vm4024_vm13, %v1431_v57, %v1427_v52  ;;  %3393 = vrcp.f32 %v4034_v37  ;;  %v3392_v10 = vpop.eup %3391  ;;  %v620_v11 = vmul.f32 %v569_v56, %v3857_v42  ;;  %v1292_v12 = vsub.f32 1.0, %v1291_v4 }
  0xd1   : > { %v1434_v39 = vmul.f32 %v1432_v8, %v3815_v2  ;;  %v637_v13 = vand.u32 7, %v3812_v1  ;;  %vm1296_vm7 = vweird.f32 %v3390_v62  ;;  %v572_v15 = vmul.f32 %v3392_v10, %v3997_v36 }
  0xd2   : > { %vm4059_vm8 = vcmp.eq.f32.partialorder %v580_v63, 8.507059e+37  ;;  %v975_v18 = vand.u32 2147483648, %v4034_v37  ;;  %v785_v19 = vsel %vm3989_vm5, %v620_v11, 0.0  ;;  %v1293_v22 = vmul.f32 %v3390_v62, %v1292_v12  ;;  %vm1297_vm13 = vmor %vm1295_vm3, %vm1296_vm7 }
  0xd3   : > { %vm4066_vm9 = vcmp.ne.s32.totalorder %v672_v60, 0  ;;  %v5598_v42 = vmov 0  ;;  %1435 = vst.msk [vmem:[#allocation2 + $0x88] sm:$0xff] %vm5565_vm1, %v1434_v39  ;;  %v3154_v2 = vmul.f32 -1.442695, %v4046_v7  ;;  %v4074_v24 = vadd.f32 %v3799_v53, %v3985_v16 }
  0xd4   : > { %v5599_v42 = vsel %vm4066_vm9, 4294967295, %v5598_v42  ;;  %793 = vst.msk [vmem:[#allocation2 + $0x20] sm:$0xff] %vm5565_vm1, %v785_v19  ;;  %v573_v29 = vsub.f32 1.0, %v572_v15  ;;  %vm577_vm10 = vweird.f32 %v3392_v10  ;;  %v583_v30 = vor.u32 1.1754944e-38, %v582_v61 }
  0xd5   : > { %vm969_vm12 = vweird.f32 %v4034_v37  ;;  %v1294_v31 = vadd.f32 %v3390_v62, %v1293_v22  ;;  %3395 = vpow2.f32 %v3154_v2  ;;  %v3110_v14 = vmul.f32 -1.442695, %v4074_v24  ;;  %vm578_vm3 = vmor %vm576_vm15, %vm577_vm10 }
  0xd6   : > { %v4080_v34 = vadd.f32 %v3799_v53, %v1486_v59  ;;  %v3394_v35 = vpop.eup %3393  ;;  %v574_v16 = vmul.f32 %v3392_v10, %v573_v29  ;;  %v973_v40 = vand.u32 2147483647, %v4034_v37  ;;  %v4087_v43 = vadd.f32 %v3799_v53, %v911_v45 }
  0xd7   : > { %v4090_v44 = vadd.f32 %v3799_v53, %v1192_v28  ;;  %v1298_v60 = vsel %vm1297_vm13, %v3390_v62, %v1294_v31  ;;  %v965_v25 = vmul.f32 %v3394_v35, %v4034_v37  ;;  %v976_v46 = vor.u32 1.1754944e-38, %v975_v18 }
  0xd8   : > { %3397 = vpow2.f32 %v3110_v14  ;;  %v1303_v49 = vsel %vm4038_vm4, %v1302_v51, %v1298_v60  ;;  %v575_v23 = vadd.f32 %v3392_v10, %v574_v16  ;;  %vm970_vm14 = vweird.f32 %v3394_v35  ;;  %v4114_v51 = vpop.f32.mrf.mxu0 }
  0xd9   : > { %v3178_v50 = vmul.f32 -1.442695, %v4080_v34  ;;  %v1354_v32 = vmul.f32 %v1303_v49, %v3906_v21  ;;  %v966_v55 = vsub.f32 1.0, %v965_v25  ;;  %v3125_v57 = vmul.f32 -1.442695, %v4087_v43  ;;  %vm4120_vm4 = vmor %vm969_vm12, %vm970_vm14 }
  0xda   : > { %v3155_v58 = vmul.f32 -1.442695, %v4090_v44  ;;  %v579_v26 = vsel %vm578_vm3, %v3392_v10, %v575_v23  ;;  %v4103_v41 = vadd.f32 %v3799_v53, %v461_v9  ;;  %v4106_v0 = vadd.f32 %v3799_v53, %v1489_v47 }
  0xdb   : > { %3399 = vpow2.f32 %v3178_v50  ;;  %v3396_v59 = vpop.eup %3395  ;;  %1387 = vst.msk [vmem:[#allocation2 + $0x68] sm:$0xff] %vm5565_vm1, %v1354_v32  ;;  %v584_v21 = vsel %vm4059_vm8, %v583_v30, %v579_v26  ;;  %v967_v36 = vmul.f32 %v3394_v35, %v966_v55  ;;  %v4112_v62 = vadd.f32 %v3799_v53, %v914_v54 }
  0xdc   : > { %3401 = vpow2.f32 %v3125_v57  ;;  %v621_v63 = vmul.f32 %v584_v21, %v3924_v38  ;;  %v4124_v3 = vadd.f32 1.0, %v3396_v59  ;;  %v3111_v4 = vmul.f32 -1.442695, %v4103_v41 }
  0xdd   : > { %3403 = vpow2.f32 %v3155_v58  ;;  %v968_v52 = vadd.f32 %v3394_v35, %v967_v36  ;;  %vm974_vm15 = vcmp.eq.f32.partialorder %v973_v40, 8.507059e+37  ;;  %v3179_v38 = vmul.f32 -1.442695, %v4106_v0 }
  0xde   : > { %v3398_v6 = vpop.eup %3397  ;;  %v786_v56 = vsel %vm4066_vm9, %v621_v63, 0.0  ;;  %3405 = vrcp.f32 %v4124_v3  ;;  %v3126_v8 = vmul.f32 -1.442695, %v4112_v62  ;;  %vm4139_vm7 = vcmp.ne.s32.totalorder %v637_v13, 0 }
  0xdf   : > { %794 = vst.msk [vmem:[#allocation2 + $0x28] sm:$0xff] %vm5565_vm1, %v786_v56  ;;  %v972_v37 = vsel %vm4120_vm4, %v3394_v35, %v968_v52  ;;  %v4134_v61 = vadd.f32 1.0, %v3398_v6  ;;  %v631_v39 = vadd.s32 48, %v3812_v1  ;;  %3407 = vpow2.f32 %v3111_v4 }
  0xe0   : > { %v977_v12 = vsel %vm974_vm15, %v976_v46, %v972_v37  ;;  %v1314_v17 = vand.u32 2147483647, %v4124_v3  ;;  %v4148_v18 = vadd.s32 56, %v3812_v1  ;;  %v1316_v13 = vand.u32 2147483648, %v4124_v3  ;;  %v1729_v30 = vpop.f32.mrf.mxu0 }
  0xe1   : > { %v3400_v10 = vpop.eup %3399  ;;  %v1084_v15 = vmul.f32 %v977_v12, %v3832_v20  ;;  %3409 = vrcp.f32 %v4134_v61  ;;  %v597_v20 = vand.u32 2147483648, %v4134_v61  ;;  %vm1310_vm8 = vweird.f32 %v4124_v3 }
  0xe2   : > { %v3402_v9 = vpop.eup %3401  ;;  %v4151_v22 = vadd.f32 1.0, %v3400_v10  ;;  %3411 = vpow2.f32 %v3179_v38  ;;  %v595_v14 = vand.u32 2147483647, %v4134_v61  ;;  %v679_v35 = vand.u32 7, %v631_v39 }
  0xe3   : > { %v3404_v19 = vpop.eup %3403  ;;  %v4153_v2 = vadd.f32 1.0, %v3402_v9  ;;  %v1108_v28 = vsel %vm4139_vm7, %v1084_v15, 0.0  ;;  %3413 = vpow2.f32 %v3126_v8  ;;  %vm4165_vm10 = vcmp.eq.f32.partialorder %v1314_v17, 8.507059e+37 }
  0xe4   : > { %v4158_v29 = vadd.f32 1.0, %v3404_v19  ;;  %v3406_v31 = vpop.eup %3405  ;;  %1116 = vst.msk [vmem:[#allocation3] sm:$0xff] %vm5565_vm1, %v1108_v28  ;;  %3415 = vrcp.f32 %v4151_v22  ;;  %v1551_v60 = vand.u32 2147483647, %v4151_v22  ;;  %v1553_v25 = vand.u32 2147483648, %v4151_v22 }
  0xe5   : > { %v1306_v16 = vmul.f32 %v3406_v31, %v4124_v3  ;;  %v686_v46 = vand.u32 7, %v4148_v18  ;;  %v3408_v47 = vpop.eup %3407  ;;  %v1317_v49 = vor.u32 1.1754944e-38, %v1316_v13  ;;  %3417 = vrcp.f32 %v4153_v2 }
  0xe6   : > { %v990_v23 = vand.u32 2147483648, %v4153_v2  ;;  %v598_v32 = vor.u32 1.1754944e-38, %v597_v20  ;;  %v988_v55 = vand.u32 2147483647, %v4153_v2  ;;  %3419 = vrcp.f32 %v4158_v29  ;;  %v4213_v20 = vpop.f32.mrf.mxu3 }
  0xe7   : > { %v3410_v50 = vpop.eup %3409  ;;  %v1307_v54 = vsub.f32 1.0, %v1306_v16  ;;  %vm1311_vm13 = vweird.f32 %v3406_v31  ;;  %vm4178_vm14 = vcmp.eq.f32.partialorder %v595_v14, 8.507059e+37  ;;  %vm4184_vm7 = vcmp.ne.s32.totalorder %v679_v35, 0  ;;  %v4222_v16 = vpop.f32.mrf.mxu1 }
  0xe8   : > { %v3412_v57 = vpop.eup %3411  ;;  %v587_v58 = vmul.f32 %v3410_v50, %v4134_v61  ;;  %vm592_vm15 = vweird.f32 %v3410_v50  ;;  %vm4188_vm0 = vcmp.eq.f32.partialorder %v1551_v60, 8.507059e+37  ;;  %v1554_v45 = vor.u32 1.1754944e-38, %v1553_v25  ;;  %vm1312_vm3 = vmor %vm1310_vm8, %vm1311_vm13 }
  0xe9   : > { %v3414_v59 = vpop.eup %3413  ;;  %v1308_v21 = vmul.f32 %v3406_v31, %v1307_v54  ;;  %v4192_v52 = vor.u32 1.1754944e-38, %v990_v23  ;;  %v1329_v56 = vand.u32 2147483647, %v4158_v29  ;;  %v4195_v38 = vadd.f32 1.0, %v3408_v47  ;;  %v4235_v54 = vpop.f32.mrf.mxu2 }
  0xea   : > { %v3416_v4 = vpop.eup %3415  ;;  %v588_v6 = vsub.f32 1.0, %v587_v58  ;;  %vm4198_vm4 = vcmp.eq.f32.partialorder %v988_v55, 8.507059e+37  ;;  %v1331_v11 = vand.u32 2147483648, %v4158_v29  ;;  %v4208_v9 = vadd.f32 1.0, %v3412_v57 }
  0xeb   : > { %v1309_v37 = vadd.f32 %v3406_v31, %v1308_v21  ;;  %v1543_v8 = vmul.f32 %v3416_v4, %v4151_v22  ;;  %v3418_v12 = vpop.eup %3417  ;;  %3421 = vrcp.f32 %v4195_v38  ;;  %v4210_v15 = vadd.f32 1.0, %v3414_v59 }
  0xec   : > { %v589_v39 = vmul.f32 %v3410_v50, %v588_v6  ;;  %v3420_v17 = vpop.eup %3419  ;;  %vm1548_vm12 = vweird.f32 %v3416_v4  ;;  %v980_v28 = vmul.f32 %v3418_v12, %v4153_v2  ;;  %vm4218_vm8 = vcmp.eq.f32.partialorder %v1329_v56, 8.507059e+37 }
  0xed   : > { %v1313_v19 = vsel %vm1312_vm3, %v3406_v31, %v1309_v37  ;;  %v1544_v13 = vsub.f32 1.0, %v1543_v8  ;;  %v1321_v14 = vmul.f32 %v3420_v17, %v4158_v29  ;;  %vm5616_vm13 = vweird.f32 %v4134_v61 }
  0xee   : > { %v1318_v30 = vsel %vm4165_vm10, %v1317_v49, %v1313_v19  ;;  %v590_v3 = vadd.f32 %v3410_v50, %v589_v39  ;;  %vm593_vm3 = vmor %vm5616_vm13, %vm592_vm15  ;;  %v981_v25 = vsub.f32 1.0, %v980_v28  ;;  %vm985_vm1 = vweird.f32 %v3418_v12 }
  0xef   : > { %v1355_v31 = vmul.f32 %v1318_v30, %v4046_v7  ;;  %v1545_v60 = vmul.f32 %v3416_v4, %v1544_v13  ;;  %vm5617_vm10 = vweird.f32 %v4151_v22  ;;  %v1322_v49 = vsub.f32 1.0, %v1321_v14  ;;  %v2025_v13 = vpop.f32.mrf.mxu3 }
  0xf0   : > { %v594_v40 = vsel %vm593_vm3, %v3410_v50, %v590_v3  ;;  %vm4230_vm9 = vmor %vm5617_vm10, %vm1548_vm12  ;;  %v1332_v23 = vor.u32 1.1754944e-38, %v1331_v11  ;;  %3423 = vrcp.f32 %v4208_v9  ;;  %vm5620_vm5 = vcmask 31744  }
  0xf1   : > { %1388 = vst.msk [vmem:[#allocation2 + $0x70] sm:$0xff] %vm5620_vm5, %v1355_v31  ;;  %v599_v7 = vsel %vm4178_vm14, %v598_v32, %v594_v40  ;;  %v1546_v61 = vadd.f32 %v3416_v4, %v1545_v60  ;;  %v982_v55 = vmul.f32 %v3418_v12, %v981_v25  ;;  %vm606_vm15 = vweird.f32 %v4195_v38  ;;  %v3422_v22 = vpop.eup %3421  ;;  %v920_v31 = vpop.f32.mrf.mxu2 }
  0xf2   : > { %v622_v50 = vmul.f32 %v599_v7, %v4074_v24  ;;  %vm5621_vm12 = vweird.f32 %v4153_v2  ;;  %v1323_v58 = vmul.f32 %v3420_v17, %v1322_v49  ;;  %vm1326_vm3 = vweird.f32 %v3420_v17 }
  0xf3   : > { %vm4244_vm13 = vmor %vm5621_vm12, %vm985_vm1  ;;  %v610_v59 = vand.u32 2147483647, %v4195_v38  ;;  %v1550_v32 = vsel %vm4230_vm9, %v3416_v4, %v1546_v61  ;;  %v983_v26 = vadd.f32 %v3418_v12, %v982_v55  ;;  %v602_v21 = vmul.f32 %v3422_v22, %v4195_v38 }
  0xf4   : > { %v612_v6 = vand.u32 2147483648, %v4195_v38  ;;  %v787_v24 = vsel %vm4184_vm7, %v622_v50, 0.0  ;;  %v1555_v2 = vsel %vm4188_vm0, %v1554_v45, %v1550_v32  ;;  %v1324_v56 = vadd.f32 %v3420_v17, %v1323_v58 }
  0xf5   : > { %vm607_vm1 = vweird.f32 %v3422_v22  ;;  %vm4259_vm5 = vcmp.ne.s32.totalorder %v686_v46, 0  ;;  %vm5626_vm9 = vcmask 31744   ;;  %v1662_v4 = vmul.f32 %v1555_v2, %v4080_v34 }
  0xf6   : > { %795 = vst.msk [vmem:[#allocation2 + $0x30] sm:$0xff] %vm5626_vm9, %v787_v24  ;;  %v987_v8 = vsel %vm4244_vm13, %v3418_v12, %v983_v26  ;;  %vm5627_vm14 = vweird.f32 %v4158_v29  ;;  %v603_v63 = vsub.f32 1.0, %v602_v21  ;;  %v1566_v45 = vand.u32 2147483647, %v4208_v9  ;;  %v3424_v11 = vpop.eup %3423  ;;  %vm5628_vm0 = vmmov %vm5626_vm9 }
  0xf7   : > { %vm1327_vm10 = vmor %vm5627_vm14, %vm1326_vm3  ;;  %v992_v18 = vsel %vm4198_vm4, %v4192_v52, %v987_v8  ;;  %v1568_v39 = vand.u32 2147483648, %v4208_v9  ;;  %3425 = vrcp.f32 %v4210_v15  ;;  %1671 = vst.msk [vmem:[#allocation3 + $0x40] sm:$0xff] %vm5628_vm0, %v1662_v4  ;;  %v1558_v19 = vmul.f32 %v3424_v11, %v4208_v9 }
  0xf8   : > { %v1328_v46 = vsel %vm1327_vm10, %v3420_v17, %v1324_v56  ;;  %v1085_v34 = vmul.f32 %v992_v18, %v4087_v43  ;;  %v604_v12 = vmul.f32 %v3422_v22, %v603_v63  ;;  %vm4281_vm12 = vcmp.eq.f32.partialorder %v610_v59, 8.507059e+37  ;;  %v1495_v17 = vpop.f32.mrf.mxu1  ;;  %vm5631_vm13 = vmmov %vm5628_vm0  ;;  %v1732_v18 = vpop.f32.mrf.mxu0 }
  0xf9   : > { %v1333_v29 = vsel %vm4218_vm8, %v1332_v23, %v1328_v46  ;;  %v613_v10 = vor.u32 1.1754944e-38, %v612_v6  ;;  %vm1562_vm4 = vweird.f32 %v4208_v9  ;;  %v1559_v3 = vsub.f32 1.0, %v1558_v19  ;;  %vm608_vm3 = vmor %vm606_vm15, %vm607_vm1  ;;  %v2028_v6 = vpop.f32.mrf.mxu3  ;;  %v923_v46 = vpop.f32.mrf.mxu2 }
  0xfa   : > { %v1356_v28 = vmul.f32 %v1333_v29, %v4090_v44  ;;  %v1109_v43 = vsel %vm3840_vm2, %v1085_v34, 0.0  ;;  %v605_v30 = vadd.f32 %v3422_v22, %v604_v12  ;;  %vm1563_vm8 = vweird.f32 %v3424_v11  ;;  %vm5634_vm2 = vmmov %vm5628_vm0  ;;  %v2662_v12 = vld [vmem:[%s5560_s5] sm:$0xf] }
  0xfb   : > { %1117 = vst.msk [vmem:[#allocation3 + $0x8] sm:$0xff] %vm5631_vm13, %v1109_v43  ;;  %vm4292_vm9 = vcmp.eq.f32.partialorder %v1566_v45, 8.507059e+37  ;;  %v1569_v14 = vor.u32 1.1754944e-38, %v1568_v39  ;;  %v4298_v35 = vadd.f32 %v3799_v53, %v4213_v20  ;;  %v4302_v27 = vadd.f32 %v3799_v53, %v4114_v51  ;;  %vm4315_vm1 = vmor %vm1562_vm4, %vm1563_vm8 }
  0xfc   : > { %1389 = vst.msk [vmem:[#allocation2 + $0x78] sm:$0xff] %vm5634_vm2, %v1356_v28  ;;  %v609_v60 = vsel %vm608_vm3, %v3422_v22, %v605_v30  ;;  %v1560_v25 = vmul.f32 %v3424_v11, %v1559_v3  ;;  %vm999_vm15 = vweird.f32 %v4210_v15  ;;  %v4308_v38 = vadd.f32 %v3799_v53, %v4222_v16  ;;  %vm5637_vm10 = vmmov %vm5628_vm0 }
  0xfd   : > { %v3426_v40 = vpop.eup %3425  ;;  %v614_v20 = vsel %vm4281_vm12, %v613_v10, %v609_v60  ;;  %v1003_v47 = vand.u32 2147483647, %v4210_v15  ;;  %v3156_v49 = vmul.f32 -1.442695, %v4298_v35  ;;  %v3114_v23 = vmul.f32 -1.442695, %v4302_v27  ;;  %vm5640_vm12 = vmmov %vm5634_vm2 }
  0xfe   : > { %v623_v16 = vmul.f32 %v614_v20, %v4103_v41  ;;  %v1561_v7 = vadd.f32 %v3424_v11, %v1560_v25  ;;  %v995_v61 = vmul.f32 %v3426_v40, %v4210_v15  ;;  %v1005_v55 = vand.u32 2147483648, %v4210_v15  ;;  %vm5642_vm13 = vmmov %vm5634_vm2 }
  0xff   : > { %vm1000_vm14 = vweird.f32 %v3426_v40  ;;  %3427 = vpow2.f32 %v3156_v49  ;;  %v3180_v9 = vmul.f32 -1.442695, %v4308_v38  ;;  %v4328_v22 = vadd.f32 %v3799_v53, %v4235_v54 }
 0x100   : > { %v788_v50 = vsel %vm4259_vm5, %v623_v16, 0.0  ;;  %v1565_v57 = vsel %vm4315_vm1, %v3424_v11, %v1561_v7  ;;  %v996_v41 = vsub.f32 1.0, %v995_v61  ;;  %3429 = vpow2.f32 %v3114_v23  ;;  %vm4348_vm0 = vmor %vm999_vm15, %vm1000_vm14 }
 0x101   : > { %796 = vst.msk [vmem:[#allocation2 + $0x38] sm:$0xff] %vm5637_vm10, %v788_v50  ;;  %v1570_v58 = vsel %vm4292_vm9, %v1569_v14, %v1565_v57  ;;  %3431 = vpow2.f32 %v3180_v9  ;;  %v3127_v59 = vmul.f32 -1.442695, %v4328_v22  ;;  %v4340_v26 = vadd.f32 %v3799_v53, %v2025_v13 }
 0x102   : > { %v1663_v32 = vmul.f32 %v1570_v58, %v4106_v0  ;;  %v997_v54 = vmul.f32 %v3426_v40, %v996_v41  ;;  %v4343_v21 = vadd.f32 %v3799_v53, %v1495_v17  ;;  %v1006_v2 = vor.u32 1.1754944e-38, %v1005_v55  ;;  %v1498_v0 = vpop.f32.mrf.mxu1  ;;  %v4383_v17 = vld [vmem:[%s5562_s7] ss:$0 sm:$0xff] }
 0x103   : > { %3433 = vpow2.f32 %v3127_v59  ;;  %v4353_v56 = vadd.f32 %v3799_v53, %v920_v31  ;;  %vm1004_vm4 = vcmp.eq.f32.partialorder %v1003_v47, 8.507059e+37  ;;  %v3232_v8 = vmul.f32 -1.442695, %v4340_v26 }
 0x104   : > { %1672 = vst.msk [vmem:[#allocation3 + $0x48] sm:$0xff] %vm5640_vm12, %v1663_v32  ;;  %v998_v4 = vadd.f32 %v3426_v40, %v997_v54  ;;  %v3181_v63 = vmul.f32 -1.442695, %v4343_v21  ;;  %v4359_v15 = vadd.s32 64, %v3812_v1  ;;  %v4362_v11 = vadd.f32 %v3799_v53, %v2028_v6 }
 0x105   : > { %v3428_v45 = vpop.eup %3427  ;;  %3435 = vpow2.f32 %v3232_v8  ;;  %v4372_v19 = vadd.f32 %v3799_v53, %v1498_v0  ;;  %vm5641_vm8 = vcmask 1043456   ;;  %v3128_v52 = vmul.f32 -1.442695, %v4353_v56 }
 0x106   : > { %v3430_v39 = vpop.eup %3429  ;;  %v1002_v34 = vsel %vm4348_vm0, %v3426_v40, %v998_v4  ;;  %v4366_v29 = vadd.f32 1.0, %v3428_v45  ;;  %3437 = vpow2.f32 %v3181_v63  ;;  %3283 = vmatpush.msk.msra.mxu1 %vm5641_vm8, %v2662_v12  ;;  %v4386_v53 = vadd.f32 %v4383_v17, %v1732_v18 }
 0x107   : > { %v3432_v1 = vpop.eup %3431  ;;  %v1007_v13 = vsel %vm1004_vm4, %v1006_v2, %v1002_v34  ;;  %v4374_v28 = vadd.f32 1.0, %v3430_v39  ;;  %v4389_v43 = vadd.f32 %v4383_v17, %v923_v46  ;;  %v846_v3 = vand.u32 7, %v4359_v15 }
 0x108   : > { %v1086_v10 = vmul.f32 %v1007_v13, %v4112_v62  ;;  %3439 = vrcp.f32 %v4366_v29  ;;  %v4394_v62 = vmul.f32 -1.442695, %v4362_v11  ;;  %v1344_v14 = vand.u32 2147483647, %v4366_v29 }
 0x109   : > { %v3434_v30 = vpop.eup %3433  ;;  %3441 = vrcp.f32 %v4374_v28  ;;  %v4399_v31 = vadd.f32 1.0, %v3432_v1  ;;  %v4402_v60 = vmul.f32 -1.442695, %v4372_v19  ;;  %v1346_v25 = vand.u32 2147483648, %v4366_v29 }
 0x10a   : > { %v1110_v44 = vsel %vm3882_vm11, %v1086_v10, 0.0  ;;  %v836_v40 = vand.u32 2147483648, %v4374_v28  ;;  %v4407_v20 = vadd.f32 1.0, %v3434_v30  ;;  %3443 = vpow2.f32 %v3128_v52 }
 0x10b   : > { %1118 = vst.msk [vmem:[#allocation3 + $0x10] sm:$0xff] %vm5642_vm13, %v1110_v44  ;;  %v3436_v51 = vpop.eup %3435  ;;  %v834_v5 = vand.u32 2147483647, %v4374_v28  ;;  %3445 = vrcp.f32 %v4399_v31  ;;  %v4412_v47 = vmul.f32 -1.442695, %v4386_v53  ;;  %vm1340_vm11 = vweird.f32 %v4366_v29 }
 0x10c   : > { %v4415_v49 = vmul.f32 -1.442695, %v4389_v43  ;;  %v3438_v23 = vpop.eup %3437  ;;  %v1581_v16 = vand.u32 2147483647, %v4399_v31  ;;  %v1583_v7 = vand.u32 2147483648, %v4399_v31  ;;  %3447 = vrcp.f32 %v4407_v20 }
 0x10d   : > { %vm830_vm3 = vweird.f32 %v4374_v28  ;;  %v1018_v55 = vand.u32 2147483647, %v4407_v20  ;;  %v1020_v9 = vand.u32 2147483648, %v4407_v20  ;;  %v4424_v50 = vadd.f32 1.0, %v3436_v51 }
 0x10e   : > { %v3440_v61 = vpop.eup %3439  ;;  %v4426_v57 = vadd.f32 1.0, %v3438_v23  ;;  %vm4429_vm9 = vcmp.eq.f32.partialorder %v1344_v14, 8.507059e+37  ;;  %v1347_v32 = vor.u32 1.1754944e-38, %v1346_v25  ;;  %v837_v54 = vor.u32 1.1754944e-38, %v836_v40 }
 0x10f   : > { %v3442_v41 = vpop.eup %3441  ;;  %v1336_v58 = vmul.f32 %v3440_v61, %v4366_v29  ;;  %vm4434_vm2 = vcmp.eq.f32.partialorder %v834_v5, 8.507059e+37  ;;  %3449 = vrcp.f32 %v4424_v50  ;;  %vm1341_vm14 = vweird.f32 %v3440_v61 }
 0x110   : > { %v826_v6 = vmul.f32 %v3442_v41, %v4374_v28  ;;  %v3444_v2 = vpop.eup %3443  ;;  %vm4441_vm10 = vcmp.ne.s32.totalorder %v846_v3, 0  ;;  %vm4445_vm0 = vcmp.eq.f32.partialorder %v1581_v16, 8.507059e+37  ;;  %v1584_v63 = vor.u32 1.1754944e-38, %v1583_v7  ;;  %vm1342_vm15 = vmor %vm1340_vm11, %vm1341_vm14 }
 0x111   : > { %v1337_v0 = vsub.f32 1.0, %v1336_v58  ;;  %v3446_v45 = vpop.eup %3445  ;;  %vm831_vm12 = vweird.f32 %v3442_v41  ;;  %vm4449_vm4 = vcmp.eq.f32.partialorder %v1018_v55, 8.507059e+37  ;;  %v1021_v46 = vor.u32 1.1754944e-38, %v1020_v9 }
 0x112   : > { %v827_v15 = vsub.f32 1.0, %v826_v6  ;;  %3451 = vrcp.f32 %v4426_v57  ;;  %v3448_v39 = vpop.eup %3447  ;;  %v1573_v12 = vmul.f32 %v3446_v45, %v4399_v31  ;;  %v2090_v1 = vand.u32 2147483647, %v4424_v50  ;;  %vm832_vm13 = vmor %vm830_vm3, %vm831_vm12 }
 0x113   : > { %v1338_v34 = vmul.f32 %v3440_v61, %v1337_v0  ;;  %v1010_v52 = vmul.f32 %v3448_v39, %v4407_v20  ;;  %v2092_v10 = vand.u32 2147483648, %v4424_v50  ;;  %vm1578_vm1 = vweird.f32 %v3446_v45 }
 0x114   : > { %v828_v13 = vmul.f32 %v3442_v41, %v827_v15  ;;  %v1574_v3 = vsub.f32 1.0, %v1573_v12  ;;  %v1596_v44 = vand.u32 2147483647, %v4426_v57  ;;  %vm1015_vm8 = vweird.f32 %v3448_v39 }
 0x115   : > { %v1339_v30 = vadd.f32 %v3440_v61, %v1338_v34  ;;  %v3450_v14 = vpop.eup %3449  ;;  %v1011_v40 = vsub.f32 1.0, %v1010_v52  ;;  %3453 = vpow2.f32 %v4394_v62  ;;  %v4469_v16 = vadd.f32 1.0, %v3444_v2  ;;  %v2031_v34 = vpop.f32.mrf.mxu3 }
 0x116   : > { %v829_v25 = vadd.f32 %v3442_v41, %v828_v13  ;;  %v1575_v5 = vmul.f32 %v3446_v45, %v1574_v3  ;;  %v2082_v23 = vmul.f32 %v3450_v14, %v4424_v50  ;;  %vm5653_vm11 = vweird.f32 %v4399_v31  ;;  %v1501_v52 = vpop.f32.mrf.mxu1 }
 0x117   : > { %v1343_v51 = vsel %vm1342_vm15, %v3440_v61, %v1339_v30  ;;  %vm4476_vm14 = vmor %vm5653_vm11, %vm1578_vm1  ;;  %v1012_v61 = vmul.f32 %v3448_v39, %v1011_v40  ;;  %v1598_v28 = vand.u32 2147483648, %v4426_v57  ;;  %vm5656_vm3 = vweird.f32 %v4407_v20 }
 0x118   : > { %v3452_v7 = vpop.eup %3451  ;;  %v1348_v29 = vsel %vm4429_vm9, %v1347_v32, %v1343_v51  ;;  %v833_v55 = vsel %vm832_vm13, %v3442_v41, %v829_v25  ;;  %v1576_v6 = vadd.f32 %v3446_v45, %v1575_v5  ;;  %vm4487_vm9 = vmor %vm5656_vm3, %vm1015_vm8  ;;  %v2083_v31 = vsub.f32 1.0, %v2082_v23 }
 0x119   : > { %v1357_v9 = vmul.f32 %v1348_v29, %v4298_v35  ;;  %v838_v58 = vsel %vm4434_vm2, %v837_v54, %v833_v55  ;;  %v1013_v32 = vadd.f32 %v3448_v39, %v1012_v61  ;;  %vm2087_vm15 = vweird.f32 %v3450_v14 }
 0x11a   : > { %v840_v59 = vmul.f32 %v838_v58, %v4302_v27  ;;  %v1588_v2 = vmul.f32 %v3452_v7, %v4426_v57  ;;  %vm5659_vm1 = vcmask 31744   ;;  %v1580_v35 = vsel %vm4476_vm14, %v3446_v45, %v1576_v6 }
 0x11b   : > { %1390 = vst.msk [vmem:[#allocation2 + $0x80] sm:$0xff] %vm5659_vm1, %v1357_v9  ;;  %v2084_v54 = vmul.f32 %v3450_v14, %v2083_v31  ;;  %vm1593_vm2 = vweird.f32 %v3452_v7  ;;  %3455 = vrcp.f32 %v4469_v16  ;;  %v3454_v20 = vpop.eup %3453  ;;  %v1585_v27 = vsel %vm4445_vm0, %v1584_v63, %v1580_v35  ;;  %vm5660_vm12 = vmmov %vm5659_vm1 }
 0x11c   : > { %v857_v24 = vsel %vm4441_vm10, %v840_v59, 0.0  ;;  %v1017_v0 = vsel %vm4487_vm9, %v3448_v39, %v1013_v32  ;;  %v1589_v15 = vsub.f32 1.0, %v1588_v2  ;;  %v1664_v45 = vmul.f32 %v1585_v27, %v4308_v38  ;;  %vm5662_vm13 = vmmov %vm5659_vm1 }
 0x11d   : > { %858 = vst.msk [vmem:[#allocation2 + $0x40] sm:$0xff] %vm5660_vm12, %v857_v24  ;;  %v1022_v12 = vsel %vm4449_vm4, %v1021_v46, %v1017_v0  ;;  %v2085_v13 = vadd.f32 %v3450_v14, %v2084_v54  ;;  %vm2091_vm8 = vcmp.eq.f32.partialorder %v2090_v1, 8.507059e+37  ;;  %vm5661_vm10 = vweird.f32 %v4424_v50  ;;  %vm5666_vm3 = vmmov %vm5659_vm1  ;;  %v2034_v9 = vpop.f32.mrf.mxu3 }
 0x11e   : > { %v1087_v4 = vmul.f32 %v1022_v12, %v4328_v22  ;;  %vm2088_vm0 = vmor %vm5661_vm10, %vm2087_vm15  ;;  %v2093_v8 = vor.u32 1.1754944e-38, %v2092_v10  ;;  %v1590_v63 = vmul.f32 %v3452_v7, %v1589_v15  ;;  %v4511_v39 = vadd.f32 1.0, %v3454_v20  ;;  %1673 = vst.msk [vmem:[#allocation3 + $0x50] sm:$0xff] %vm5662_vm13, %v1664_v45  ;;  %v1735_v10 = vpop.f32.mrf.mxu0 }
 0x11f   : > { %v2089_v30 = vsel %vm2088_vm0, %v3450_v14, %v2085_v13  ;;  %vm5663_vm11 = vweird.f32 %v4426_v57  ;;  %v1599_v22 = vor.u32 1.1754944e-38, %v1598_v28  ;;  %3457 = vpow2.f32 %v4402_v60  ;;  %v926_v28 = vpop.f32.mrf.mxu2 }
 0x120   : > { %vm4517_vm4 = vmor %vm5663_vm11, %vm1593_vm2  ;;  %v4523_v50 = vadd.f32 %v4383_v17, %v2031_v34  ;;  %v1111_v18 = vsel %vm3937_vm6, %v1087_v4, 0.0  ;;  %v2094_v46 = vsel %vm2091_vm8, %v2093_v8, %v2089_v30  ;;  %v1591_v1 = vadd.f32 %v3452_v7, %v1590_v63 }
 0x121   : > { %vm1597_vm14 = vcmp.eq.f32.partialorder %v1596_v44, 8.507059e+37  ;;  %v3456_v3 = vpop.eup %3455  ;;  %1119 = vst.msk [vmem:[#allocation3 + $0x18] sm:$0xff] %vm5666_vm3, %v1111_v18  ;;  %v2201_v57 = vmul.f32 %v2094_v46, %v4340_v26  ;;  %vm1029_vm9 = vweird.f32 %v4469_v16  ;;  %v1033_v14 = vand.u32 2147483647, %v4469_v16  ;;  %vm5667_vm6 = vmmov %vm5659_vm1 }
 0x122   : > { %3459 = vrcp.f32 %v4511_v39  ;;  %v1595_v60 = vsel %vm4517_vm4, %v3452_v7, %v1591_v1  ;;  %v1025_v48 = vmul.f32 %v3456_v3, %v4469_v16  ;;  %v1035_v25 = vand.u32 2147483648, %v4469_v16  ;;  %v1504_v16 = vpop.f32.mrf.mxu1 }
 0x123   : > { %v2105_v44 = vand.u32 2147483647, %v4511_v39  ;;  %2210 = vst.msk [vmem:[#allocation3 + $0x80] sm:$0xff] %vm5667_vm6, %v2201_v57  ;;  %v1600_v40 = vsel %vm1597_vm14, %v1599_v22, %v1595_v60  ;;  %vm1030_vm15 = vweird.f32 %v3456_v3  ;;  %3461 = vpow2.f32 %v4412_v47  ;;  %vm5677_vm14 = vmmov %vm5659_vm1 }
 0x124   : > { %v3234_v26 = vmul.f32 -1.442695, %v4523_v50  ;;  %v1665_v51 = vmul.f32 %v1600_v40, %v4343_v21  ;;  %v1026_v5 = vsub.f32 1.0, %v1025_v48  ;;  %v2107_v23 = vand.u32 2147483648, %v4511_v39  ;;  %vm4559_vm12 = vmor %vm1029_vm9, %vm1030_vm15 }
 0x125   : > { %3463 = vpow2.f32 %v4415_v49  ;;  %v3458_v7 = vpop.eup %3457  ;;  %v4544_v29 = vadd.f32 %v4383_v17, %v1501_v52  ;;  %v4547_v55 = vadd.f32 %v4383_v17, %v1735_v10  ;;  %vm4550_vm2 = vcmp.eq.f32.partialorder %v1033_v14, 8.507059e+37 }
 0x126   : > { %1674 = vst.msk [vmem:[#allocation3 + $0x58] sm:$0xff] %vm5659_vm1, %v1665_v51  ;;  %v1027_v62 = vmul.f32 %v3456_v3, %v1026_v5  ;;  %v1036_v21 = vor.u32 1.1754944e-38, %v1035_v25  ;;  %v4554_v61 = vadd.f32 1.0, %v3458_v7  ;;  %vm2101_vm8 = vweird.f32 %v4511_v39  ;;  %v1738_v45 = vpop.f32.mrf.mxu0 }
 0x127   : > { %3465 = vpow2.f32 %v3234_v26  ;;  %v3183_v6 = vmul.f32 -1.442695, %v4544_v29  ;;  %v3205_v41 = vmul.f32 -1.442695, %v4547_v55  ;;  %vm4567_vm10 = vcmp.eq.f32.partialorder %v2105_v44, 8.507059e+37 }
 0x128   : > { %v3460_v49 = vpop.eup %3459  ;;  %v1028_v31 = vadd.f32 %v3456_v3, %v1027_v62  ;;  %v2108_v2 = vor.u32 1.1754944e-38, %v2107_v23  ;;  %3467 = vrcp.f32 %v4554_v61  ;;  %v1611_v54 = vand.u32 2147483647, %v4554_v61 }
 0x129   : > { %v2097_v59 = vmul.f32 %v3460_v49, %v4511_v39  ;;  %v3462_v35 = vpop.eup %3461  ;;  %3469 = vpow2.f32 %v3183_v6  ;;  %v4574_v20 = vadd.f32 %v4383_v17, %v926_v28  ;;  %v4577_v24 = vadd.f32 %v4383_v17, %v2034_v9 }
 0x12a   : > { %v1032_v0 = vsel %vm4559_vm12, %v3456_v3, %v1028_v31  ;;  %v4581_v34 = vadd.f32 1.0, %v3462_v35  ;;  %3471 = vpow2.f32 %v3205_v41  ;;  %v1613_v13 = vand.u32 2147483648, %v4554_v61  ;;  %vm5682_vm12 = vmmov %vm5677_vm14 }
 0x12b   : > { %v3464_v27 = vpop.eup %3463  ;;  %v2098_v15 = vsub.f32 1.0, %v2097_v59  ;;  %v1037_v12 = vsel %vm4550_vm2, %v1036_v21, %v1032_v0  ;;  %v4589_v8 = vadd.f32 %v4383_v17, %v1504_v16  ;;  %vm2102_vm0 = vweird.f32 %v3460_v49 }
 0x12c   : > { %v4586_v4 = vadd.f32 1.0, %v3464_v27  ;;  %v1088_v63 = vmul.f32 %v1037_v12, %v4353_v56  ;;  %3473 = vrcp.f32 %v4581_v34  ;;  %vm1607_vm13 = vweird.f32 %v4554_v61  ;;  %vm2103_vm3 = vmor %vm2101_vm8, %vm2102_vm0 }
 0x12d   : > { %v2099_v52 = vmul.f32 %v3460_v49, %v2098_v15  ;;  %v3466_v30 = vpop.eup %3465  ;;  %v4596_v38 = vmul.f32 -1.442695, %v4574_v20  ;;  %v4599_v22 = vadd.f32 %v4383_v17, %v1738_v45  ;;  %vm5674_vm11 = vnez %v5587_v33 }
 0x12e   : > { %3475 = vrcp.f32 %v4586_v4  ;;  %v3468_v18 = vpop.eup %3467  ;;  %v1112_v46 = vsel %vm5674_vm11, %v1088_v63, 0.0  ;;  %vm4603_vm4 = vcmp.eq.f32.partialorder %v1611_v54, 8.507059e+37  ;;  %v1811_v10 = vand.u32 2147483648, %v4581_v34 }
 0x12f   : > { %v2100_v56 = vadd.f32 %v3460_v49, %v2099_v52  ;;  %v3470_v3 = vpop.eup %3469  ;;  %1120 = vst.msk [vmem:[#allocation3 + $0x20] sm:$0xff] %vm5677_vm14, %v1112_v46  ;;  %v1603_v57 = vmul.f32 %v3468_v18, %v4554_v61  ;;  %v1614_v14 = vor.u32 1.1754944e-38, %v1613_v13  ;;  %v1809_v60 = vand.u32 2147483647, %v4581_v34 }
 0x130   : > { %v1048_v33 = vand.u32 2147483647, %v4586_v4  ;;  %v3472_v48 = vpop.eup %3471  ;;  %vm1044_vm9 = vweird.f32 %v4586_v4  ;;  %v1050_v44 = vand.u32 2147483648, %v4586_v4  ;;  %v4616_v40 = vadd.f32 1.0, %v3466_v30 }
 0x131   : > { %v2104_v25 = vsel %vm2103_vm3, %v3460_v49, %v2100_v56  ;;  %v1604_v39 = vsub.f32 1.0, %v1603_v57  ;;  %vm1608_vm6 = vweird.f32 %v3468_v18  ;;  %vm1805_vm15 = vweird.f32 %v4581_v34 }
 0x132   : > { %v2109_v26 = vsel %vm4567_vm10, %v2108_v2, %v2104_v25  ;;  %v4621_v51 = vadd.f32 1.0, %v3470_v3  ;;  %v3474_v5 = vpop.eup %3473  ;;  %v1812_v7 = vor.u32 1.1754944e-38, %v1811_v10  ;;  %3477 = vrcp.f32 %v4616_v40  ;;  %vm4641_vm8 = vmor %vm1607_vm13, %vm1608_vm6 }
 0x133   : > { %v2202_v23 = vmul.f32 %v2109_v26, %v4362_v11  ;;  %v4625_v62 = vadd.f32 1.0, %v3472_v48  ;;  %v1605_v21 = vmul.f32 %v3468_v18, %v1604_v39  ;;  %v1801_v28 = vmul.f32 %v3474_v5, %v4581_v34  ;;  %v929_v26 = vpop.f32.mrf.mxu2  ;;  %v2037_v39 = vpop.f32.mrf.mxu3 }
 0x134   : > { %v3476_v47 = vpop.eup %3475  ;;  %vm4628_vm1 = vcmp.eq.f32.partialorder %v1809_v60, 8.507059e+37  ;;  %vm4632_vm2 = vcmp.eq.f32.partialorder %v1048_v33, 8.507059e+37  ;;  %v2122_v58 = vand.u32 2147483648, %v4616_v40  ;;  %v1051_v41 = vor.u32 1.1754944e-38, %v1050_v44 }
 0x135   : > { %2211 = vst.msk [vmem:[#allocation3 + $0x88] sm:$0xff] %vm5682_vm12, %v2202_v23  ;;  %v1040_v6 = vmul.f32 %v3476_v47, %v4586_v4  ;;  %vm2116_vm10 = vweird.f32 %v4616_v40  ;;  %3479 = vrcp.f32 %v4621_v51  ;;  %v1606_v31 = vadd.f32 %v3468_v18, %v1605_v21 }
 0x136   : > { %v1802_v59 = vsub.f32 1.0, %v1801_v28  ;;  %vm1045_vm0 = vweird.f32 %v3476_v47  ;;  %v2120_v32 = vand.u32 2147483647, %v4616_v40  ;;  %v1626_v16 = vand.u32 2147483647, %v4621_v51 }
 0x137   : > { %v1041_v2 = vsub.f32 1.0, %v1040_v6  ;;  %v1628_v61 = vand.u32 2147483648, %v4621_v51  ;;  %3481 = vrcp.f32 %v4625_v62  ;;  %v1610_v35 = vsel %vm4641_vm8, %v3468_v18, %v1606_v31  ;;  %vm4662_vm14 = vmor %vm1044_vm9, %vm1045_vm0 }
 0x138   : > { %v1803_v54 = vmul.f32 %v3474_v5, %v1802_v59  ;;  %vm1806_vm13 = vweird.f32 %v3474_v5  ;;  %v2123_v27 = vor.u32 1.1754944e-38, %v2122_v58  ;;  %v3478_v0 = vpop.eup %3477  ;;  %v1615_v15 = vsel %vm4603_vm4, %v1614_v14, %v1610_v35 }
 0x139   : > { %v1042_v45 = vmul.f32 %v3476_v47, %v1041_v2  ;;  %vm1622_vm11 = vweird.f32 %v4621_v51  ;;  %v1824_v12 = vand.u32 2147483647, %v4625_v62  ;;  %v1666_v13 = vmul.f32 %v1615_v15, %v4372_v19  ;;  %vm1807_vm6 = vmor %vm1805_vm15, %vm1806_vm13 }
 0x13a   : > { %v1804_v63 = vadd.f32 %v3474_v5, %v1803_v54  ;;  %v2112_v30 = vmul.f32 %v3478_v0, %v4616_v40  ;;  %vm4667_vm3 = vcmp.eq.f32.partialorder %v2120_v32, 8.507059e+37  ;;  %vm4671_vm4 = vcmp.eq.f32.partialorder %v1626_v16, 8.507059e+37  ;;  %v1507_v16 = vpop.f32.mrf.mxu1 }
 0x13b   : > { %v3480_v56 = vpop.eup %3479  ;;  %v1043_v19 = vadd.f32 %v3476_v47, %v1042_v45  ;;  %vm2117_vm12 = vweird.f32 %v3478_v0  ;;  %v1629_v4 = vor.u32 1.1754944e-38, %v1628_v61  ;;  %3483 = vpow2.f32 %v4596_v38 }
 0x13c   : > { %vm5691_vm9 = vcmask 31744   ;;  %v1808_v1 = vsel %vm1807_vm6, %v3474_v5, %v1804_v63  ;;  %v2113_v10 = vsub.f32 1.0, %v2112_v30  ;;  %v1618_v3 = vmul.f32 %v3480_v56, %v4621_v51  ;;  %vm4695_vm0 = vmor %vm2116_vm10, %vm2117_vm12 }
 0x13d   : > { %1675 = vst.msk [vmem:[#allocation3 + $0x60] sm:$0xff] %vm5691_vm9, %v1666_v13  ;;  %v1826_v57 = vand.u32 2147483648, %v4625_v62  ;;  %v3482_v14 = vpop.eup %3481  ;;  %v1813_v60 = vsel %vm4628_vm1, %v1812_v7, %v1808_v1  ;;  %v1047_v34 = vsel %vm4662_vm14, %v3476_v47, %v1043_v19  ;;  %vm1623_vm15 = vweird.f32 %v3480_v56  ;;  %vm5692_vm8 = vmmov %vm5691_vm9 }
 0x13e   : > { %v3235_v33 = vmul.f32 -1.442695, %v4577_v24  ;;  %v1906_v38 = vmul.f32 %v1813_v60, %v4386_v53  ;;  %v1052_v48 = vsel %vm4632_vm2, %v1051_v41, %v1047_v34  ;;  %v2114_v25 = vmul.f32 %v3478_v0, %v2113_v10  ;;  %vm4706_vm13 = vmor %vm1622_vm11, %vm1623_vm15  ;;  %v1741_v10 = vpop.f32.mrf.mxu0 }
 0x13f   : > { %v1619_v44 = vsub.f32 1.0, %v1618_v3  ;;  %v1089_v5 = vmul.f32 %v1052_v48, %v4389_v43  ;;  %v1816_v23 = vmul.f32 %v3482_v14, %v4625_v62  ;;  %vm1821_vm1 = vweird.f32 %v3482_v14  ;;  %vm5698_vm10 = vmmov %vm5692_vm8  ;;  %v4758_v3 = vpop.f32.mrf.mxu3 }
 0x140   : > { %3485 = vpow2.f32 %v3235_v33  ;;  %1923 = vst.msk [vmem:[#allocation2 + $0x98] sm:$0xff] %vm5692_vm8, %v1906_v38  ;;  %v2115_v7 = vadd.f32 %v3478_v0, %v2114_v25  ;;  %v3184_v21 = vmul.f32 -1.442695, %v4589_v8  ;;  %v3206_v28 = vmul.f32 -1.442695, %v4599_v22  ;;  %vm5699_vm14 = vmmov %vm5692_vm8 }
 0x141   : > { %v1620_v47 = vmul.f32 %v3480_v56, %v1619_v44  ;;  %v3484_v43 = vpop.eup %3483  ;;  %vm5695_vm2 = vnez %v5599_v42  ;;  %v1817_v40 = vsub.f32 1.0, %v1816_v23  ;;  %v4711_v58 = vadd.f32 %v4383_v17, %v929_v26 }
 0x142   : > { %v1113_v9 = vsel %vm5695_vm2, %v1089_v5, 0.0  ;;  %v4714_v11 = vadd.f32 %v4383_v17, %v2037_v39  ;;  %v2119_v42 = vsel %vm4695_vm0, %v3478_v0, %v2115_v7  ;;  %v4719_v41 = vadd.f32 1.0, %v3484_v43 }
 0x143   : > { %1121 = vst.msk [vmem:[#allocation3 + $0x28] sm:$0xff] %vm5698_vm10, %v1113_v9  ;;  %v1621_v6 = vadd.f32 %v3480_v56, %v1620_v47  ;;  %3487 = vpow2.f32 %v3184_v21  ;;  %v2124_v51 = vsel %vm4667_vm3, %v2123_v27, %v2119_v42  ;;  %v1818_v31 = vmul.f32 %v3482_v14, %v1817_v40  ;;  %v2663_v21 = vld [vmem:[%s5561_s6] sm:$0xf] }
 0x144   : > { %3489 = vpow2.f32 %v3206_v28  ;;  %v3131_v59 = vmul.f32 -1.442695, %v4711_v58  ;;  %v2203_v32 = vmul.f32 %v2124_v51, %v4523_v50  ;;  %vm1820_vm11 = vweird.f32 %v4625_v62 }
 0x145   : > { %v1625_v2 = vsel %vm4706_vm13, %v3480_v56, %v1621_v6  ;;  %3491 = vrcp.f32 %v4719_v41  ;;  %v1819_v54 = vadd.f32 %v3482_v14, %v1818_v31  ;;  %v1827_v27 = vor.u32 1.1754944e-38, %v1826_v57  ;;  %vm1822_vm3 = vmor %vm1820_vm11, %vm1821_vm1 }
 0x146   : > { %v3486_v61 = vpop.eup %3485  ;;  %v1630_v35 = vsel %vm4671_vm4, %v1629_v4, %v1625_v2  ;;  %2212 = vst.msk [vmem:[#allocation3 + $0x90] sm:$0xff] %vm5699_vm14, %v2203_v32  ;;  %3493 = vpow2.f32 %v3131_v59  ;;  %v3236_v15 = vmul.f32 -1.442695, %v4714_v11  ;;  %vm1825_vm6 = vcmp.eq.f32.partialorder %v1824_v12, 8.507059e+37  ;;  %vm5700_vm4 = vmmov %vm5692_vm8 }
 0x147   : > { %v1667_v0 = vmul.f32 %v1630_v35, %v4544_v29  ;;  %v4734_v50 = vadd.f32 1.0, %v3486_v61  ;;  %v1823_v45 = vsel %vm1822_vm3, %v3482_v14, %v1819_v54  ;;  %v4740_v13 = vadd.f32 %v4383_v17, %v1507_v16  ;;  %vm5701_vm9 = vmmov %vm5700_vm4 }
 0x148   : > { %v1828_v52 = vsel %vm1825_vm6, %v1827_v27, %v1823_v45  ;;  %v1063_v29 = vand.u32 2147483647, %v4719_v41  ;;  %v1065_v46 = vand.u32 2147483648, %v4719_v41  ;;  %vm1059_vm12 = vweird.f32 %v4719_v41 }
 0x149   : > { %v3488_v63 = vpop.eup %3487  ;;  %1676 = vst.msk [vmem:[#allocation3 + $0x68] sm:$0xff] %vm5700_vm4, %v1667_v0  ;;  %3495 = vrcp.f32 %v4734_v50  ;;  %v1907_v18 = vmul.f32 %v1828_v52, %v4547_v55  ;;  %v3185_v19 = vmul.f32 -1.442695, %v4740_v13  ;;  %v2135_v1 = vand.u32 2147483647, %v4734_v50 }
 0x14a   : > { %v3490_v30 = vpop.eup %3489  ;;  %v4747_v56 = vadd.f32 1.0, %v3488_v63  ;;  %3497 = vpow2.f32 %v3236_v15  ;;  %v2137_v55 = vand.u32 2147483648, %v4734_v50  ;;  %vm4760_vm15 = vcmp.eq.f32.partialorder %v1063_v29, 8.507059e+37  ;;  %v1744_v29 = vpop.f32.mrf.mxu0 }
 0x14b   : > { %v3492_v62 = vpop.eup %3491  ;;  %v4750_v12 = vadd.f32 1.0, %v3490_v30  ;;  %1924 = vst.msk [vmem:[#allocation2 + $0xa0] sm:$0xff] %vm5701_vm9, %v1907_v18  ;;  %v1066_v38 = vor.u32 1.1754944e-38, %v1065_v46  ;;  %vm2131_vm8 = vweird.f32 %v4734_v50  ;;  %v4772_v26 = vadd.f32 %v4383_v17, %v1741_v10  ;;  %v2043_v30 = vpop.f32.mrf.mxu3 }
 0x14c   : > { %v1055_v4 = vmul.f32 %v3492_v62, %v4719_v41  ;;  %3499 = vrcp.f32 %v4747_v56  ;;  %v3494_v57 = vpop.eup %3493  ;;  %v1641_v60 = vand.u32 2147483647, %v4747_v56  ;;  %v1643_v34 = vand.u32 2147483648, %v4747_v56 }
 0x14d   : > { %3501 = vrcp.f32 %v4750_v12  ;;  %vm1060_vm1 = vweird.f32 %v3492_v62  ;;  %v1841_v25 = vand.u32 2147483648, %v4750_v12  ;;  %v4769_v44 = vadd.f32 1.0, %v3494_v57 }
 0x14e   : > { %v1056_v33 = vsub.f32 1.0, %v1055_v4  ;;  %3503 = vpow2.f32 %v3185_v19  ;;  %vm4775_vm0 = vcmp.eq.f32.partialorder %v2135_v1, 8.507059e+37  ;;  %v2138_v53 = vor.u32 1.1754944e-38, %v2137_v55  ;;  %vm4786_vm2 = vmor %vm1059_vm12, %vm1060_vm1 }
 0x14f   : > { %v3496_v48 = vpop.eup %3495  ;;  %v1839_v47 = vand.u32 2147483647, %v4750_v12  ;;  %vm1637_vm13 = vweird.f32 %v4747_v56  ;;  %vm4791_vm10 = vcmp.eq.f32.partialorder %v1641_v60, 8.507059e+37  ;;  %v1644_v9 = vor.u32 1.1754944e-38, %v1643_v34 }
 0x150   : > { %v3498_v39 = vpop.eup %3497  ;;  %v1057_v5 = vmul.f32 %v3492_v62, %v1056_v33  ;;  %v2127_v23 = vmul.f32 %v3496_v48, %v4734_v50  ;;  %3505 = vrcp.f32 %v4769_v44  ;;  %vm5710_vm11 = vcmask 1043456  }
 0x151   : > { %3274 = vmatpush.msk.msra.mxu2 %vm5710_vm11, %v2663_v21  ;;  %vm1835_vm14 = vweird.f32 %v4750_v12  ;;  %v1078_v6 = vand.u32 2147483647, %v4769_v44  ;;  %v4799_v41 = vadd.f32 1.0, %v3498_v39  ;;  %vm2132_vm3 = vweird.f32 %v3496_v48 }
 0x152   : > { %v3500_v49 = vpop.eup %3499  ;;  %v1058_v40 = vadd.f32 %v3492_v62, %v1057_v5  ;;  %v2128_v42 = vsub.f32 1.0, %v2127_v23  ;;  %v1842_v59 = vor.u32 1.1754944e-38, %v1841_v25  ;;  %vm1074_vm6 = vweird.f32 %v4769_v44 }
 0x153   : > { %v3502_v51 = vpop.eup %3501  ;;  %v1633_v31 = vmul.f32 %v3500_v49, %v4747_v56  ;;  %vm4806_vm4 = vcmp.eq.f32.partialorder %v1839_v47, 8.507059e+37  ;;  %v1080_v35 = vand.u32 2147483648, %v4769_v44  ;;  %vm1638_vm12 = vweird.f32 %v3500_v49 }
 0x154   : > { %v1062_v32 = vsel %vm4786_vm2, %v3492_v62, %v1058_v40  ;;  %v2129_v2 = vmul.f32 %v3496_v48, %v2128_v42  ;;  %v1831_v16 = vmul.f32 %v3502_v51, %v4750_v12  ;;  %v3504_v54 = vpop.eup %3503  ;;  %3507 = vrcp.f32 %v4799_v41  ;;  %vm4831_vm2 = vmor %vm1637_vm13, %vm1638_vm12  ;;  %v1951_v12 = vpop.f32.mrf.mxu2 }
 0x155   : > { %v1067_v27 = vsel %vm4760_vm15, %v1066_v38, %v1062_v32  ;;  %v1634_v0 = vsub.f32 1.0, %v1633_v31  ;;  %vm1836_vm9 = vweird.f32 %v3502_v51  ;;  %vm4815_vm1 = vcmp.eq.f32.partialorder %v1078_v6, 8.507059e+37  ;;  %vm2133_vm15 = vmor %vm2131_vm8, %vm2132_vm3  ;;  %v1747_v31 = vpop.f32.mrf.mxu0 }
 0x156   : > { %v1090_v15 = vmul.f32 %v1067_v27, %v4574_v20  ;;  %v2130_v45 = vadd.f32 %v3496_v48, %v2129_v2  ;;  %v1832_v63 = vsub.f32 1.0, %v1831_v16  ;;  %v3506_v18 = vpop.eup %3505  ;;  %v2150_v62 = vand.u32 2147483647, %v4799_v41  ;;  %vm1837_vm13 = vmor %vm1835_vm14, %vm1836_vm9 }
 0x157   : > { %v1635_v46 = vmul.f32 %v3500_v49, %v1634_v0  ;;  %v2152_v19 = vand.u32 2147483648, %v4799_v41  ;;  %v4824_v20 = vadd.f32 1.0, %v3504_v54  ;;  %v1070_v10 = vmul.f32 %v3506_v18, %v4769_v44 }
 0x158   : > { %v1114_v4 = vsel %vm4184_vm7, %v1090_v15, 0.0  ;;  %v2134_v1 = vsel %vm2133_vm15, %v3496_v48, %v2130_v45  ;;  %v1833_v50 = vmul.f32 %v3502_v51, %v1832_v63  ;;  %vm5717_vm8 = vcmask 31744  }
 0x159   : > { %1122 = vst.msk [vmem:[#allocation3 + $0x30] sm:$0xff] %vm5717_vm8, %v1114_v4  ;;  %v2139_v57 = vsel %vm4775_vm0, %v2138_v53, %v2134_v1  ;;  %v1636_v14 = vadd.f32 %v3500_v49, %v1635_v46  ;;  %v1081_v60 = vor.u32 1.1754944e-38, %v1080_v35  ;;  %v3207_v36 = vmul.f32 -1.442695, %v4772_v26  ;;  %vm5718_vm0 = vmmov %vm5717_vm8 }
 0x15a   : > { %v2204_v34 = vmul.f32 %v2139_v57, %v4577_v24  ;;  %v1834_v33 = vadd.f32 %v3502_v51, %v1833_v50  ;;  %v1071_v56 = vsub.f32 1.0, %v1070_v10  ;;  %vm1075_vm7 = vweird.f32 %v3506_v18  ;;  %v3508_v38 = vpop.eup %3507  ;;  %vm5723_vm9 = vmmov %vm5718_vm0  ;;  %v2279_v10 = vld [vmem:[#allocation2 + $0x50] sm:$0xff]  ;;  %v4941_v57 = vld [vmem:[%s5558_s3 + $0x3] ss:$0 sm:$0xff] }
 0x15b   : > { %v1640_v48 = vsel %vm4831_vm2, %v3500_v49, %v1636_v14  ;;  %vm2146_vm11 = vweird.f32 %v4799_v41  ;;  %v2153_v25 = vor.u32 1.1754944e-38, %v2152_v19  ;;  %3509 = vrcp.f32 %v4824_v20  ;;  %vm4862_vm14 = vmor %vm1074_vm6, %vm1075_vm7  ;;  %v4946_v14 = vld [vmem:[%s5558_s3 + $0x7] ss:$0 sm:$0xff] }
 0x15c   : > { %2213 = vst.msk [vmem:[#allocation3 + $0x98] sm:$0xff] %vm5718_vm0, %v2204_v34  ;;  %v1645_v24 = vsel %vm4791_vm10, %v1644_v9, %v1640_v48  ;;  %v1838_v39 = vsel %vm1837_vm13, %v3502_v51, %v1834_v33  ;;  %v1072_v5 = vmul.f32 %v3506_v18, %v1071_v56  ;;  %v2142_v23 = vmul.f32 %v3508_v38, %v4799_v41  ;;  %vm5724_vm6 = vmmov %vm5718_vm0  ;;  %v2227_v33 = vld [vmem:[#allocation2 + $0x8] sm:$0xff]  ;;  %v2382_v56 = vld [vmem:[#allocation3] sm:$0xff] }
 0x15d   : > { %vm4852_vm3 = vcmp.eq.f32.partialorder %v2150_v62, 8.507059e+37  ;;  %v1668_v53 = vmul.f32 %v1645_v24, %v4589_v8  ;;  %v1843_v47 = vsel %vm4806_vm4, %v1842_v59, %v1838_v39  ;;  %vm1652_vm10 = vweird.f32 %v4824_v20  ;;  %vm5728_vm2 = vmmov %vm5718_vm0 }
 0x15e   : > { %v1656_v28 = vand.u32 2147483647, %v4824_v20  ;;  %v1908_v43 = vmul.f32 %v1843_v47, %v4599_v22  ;;  %v1073_v9 = vadd.f32 %v3506_v18, %v1072_v5  ;;  %v2143_v49 = vsub.f32 1.0, %v2142_v23  ;;  %vm5731_vm7 = vmmov %vm5718_vm0  ;;  %v2434_v5 = vld [vmem:[#allocation3 + $0x40] sm:$0xff] }
 0x15f   : > { %vm2147_vm12 = vweird.f32 %v3508_v38  ;;  %1677 = vst.msk [vmem:[#allocation3 + $0x70] sm:$0xff] %vm5723_vm9, %v1668_v53  ;;  %3511 = vpow2.f32 %v3207_v36  ;;  %v4872_v8 = vadd.f32 %v4383_v17, %v4758_v3  ;;  %v4875_v44 = vadd.f32 %v4383_v17, %v1744_v29  ;;  %v2046_v3 = vpop.f32.mrf.mxu3  ;;  %vm5732_vm13 = vmmov %vm5718_vm0  ;;  %v4970_v53 = vld [vmem:[%s5558_s3] ss:$0 sm:$0xff] }
 0x160   : > { %v4878_v40 = vadd.f32 %v4383_v17, %v1951_v12  ;;  %1925 = vst.msk [vmem:[#allocation2 + $0xa8] sm:$0xff] %vm5724_vm6, %v1908_v43  ;;  %v1077_v22 = vsel %vm4862_vm14, %v3506_v18, %v1073_v9  ;;  %v2144_v42 = vmul.f32 %v3508_v38, %v2143_v49  ;;  %v1658_v6 = vand.u32 2147483648, %v4824_v20  ;;  %vm2148_vm15 = vmor %vm2146_vm11, %vm2147_vm12 }
 0x161   : > { %v4885_v51 = vadd.f32 %v4383_v17, %v2043_v30  ;;  %v3510_v59 = vpop.eup %3509  ;;  %v1082_v32 = vsel %vm4815_vm1, %v1081_v60, %v1077_v22  ;;  %v3237_v2 = vmul.f32 -1.442695, %v4872_v8  ;;  %v3208_v16 = vmul.f32 -1.442695, %v4875_v44  ;;  %vm5725_vm1 = vmmov %vm5718_vm0 }
 0x162   : > { %v3214_v61 = vmul.f32 -1.442695, %v4878_v40  ;;  %v1091_v35 = vmul.f32 %v1082_v32, %v4711_v58  ;;  %v2145_v54 = vadd.f32 %v3508_v38, %v2144_v42  ;;  %v1648_v27 = vmul.f32 %v3510_v59, %v4824_v20  ;;  %v4935_v20 = vld [vmem:[%s5558_s3 + $0x6] ss:$0 sm:$0xff]  ;;  %vm5733_vm11 = vmmov %vm5718_vm0 }
 0x163   : > { %vm1653_vm4 = vweird.f32 %v3510_v59  ;;  %3513 = vpow2.f32 %v3237_v2  ;;  %v3238_v0 = vmul.f32 -1.442695, %v4885_v51  ;;  %v4899_v15 = vadd.f32 %v4383_v17, %v1747_v31 }
 0x164   : > { %v4902_v45 = vadd.f32 %v4383_v17, %v2046_v3  ;;  %v1115_v58 = vsel %vm4259_vm5, %v1091_v35, 0.0  ;;  %v2149_v63 = vsel %vm2148_vm15, %v3508_v38, %v2145_v54  ;;  %v1649_v52 = vsub.f32 1.0, %v1648_v27  ;;  %vm4916_vm5 = vmor %vm1652_vm10, %vm1653_vm4  ;;  %v4956_v38 = vld [vmem:[%s5558_s3 + $0x4] ss:$0 sm:$0xff] }
 0x165   : > { %3515 = vpow2.f32 %v3208_v16  ;;  %v3512_v29 = vpop.eup %3511  ;;  %1123 = vst.msk [vmem:[#allocation3 + $0x38] sm:$0xff] %vm5725_vm1, %v1115_v58  ;;  %v2154_v41 = vsel %vm4852_vm3, %v2153_v25, %v2149_v63  ;;  %v3209_v30 = vmul.f32 -1.442695, %v4899_v15  ;;  %v1659_v62 = vor.u32 1.1754944e-38, %v1658_v6  ;;  %vm5734_vm3 = vmmov %vm5725_vm1 }
 0x166   : > { %3517 = vpow2.f32 %v3214_v61  ;;  %v2205_v18 = vmul.f32 %v2154_v41, %v4714_v11  ;;  %v1650_v46 = vmul.f32 %v3510_v59, %v1649_v52  ;;  %v4911_v17 = vadd.f32 1.0, %v3512_v29  ;;  %v4930_v11 = vld [vmem:[%s5558_s3 + $0x1] ss:$0 sm:$0xff] }
 0x167   : > { %3519 = vpow2.f32 %v3238_v0  ;;  %v3239_v19 = vmul.f32 -1.442695, %v4902_v45  ;;  %vm4922_vm8 = vcmp.eq.f32.partialorder %v1656_v28, 8.507059e+37  ;;  %v3604_v50 = vmov 0.0  }
 0x168   : > { %2214 = vst.msk [vmem:[#allocation3 + $0xa0] sm:$0xff] %vm5728_vm2, %v2205_v18  ;;  %v1651_v4 = vadd.f32 %v3510_v59, %v1650_v46  ;;  %3521 = vrcp.f32 %v4911_v17  ;;  %v1854_v24 = vand.u32 2147483647, %v4911_v17  ;;  %v1856_v12 = vand.u32 2147483648, %v4911_v17 }
 0x169   : > { %v3514_v55 = vpop.eup %3513  ;;  %3523 = vpow2.f32 %v3209_v30  ;;  %789 = vst.msk [vmem:[#allocation2] sm:$0xff] %vm5731_vm7, %v3604_v50  ;;  %v4973_v47 = vmul.f32 %v4930_v11, %v2279_v10  ;;  %vm1850_vm0 = vweird.f32 %v4911_v17  ;;  %v4978_v21 = vmul.f32 %v4941_v57, %v2382_v56 }
 0x16a   : > { %v1655_v36 = vsel %vm4916_vm5, %v3510_v59, %v1651_v4  ;;  %v4950_v34 = vadd.f32 1.0, %v3514_v55  ;;  %1383 = vst.msk [vmem:[#allocation2 + $0x48] sm:$0xff] %vm5732_vm13, %v3604_v50  ;;  %3525 = vpow2.f32 %v3239_v19  ;;  %v4990_v22 = vmul.f32 %v4956_v38, %v2434_v5 }
 0x16b   : > { %v3516_v60 = vpop.eup %3515  ;;  %v1660_v25 = vsel %vm4922_vm8, %v1659_v62, %v1655_v36  ;;  %1922 = vst.msk [vmem:[#allocation2 + $0x90] sm:$0xff] %vm5733_vm11, %v3604_v50  ;;  %vm4993_vm14 = vcmp.eq.f32.partialorder %v1854_v24, 8.507059e+37  ;;  %v5000_v32 = vmul.f32 %v4946_v14, %v2279_v10  ;;  %v1857_v2 = vor.u32 1.1754944e-38, %v1856_v12  ;;  %v5111_v50 = vld [vmem:[%s5558_s3 + $0x5] ss:$0 sm:$0xff] }
 0x16c   : > { %v3518_v48 = vpop.eup %3517  ;;  %v4961_v39 = vadd.f32 1.0, %v3516_v60  ;;  %v1669_v7 = vmul.f32 %v1660_v25, %v4740_v13  ;;  %3527 = vrcp.f32 %v4950_v34  ;;  %v4981_v13 = vmul.f32 %v4935_v20, %v2227_v33 }
 0x16d   : > { %v3520_v23 = vpop.eup %3519  ;;  %v2167_v43 = vand.u32 2147483648, %v4950_v34  ;;  %v4985_v9 = vadd.f32 1.0, %v3518_v48  ;;  %v2165_v3 = vand.u32 2147483647, %v4950_v34  ;;  %v5005_v61 = vmul.f32 %v4970_v53, %v2227_v33 }
 0x16e   : > { %3529 = vrcp.f32 %v4961_v39  ;;  %v3522_v28 = vpop.eup %3521  ;;  %1678 = vst.msk [vmem:[#allocation3 + $0x78] sm:$0xff] %vm5734_vm3, %v1669_v7  ;;  %v4987_v49 = vadd.f32 1.0, %v3520_v23  ;;  %v1871_v59 = vand.u32 2147483648, %v4961_v39  ;;  %v1869_v16 = vand.u32 2147483647, %v4961_v39 }
 0x16f   : > { %v3524_v42 = vpop.eup %3523  ;;  %v1846_v6 = vmul.f32 %v3522_v28, %v4911_v17  ;;  %3531 = vrcp.f32 %v4985_v9  ;;  %vm2161_vm10 = vweird.f32 %v4950_v34  ;;  %v1967_v27 = vand.u32 2147483647, %v4985_v9 }
 0x170   : > { %v3526_v35 = vpop.eup %3525  ;;  %3533 = vrcp.f32 %v4987_v49  ;;  %vm1851_vm12 = vweird.f32 %v3522_v28  ;;  %v2168_v58 = vor.u32 1.1754944e-38, %v2167_v43  ;;  %vm1865_vm9 = vweird.f32 %v4961_v39 }
 0x171   : > { %v1847_v54 = vsub.f32 1.0, %v1846_v6  ;;  %v1969_v63 = vand.u32 2147483648, %v4985_v9  ;;  %v5012_v52 = vadd.f32 1.0, %v3524_v42  ;;  %vm5015_vm6 = vcmp.eq.f32.partialorder %v2165_v3, 8.507059e+37  ;;  %vm1852_vm8 = vmor %vm1850_vm0, %vm1851_vm12 }
 0x172   : > { %v3528_v0 = vpop.eup %3527  ;;  %v1872_v46 = vor.u32 1.1754944e-38, %v1871_v59  ;;  %v2182_v37 = vand.u32 2147483648, %v4987_v49  ;;  %vm5021_vm4 = vcmp.eq.f32.partialorder %v1869_v16, 8.507059e+37  ;;  %vm1963_vm15 = vweird.f32 %v4985_v9  ;;  %v5063_v16 = vld [vmem:[%s5558_s3 + $0x2] ss:$0 sm:$0xff] }
 0x173   : > { %v1848_v41 = vmul.f32 %v3522_v28, %v1847_v54  ;;  %v2157_v30 = vmul.f32 %v3528_v0, %v4950_v34  ;;  %vm2176_vm1 = vweird.f32 %v4987_v49  ;;  %v2180_v4 = vand.u32 2147483647, %v4987_v49 }
 0x174   : > { %v3530_v29 = vpop.eup %3529  ;;  %vm2162_vm5 = vweird.f32 %v3528_v0  ;;  %vm5028_vm2 = vcmp.eq.f32.partialorder %v1967_v27, 8.507059e+37  ;;  %3535 = vrcp.f32 %v5012_v52  ;;  %v1970_v36 = vor.u32 1.1754944e-38, %v1969_v63  ;;  %v5153_v27 = vld [vmem:[%s5557_s2] ss:$0 sm:$0xff]  ;;  %v5176_v63 = vld [vmem:[%s5557_s2 + $0x1] ss:$0 sm:$0xff] }
 0x175   : > { %v1861_v62 = vmul.f32 %v3530_v29, %v4961_v39  ;;  %v1849_v1 = vadd.f32 %v3522_v28, %v1848_v41  ;;  %v2158_v55 = vsub.f32 1.0, %v2157_v30  ;;  %v3532_v10 = vpop.eup %3531  ;;  %vm1866_vm7 = vweird.f32 %v3530_v29  ;;  %vm2163_vm0 = vmor %vm2161_vm10, %vm2162_vm5  ;;  %v2226_v41 = vld [vmem:[#allocation2] sm:$0xff]  ;;  %v2278_v30 = vld [vmem:[#allocation2 + $0x48] sm:$0xff] }
 0x176   : > { %v5036_v33 = vadd.f32 1.0, %v3526_v35  ;;  %v3534_v56 = vpop.eup %3533  ;;  %v1959_v24 = vmul.f32 %v3532_v10, %v4985_v9  ;;  %v2183_v5 = vor.u32 1.1754944e-38, %v2182_v37  ;;  %vm5042_vm13 = vcmp.eq.f32.partialorder %v2180_v4, 8.507059e+37  ;;  %vm1867_vm12 = vmor %vm1865_vm9, %vm1866_vm7  ;;  %v2330_v37 = vld [vmem:[#allocation2 + $0x90] sm:$0xff] }
 0x177   : > { %v1862_v60 = vsub.f32 1.0, %v1861_v62  ;;  %v1853_v48 = vsel %vm1852_vm8, %v3522_v28, %v1849_v1  ;;  %v2159_v25 = vmul.f32 %v3528_v0, %v2158_v55  ;;  %v2172_v12 = vmul.f32 %v3534_v56, %v4987_v49 }
 0x178   : > { %v1858_v23 = vsel %vm4993_vm14, %v1857_v2, %v1853_v48  ;;  %v1884_v43 = vand.u32 2147483647, %v5012_v52  ;;  %v1960_v28 = vsub.f32 1.0, %v1959_v24  ;;  %vm1964_vm11 = vweird.f32 %v3532_v10 }
 0x179   : > { %v1863_v7 = vmul.f32 %v3530_v29, %v1862_v60  ;;  %v1909_v42 = vmul.f32 %v1858_v23, %v4772_v26  ;;  %v2160_v6 = vadd.f32 %v3528_v0, %v2159_v25  ;;  %v2173_v3 = vsub.f32 1.0, %v2172_v12  ;;  %vm5070_vm10 = vmor %vm1963_vm15, %vm1964_vm11  ;;  %v383_v12 = vld [vmem:[%s5562_s7 + $0x2] sm:$0x1] }
 0x17a   : > { %vm1880_vm3 = vweird.f32 %v5012_v52  ;;  %3537 = vrcp.f32 %v5036_v33  ;;  %v5053_v59 = vpop.eup %3535  ;;  %vm5745_vm14 = vcmask 31744   ;;  %v1961_v26 = vmul.f32 %v3532_v10, %v1960_v28 }
 0x17b   : > { %v1864_v31 = vadd.f32 %v3530_v29, %v1863_v7  ;;  %1926 = vst.msk [vmem:[#allocation2 + $0xb0] sm:$0xff] %vm5745_vm14, %v1909_v42  ;;  %v2164_v2 = vsel %vm2163_vm0, %v3528_v0, %v2160_v6  ;;  %vm2177_vm8 = vweird.f32 %v3534_v56  ;;  %v1886_v34 = vand.u32 2147483648, %v5012_v52  ;;  %vm5750_vm15 = vmmov %vm5745_vm14  ;;  %v2331_v7 = vld [vmem:[#allocation2 + $0x98] sm:$0xff] }
 0x17c   : > { %v2169_v35 = vsel %vm5015_vm6, %v2168_v58, %v2164_v2  ;;  %v2174_v39 = vmul.f32 %v3534_v56, %v2173_v3  ;;  %v1876_v0 = vmul.f32 %v5053_v59, %v5012_v52  ;;  %vm5076_vm9 = vcmp.eq.f32.partialorder %v1884_v43, 8.507059e+37  ;;  %vm2178_vm5 = vmor %vm2176_vm1, %vm2177_vm8  ;;  %v2486_v43 = vld [vmem:[#allocation3 + $0x80] sm:$0xff]  ;;  %v5137_v3 = vld [vmem:[#allocation2 + $0x10] sm:$0xff] }
 0x17d   : > { %v1868_v54 = vsel %vm1867_vm12, %v3530_v29, %v1864_v31  ;;  %v2206_v58 = vmul.f32 %v2169_v35, %v4872_v8  ;;  %v1962_v9 = vadd.f32 %v3532_v10, %v1961_v26  ;;  %v2195_v18 = vand.u32 2147483647, %v5036_v33 }
 0x17e   : > { %v1873_v29 = vsel %vm5021_vm4, %v1872_v46, %v1868_v54  ;;  %v2175_v4 = vadd.f32 %v3534_v56, %v2174_v39  ;;  %v1877_v1 = vsub.f32 1.0, %v1876_v0  ;;  %vm1881_vm6 = vweird.f32 %v5053_v59  ;;  %vm5751_vm4 = vmmov %vm5745_vm14  ;;  %v2218_v54 = vld [vmem:[%s3686_s15] sm:$0xff]  ;;  %v5155_v39 = vld [vmem:[#allocation2 + $0x58] sm:$0xff] }
 0x17f   : > { %v1910_v62 = vmul.f32 %v1873_v29, %v4875_v44  ;;  %2215 = vst.msk [vmem:[#allocation3 + $0xa8] sm:$0xff] %vm5750_vm15, %v2206_v58  ;;  %v1966_v55 = vsel %vm5070_vm10, %v3532_v10, %v1962_v9  ;;  %v2197_v8 = vand.u32 2147483648, %v5036_v33  ;;  %v2254_v46 = vmul.f32 %v4970_v53, %v2226_v41  ;;  %vm5752_vm7 = vmmov %vm5751_vm4  ;;  %v3240_v29 = vld [vmem:[%s3686_s15 + $0x48] sm:$0xff] }
 0x180   : > { %v2306_v19 = vmul.f32 %v4930_v11, %v2278_v30  ;;  %v5095_v44 = vpop.eup %3537  ;;  %v1971_v60 = vsel %vm5028_vm2, %v1970_v36, %v1966_v55  ;;  %v2179_v48 = vsel %vm2178_vm5, %v3534_v56, %v2175_v4  ;;  %v1878_v10 = vmul.f32 %v5053_v59, %v1877_v1  ;;  %v5116_v36 = vld [vmem:[%s5558_s3 + $0x8] ss:$0 sm:$0xff]  ;;  %vm5757_vm0 = vmmov %vm5751_vm4  ;;  %v3248_v4 = vld [vmem:[%s3686_s15 + $0x90] sm:$0xff] }
 0x181   : > { %1927 = vst.msk [vmem:[#allocation2 + $0xb8] sm:$0xff] %vm5751_vm4, %v1910_v62  ;;  %v2358_v25 = vmul.f32 %v5063_v16, %v2330_v37  ;;  %v1973_v49 = vmul.f32 %v1971_v60, %v4878_v40  ;;  %v2184_v24 = vsel %vm5042_vm13, %v2183_v5, %v2179_v48  ;;  %v2187_v23 = vmul.f32 %v5095_v44, %v5036_v33  ;;  %v1750_v40 = vpop.f32.mrf.mxu0  ;;  %vm5129_vm13 = vmor %vm1880_vm3, %vm1881_vm6  ;;  %v3241_v62 = vld [vmem:[%s3686_s15 + $0x50] sm:$0xff]  ;;  %v5187_v1 = vld [vmem:[%s5557_s2 + $0x2] ss:$0 sm:$0xff] }
 0x182   : > { %vm2191_vm1 = vweird.f32 %v5036_v33  ;;  %v2207_v56 = vmul.f32 %v2184_v24, %v4885_v51  ;;  %v1879_v5 = vadd.f32 %v5053_v59, %v1878_v10  ;;  %vm2192_vm2 = vweird.f32 %v5095_v44  ;;  %vm5760_vm14 = vmmov %vm5757_vm0  ;;  %v2219_v10 = vld [vmem:[%s3686_s15 + $0x8] sm:$0xff]  ;;  %v5210_v24 = vld [vmem:[%s5557_s2 + $0x4] ss:$0 sm:$0xff] }
 0x183   : > { %v2314_v17 = vadd.f32 %v2306_v19, %v2254_v46  ;;  %1974 = vst.msk [vmem:[#allocation2 + $0xd0] sm:$0xff] %vm5752_vm7, %v1973_v49  ;;  %v1887_v51 = vor.u32 1.1754944e-38, %v1886_v34  ;;  %v2188_v6 = vsub.f32 1.0, %v2187_v23  ;;  %vm5133_vm11 = vcmp.eq.f32.partialorder %v2195_v18, 8.507059e+37  ;;  %v3576_v34 = vld [vmem:[%s5562_s7] ss:$0 sm:$0xff]  ;;  %vm5164_vm3 = vmor %vm2191_vm1, %vm2192_vm2 }
 0x184   : > { %v2198_v31 = vor.u32 1.1754944e-38, %v2197_v8  ;;  %2216 = vst.msk [vmem:[#allocation3 + $0xb0] sm:$0xff] %vm5757_vm0, %v2207_v56  ;;  %v1883_v52 = vsel %vm5129_vm13, %v5053_v59, %v1879_v5  ;;  %v2359_v2 = vmul.f32 %v5063_v16, %v2331_v7  ;;  %v5147_v35 = vadd.f32 %v3576_v34, %v1750_v40  ;;  %v2374_v46 = vld [vmem:[%s3693_s18] sm:$0xff]  ;;  %vm5761_vm12 = vmmov %vm5757_vm0 }
 0x185   : > { %v2366_v26 = vadd.f32 %v2358_v25, %v2314_v17  ;;  %v1888_v59 = vsel %vm5076_vm9, %v1887_v51, %v1883_v52  ;;  %v2189_v0 = vmul.f32 %v5095_v44, %v2188_v6  ;;  %v2514_v30 = vmul.f32 %v5111_v50, %v2486_v43  ;;  %v5198_v19 = vld [vmem:[%s5557_s2 + $0x3] ss:$0 sm:$0xff]  ;;  %v5215_v23 = vld [vmem:[%s5557_s2 + $0x5] ss:$0 sm:$0xff]  ;;  %v5228_v17 = vld [vmem:[%s5557_s2 + $0x6] ss:$0 sm:$0xff] }
 0x186   : > { %v5170_v58 = vmul.f32 %v5116_v36, %v2331_v7  ;;  %v1911_v9 = vmul.f32 %v1888_v59, %v4899_v15  ;;  %v3210_v18 = vmul.f32 -1.442695, %v5147_v35  ;;  %v2236_v37 = vmul.f32 %v5153_v27, %v2218_v54  ;;  %v3256_v49 = vld [vmem:[%s3693_s18 + $0x40] sm:$0xff]  ;;  %v5241_v6 = vld [vmem:[%s5557_s2 + $0x8] ss:$0 sm:$0xff]  ;;  %vm5762_vm8 = vmmov %vm5757_vm0 }
 0x187   : > { %v2418_v33 = vadd.f32 %v4978_v21, %v2366_v26  ;;  %v2190_v55 = vadd.f32 %v5095_v44, %v2189_v0  ;;  %v5190_v8 = vperm.slane %v383_v12, 0  ;;  %v2288_v15 = vmul.f32 %v5176_v63, %v3240_v29  ;;  %v3249_v21 = vld [vmem:[%s3686_s15 + $0x98] sm:$0xff]  ;;  %v3264_v12 = vld [vmem:[%s3693_s18 + $0x80] sm:$0xff]  ;;  %vm5765_vm15 = vmmov %vm5757_vm0 }
 0x188   : > { %v2308_v60 = vmul.f32 %v4930_v11, %v5155_v39  ;;  %1928 = vst.msk [vmem:[#allocation2 + $0xc0] sm:$0xff] %vm5760_vm14, %v1911_v9  ;;  %3539 = vpow2.f32 %v3210_v18  ;;  %v2340_v25 = vmul.f32 %v5187_v1, %v3248_v4  ;;  %v2256_v7 = vmul.f32 %v4970_v53, %v5137_v3  ;;  %v5233_v43 = vld [vmem:[%s5557_s2 + $0x7] ss:$0 sm:$0xff]  ;;  %vm5766_vm5 = vmmov %vm5757_vm0 }
 0x189   : > { %v2470_v48 = vadd.f32 %v4990_v22, %v2418_v33  ;;  %v2194_v22 = vsel %vm5164_vm3, %v5095_v44, %v2190_v55  ;;  %v2289_v40 = vmul.f32 %v5176_v63, %v3241_v62  ;;  %v2296_v56 = vadd.f32 %v2288_v15, %v2236_v37  ;;  %v2332_v26 = vld [vmem:[#allocation2 + $0xa0] sm:$0xff]  ;;  %vm5767_vm1 = vmmov %vm5757_vm0 }
 0x18a   : > { %v2392_v5 = vmul.f32 %v5198_v19, %v2374_v46  ;;  %v2199_v42 = vsel %vm5133_vm11, %v2198_v31, %v2194_v22  ;;  %v2341_v51 = vmul.f32 %v5187_v1, %v3249_v21  ;;  %v2315_v52 = vadd.f32 %v4973_v47, %v5005_v61  ;;  %v2383_v34 = vld [vmem:[#allocation3 + $0x8] sm:$0xff]  ;;  %v2384_v31 = vld [vmem:[#allocation3 + $0x10] sm:$0xff]  ;;  %v3242_v22 = vld [vmem:[%s3686_s15 + $0x58] sm:$0xff] }
 0x18b   : > { %v2522_v44 = vadd.f32 %v2514_v30, %v2470_v48  ;;  %v2208_v54 = vmul.f32 %v2199_v42, %v4902_v45  ;;  %v2348_v59 = vadd.f32 %v2340_v25, %v2296_v56  ;;  %v2444_v0 = vmul.f32 %v5210_v24, %v3256_v49  ;;  %v2435_v33 = vld [vmem:[#allocation3 + $0x48] sm:$0xff]  ;;  %v2220_v25 = vld [vmem:[%s3686_s15 + $0x10] sm:$0xff]  ;;  %v2375_v42 = vld [vmem:[%s3693_s18 + $0x8] sm:$0xff] }
 0x18c   : > { %v2316_v28 = vadd.f32 %v2308_v60, %v2256_v7  ;;  %v2496_v30 = vmul.f32 %v5215_v23, %v3264_v12  ;;  %v2360_v29 = vmul.f32 %v5063_v16, %v2332_v26  ;;  %v2367_v9 = vadd.f32 %v2359_v2, %v2315_v52  ;;  %v2487_v37 = vld [vmem:[#allocation3 + $0x88] sm:$0xff]  ;;  %vm5768_vm2 = vmmov %vm5757_vm0 }
 0x18d   : > { %v2560_v41 = vadd.f32 %v4981_v13, %v2522_v44  ;;  %2217 = vst.msk [vmem:[#allocation3 + $0xb8] sm:$0xff] %vm5761_vm12, %v2208_v54  ;;  %v2400_v47 = vadd.f32 %v2392_v5, %v2348_v59  ;;  %v2534_v61 = vmul.f32 %v5228_v17, %v2219_v10  ;;  %v2572_v45 = vmul.f32 %v5233_v43, %v3241_v62  ;;  %vm5769_vm7 = vmmov %vm5757_vm0 }
 0x18e   : > { %v2411_v18 = vmul.f32 %v4941_v57, %v2383_v34  ;;  %v3540_v4 = vpop.eup %3539  ;;  %v2610_v55 = vmul.f32 %v5241_v6, %v3249_v21  ;;  %v2368_v15 = vadd.f32 %v2360_v29, %v2316_v28  ;;  %v2412_v2 = vmul.f32 %v4941_v57, %v2384_v31  ;;  %v3257_v34 = vld [vmem:[%s3693_s18 + $0x48] sm:$0xff]  ;;  %v2376_v31 = vld [vmem:[%s3693_s18 + $0x10] sm:$0xff]  ;;  %vm5770_vm13 = vmmov %vm5757_vm0 }
 0x18f   : > { %v2598_v13 = vadd.f32 %v5000_v32, %v2560_v41  ;;  %v5257_v46 = vadd.f32 1.0, %v3540_v4  ;;  %v2452_v60 = vadd.f32 %v2444_v0, %v2400_v47  ;;  %v2463_v62 = vmul.f32 %v4956_v38, %v2435_v33  ;;  %v3265_v41 = vld [vmem:[%s3693_s18 + $0x88] sm:$0xff]  ;;  %vm5771_vm11 = vmmov %vm5757_vm0 }
 0x190   : > { %v2419_v48 = vadd.f32 %v2411_v18, %v2367_v9  ;;  %v2515_v7 = vmul.f32 %v5111_v50, %v2487_v37  ;;  %v2553_v32 = vmul.f32 %v4935_v20, %v5137_v3  ;;  %v2237_v21 = vmul.f32 %v5153_v27, %v2219_v10  ;;  %vm5772_vm3 = vmmov %vm5757_vm0 }
 0x191   : > { %v2636_v49 = vadd.f32 %v5170_v58, %v2598_v13  ;;  %3541 = vrcp.f32 %v5257_v46  ;;  %v1901_v56 = vand.u32 2147483648, %v5257_v46  ;;  %v5269_v5 = vadd.f32 %v2412_v2, %v2368_v15  ;;  %v3250_v58 = vld [vmem:[%s3686_s15 + $0xa0] sm:$0xff]  ;;  %v2229_v15 = vld [vmem:[#allocation2 + $0x18] sm:$0xff]  ;;  %vm5773_vm14 = vmmov %vm5757_vm0 }
 0x192   : > { %v2591_v12 = vmul.f32 %v4946_v14, %v5155_v39  ;;  %v2504_v52 = vadd.f32 %v2496_v30, %v2452_v60  ;;  %v2471_v3 = vadd.f32 %v2463_v62, %v2419_v48  ;;  %v2238_v10 = vmul.f32 %v5153_v27, %v2220_v25  ;;  %v2281_v2 = vld [vmem:[#allocation2 + $0x60] sm:$0xff]  ;;  %vm5774_vm12 = vmmov %vm5757_vm0 }
 0x193   : > { %v2654_v44 = vadd.f32 %v5190_v8, %v2636_v49  ;;  %v1899_v54 = vand.u32 2147483647, %v5257_v46  ;;  %v2629_v59 = vmul.f32 %v5116_v36, %v2332_v26  ;;  %v2290_v0 = vmul.f32 %v5176_v63, %v3242_v22 }
 0x194   : > { %v2297_v28 = vadd.f32 %v2289_v40, %v2237_v21  ;;  %v2542_v39 = vadd.f32 %v2534_v61, %v2504_v52  ;;  %v2523_v29 = vadd.f32 %v2515_v7, %v2471_v3  ;;  %v2342_v9 = vmul.f32 %v5187_v1, %v3250_v58  ;;  %v5293_v40 = vld [vmem:[%s5562_s7 + $0x1] ss:$0 sm:$0xff]  ;;  %v2385_v3 = vld [vmem:[#allocation3 + $0x18] sm:$0xff] }
 0x195   : > { %3275 = vmatmul.msk.f32.vlgmr.msra.gmra.mxu2 %vm5762_vm8, %v2654_v44  ;;  %v2393_v30 = vmul.f32 %v5198_v19, %v2375_v42  ;;  %v5286_v33 = vor.u32 1.1754944e-38, %v1901_v56  ;;  %v2298_v47 = vadd.f32 %v2290_v0, %v2238_v10  ;;  %v2445_v37 = vmul.f32 %v5210_v24, %v3257_v34  ;;  %v2436_v44 = vld [vmem:[#allocation3 + $0x50] sm:$0xff]  ;;  %vm5775_vm8 = vmmov %vm5757_vm0 }
 0x196   : > { %v2349_v18 = vadd.f32 %v2341_v51, %v2297_v28  ;;  %vm1895_vm10 = vweird.f32 %v5257_v46  ;;  %v2580_v26 = vadd.f32 %v2572_v45, %v2542_v39  ;;  %v2561_v61 = vadd.f32 %v2553_v32, %v2523_v29  ;;  %v2333_v45 = vld [vmem:[#allocation2 + $0xa8] sm:$0xff]  ;;  %v3243_v39 = vld [vmem:[%s3686_s15 + $0x60] sm:$0xff] }
 0x197   : > { %v2394_v4 = vmul.f32 %v5198_v19, %v2376_v31  ;;  %v2497_v13 = vmul.f32 %v5215_v23, %v3265_v41  ;;  %v3542_v60 = vpop.eup %3541  ;;  %v2350_v48 = vadd.f32 %v2342_v9, %v2298_v47  ;;  %v2535_v62 = vmul.f32 %v5228_v17, %v2220_v25  ;;  %v2488_v10 = vld [vmem:[#allocation3 + $0x90] sm:$0xff]  ;;  %v2221_v41 = vld [vmem:[%s3686_s15 + $0x18] sm:$0xff] }
 0x198   : > { %v2401_v51 = vadd.f32 %v2393_v30, %v2349_v18  ;;  %v2573_v49 = vmul.f32 %v5233_v43, %v3242_v22  ;;  %v1891_v7 = vmul.f32 %v3542_v60, %v5257_v46  ;;  %vm5300_vm9 = vcmp.eq.f32.partialorder %v1899_v54, 8.507059e+37  ;;  %v3251_v47 = vld [vmem:[%s3686_s15 + $0xa8] sm:$0xff] }
 0x199   : > { %v2618_v32 = vadd.f32 %v2610_v55, %v2580_v26  ;;  %v2599_v56 = vadd.f32 %v2591_v12, %v2561_v61  ;;  %v2611_v42 = vmul.f32 %v5241_v6, %v3250_v58  ;;  %vm1896_vm6 = vweird.f32 %v3542_v60 }
 0x19a   : > { %v2453_v52 = vadd.f32 %v2445_v37, %v2401_v51  ;;  %v2257_v25 = vmul.f32 %v4970_v53, %v2229_v15  ;;  %v2309_v22 = vmul.f32 %v4930_v11, %v2281_v2  ;;  %v1892_v34 = vsub.f32 1.0, %v1891_v7  ;;  %vm1897_vm4 = vmor %vm1895_vm10, %vm1896_vm6 }
 0x19b   : > { %v2645_v54 = vadd.f32 %v5293_v40, %v2618_v32  ;;  %v2637_v0 = vadd.f32 %v2629_v59, %v2599_v56  ;;  %v2361_v55 = vmul.f32 %v5063_v16, %v2333_v45  ;;  %v2402_v12 = vadd.f32 %v2394_v4, %v2350_v48  ;;  %v2377_v4 = vld [vmem:[%s3693_s18 + $0x18] sm:$0xff]  ;;  %v3266_v56 = vld [vmem:[%s3693_s18 + $0x90] sm:$0xff]  ;;  %vm5776_vm10 = vmmov %vm5757_vm0 }
 0x19c   : > { %v2505_v58 = vadd.f32 %v2497_v13, %v2453_v52  ;;  %v2317_v28 = vadd.f32 %v2309_v22, %v2257_v25  ;;  %v2464_v31 = vmul.f32 %v4956_v38, %v2436_v44  ;;  %v1893_v29 = vmul.f32 %v3542_v60, %v1892_v34  ;;  %v3258_v13 = vld [vmem:[%s3693_s18 + $0x50] sm:$0xff]  ;;  %vm5778_vm6 = vmmov %vm5757_vm0 }
 0x19d   : > { %3284 = vmatmul.msk.f32.vlgmr.msra.gmra.mxu1 %vm5765_vm15, %v2645_v54  ;;  %v2655_v9 = vadd.f32 %v5190_v8, %v2637_v0  ;;  %v2413_v30 = vmul.f32 %v4941_v57, %v2385_v3  ;;  %v2516_v59 = vmul.f32 %v5111_v50, %v2488_v10  ;;  %v2554_v61 = vmul.f32 %v4935_v20, %v2229_v15  ;;  %v2282_v54 = vld [vmem:[#allocation2 + $0x68] sm:$0xff]  ;;  %vm5779_vm15 = vmmov %vm5757_vm0 }
 0x19e   : > { %v2543_v18 = vadd.f32 %v2535_v62, %v2505_v58  ;;  %v2369_v37 = vadd.f32 %v2361_v55, %v2317_v28  ;;  %v2472_v26 = vadd.f32 %v2464_v31, %v5269_v5  ;;  %v1894_v48 = vadd.f32 %v3542_v60, %v1893_v29  ;;  %v2334_v58 = vld [vmem:[#allocation2 + $0xb0] sm:$0xff] }
 0x19f   : > { %3276 = vmatmul.msk.f32.gmra.mxu2 %vm5766_vm5, %v2655_v9  ;;  %v2592_v51 = vmul.f32 %v4946_v14, %v2281_v2  ;;  %v2239_v7 = vmul.f32 %v5153_v27, %v2221_v41  ;;  %v2291_v32 = vmul.f32 %v5176_v63, %v3243_v39  ;;  %v2630_v15 = vmul.f32 %v5116_v36, %v2333_v45  ;;  %v2437_v28 = vld [vmem:[#allocation3 + $0x58] sm:$0xff] }
 0x1a0   : > { %v2581_v62 = vadd.f32 %v2573_v49, %v2543_v18  ;;  %v2524_v5 = vadd.f32 %v2516_v59, %v2472_v26  ;;  %v2343_v44 = vmul.f32 %v5187_v1, %v3251_v47  ;;  %v1898_v52 = vsel %vm1897_vm4, %v3542_v60, %v1894_v48  ;;  %v2230_v49 = vld [vmem:[#allocation2 + $0x20] sm:$0xff]  ;;  %v2489_v9 = vld [vmem:[#allocation3 + $0x98] sm:$0xff] }
 0x1a1   : > { %v2299_v25 = vadd.f32 %v2291_v32, %v2239_v7  ;;  %v2395_v22 = vmul.f32 %v5198_v19, %v2377_v4  ;;  %v2446_v2 = vmul.f32 %v5210_v24, %v3258_v13  ;;  %v1903_v3 = vsel %vm5300_vm9, %v5286_v33, %v1898_v52  ;;  %v2222_v26 = vld [vmem:[%s3686_s15 + $0x20] sm:$0xff]  ;;  %v3259_v7 = vld [vmem:[%s3693_s18 + $0x58] sm:$0xff]  ;;  %vm5777_vm9 = vmmov %vm5757_vm0 }
 0x1a2   : > { %v2619_v10 = vadd.f32 %v2611_v42, %v2581_v62  ;;  %v2562_v34 = vadd.f32 %v2554_v61, %v2524_v5  ;;  %v2498_v46 = vmul.f32 %v5215_v23, %v3266_v56  ;;  %v1912_v45 = vmul.f32 %v1903_v3, %v5147_v35  ;;  %v2386_v42 = vld [vmem:[#allocation3 + $0x20] sm:$0xff]  ;;  %v3244_v61 = vld [vmem:[%s3686_s15 + $0x68] sm:$0xff] }
 0x1a3   : > { %v2351_v0 = vadd.f32 %v2343_v44, %v2299_v25  ;;  %v2454_v55 = vadd.f32 %v2446_v2, %v2402_v12  ;;  %v2536_v60 = vmul.f32 %v5228_v17, %v2221_v41  ;;  %v2421_v29 = vadd.f32 %v2413_v30, %v2369_v37  ;;  %v3267_v44 = vld [vmem:[%s3693_s18 + $0x98] sm:$0xff] }
 0x1a4   : > { %v2646_v31 = vadd.f32 %v5293_v40, %v2619_v10  ;;  %v2600_v33 = vadd.f32 %v2592_v51, %v2562_v34  ;;  %v2574_v21 = vmul.f32 %v5233_v43, %v3243_v39  ;;  %1929 = vst.msk [vmem:[#allocation2 + $0xc8] sm:$0xff] %vm5767_vm1, %v1912_v45  ;;  %v2612_v12 = vmul.f32 %v5241_v6, %v3251_v47  ;;  %v3252_v51 = vld [vmem:[%s3686_s15 + $0xb0] sm:$0xff] }
 0x1a5   : > { %v2506_v35 = vadd.f32 %v2498_v46, %v2454_v55  ;;  %v2258_v41 = vmul.f32 %v4970_v53, %v2230_v49  ;;  %v2310_v59 = vmul.f32 %v4930_v11, %v2282_v54  ;;  %v2403_v18 = vadd.f32 %v2395_v22, %v2351_v0 }
 0x1a6   : > { %3285 = vmatmul.msk.f32.gmra.mxu1 %vm5768_vm2, %v2646_v31  ;;  %v2638_v30 = vadd.f32 %v2630_v15, %v2600_v33  ;;  %v2362_v39 = vmul.f32 %v5063_v16, %v2334_v58  ;;  %v2465_v37 = vmul.f32 %v4956_v38, %v2437_v28  ;;  %v2414_v47 = vmul.f32 %v4941_v57, %v2386_v42  ;;  %v2378_v15 = vld [vmem:[%s3693_s18 + $0x20] sm:$0xff]  ;;  %v2335_v28 = vld [vmem:[#allocation2 + $0xb8] sm:$0xff] }
 0x1a7   : > { %v2544_v4 = vadd.f32 %v2536_v60, %v2506_v35  ;;  %v2318_v13 = vadd.f32 %v2310_v59, %v2258_v41  ;;  %v2517_v48 = vmul.f32 %v5111_v50, %v2489_v9  ;;  %v2555_v62 = vmul.f32 %v4935_v20, %v2230_v49  ;;  %v2231_v49 = vld [vmem:[#allocation2 + $0x28] sm:$0xff]  ;;  %v2283_v60 = vld [vmem:[#allocation2 + $0x70] sm:$0xff]  ;;  %v2438_v42 = vld [vmem:[#allocation3 + $0x60] sm:$0xff] }
 0x1a8   : > { %v2656_v32 = vadd.f32 %v5190_v8, %v2638_v30  ;;  %v2473_v56 = vadd.f32 %v2465_v37, %v2421_v29  ;;  %v2593_v5 = vmul.f32 %v4946_v14, %v2282_v54  ;;  %v2240_v22 = vmul.f32 %v5153_v27, %v2222_v26  ;;  %v2490_v59 = vld [vmem:[#allocation3 + $0xa0] sm:$0xff] }
 0x1a9   : > { %v2582_v52 = vadd.f32 %v2574_v21, %v2544_v4  ;;  %v2370_v25 = vadd.f32 %v2362_v39, %v2318_v13  ;;  %v2292_v2 = vmul.f32 %v5176_v63, %v3244_v61  ;;  %v2631_v10 = vmul.f32 %v5116_v36, %v2334_v58  ;;  %v2387_v58 = vld [vmem:[#allocation3 + $0x28] sm:$0xff] }
 0x1aa   : > { %3277 = vmatmul.msk.f32.gmra.mxu2 %vm5769_vm7, %v2656_v32  ;;  %v2525_v3 = vadd.f32 %v2517_v48, %v2473_v56  ;;  %v2344_v34 = vmul.f32 %v5187_v1, %v3252_v51  ;;  %v2447_v46 = vmul.f32 %v5210_v24, %v3259_v7  ;;  %v2396_v0 = vmul.f32 %v5198_v19, %v2378_v15  ;;  %v3245_v48 = vld [vmem:[%s3686_s15 + $0x70] sm:$0xff]  ;;  %v3260_v15 = vld [vmem:[%s3693_s18 + $0x60] sm:$0xff] }
 0x1ab   : > { %v2620_v45 = vadd.f32 %v2612_v12, %v2582_v52  ;;  %v2300_v54 = vadd.f32 %v2292_v2, %v2240_v22  ;;  %v2499_v55 = vmul.f32 %v5215_v23, %v3267_v44  ;;  %v2422_v31 = vadd.f32 %v2414_v47, %v2370_v25  ;;  %v3268_v2 = vld [vmem:[%s3693_s18 + $0xa0] sm:$0xff] }
 0x1ac   : > { %v2563_v29 = vadd.f32 %v2555_v62, %v2525_v3  ;;  %v2455_v33 = vadd.f32 %v2447_v46, %v2403_v18  ;;  %v2537_v21 = vmul.f32 %v5228_v17, %v2222_v26  ;;  %v2575_v12 = vmul.f32 %v5233_v43, %v3244_v61  ;;  %v2223_v26 = vld [vmem:[%s3686_s15 + $0x28] sm:$0xff] }
 0x1ad   : > { %v2647_v9 = vadd.f32 %v5293_v40, %v2620_v45  ;;  %v2352_v35 = vadd.f32 %v2344_v34, %v2300_v54  ;;  %v2259_v41 = vmul.f32 %v4970_v53, %v2231_v49  ;;  %v2311_v37 = vmul.f32 %v4930_v11, %v2283_v60 }
 0x1ae   : > { %v2601_v30 = vadd.f32 %v2593_v5, %v2563_v29  ;;  %v2507_v39 = vadd.f32 %v2499_v55, %v2455_v33  ;;  %v2363_v18 = vmul.f32 %v5063_v16, %v2335_v28  ;;  %v2613_v13 = vmul.f32 %v5241_v6, %v3252_v51  ;;  %v3253_v5 = vld [vmem:[%s3686_s15 + $0xb8] sm:$0xff]  ;;  %v2379_v51 = vld [vmem:[%s3693_s18 + $0x28] sm:$0xff] }
 0x1af   : > { %3286 = vmatmul.msk.f32.gmra.mxu1 %vm5770_vm13, %v2647_v9  ;;  %v2404_v4 = vadd.f32 %v2396_v0, %v2352_v35  ;;  %v2415_v61 = vmul.f32 %v4941_v57, %v2387_v58  ;;  %v2466_v47 = vmul.f32 %v4956_v38, %v2438_v42  ;;  %v2319_v56 = vadd.f32 %v2311_v37, %v2259_v41  ;;  %v2336_v58 = vld [vmem:[#allocation2 + $0xc0] sm:$0xff] }
 0x1b0   : > { %v2639_v7 = vadd.f32 %v2631_v10, %v2601_v30  ;;  %v2545_v32 = vadd.f32 %v2537_v21, %v2507_v39  ;;  %v2518_v62 = vmul.f32 %v5111_v50, %v2490_v59  ;;  %v2556_v52 = vmul.f32 %v4935_v20, %v2231_v49  ;;  %v2232_v49 = vld [vmem:[#allocation2 + $0x30] sm:$0xff]  ;;  %v2284_v21 = vld [vmem:[#allocation2 + $0x78] sm:$0xff]  ;;  %v2439_v41 = vld [vmem:[#allocation3 + $0x68] sm:$0xff] }
 0x1b1   : > { %v2474_v44 = vadd.f32 %v2466_v47, %v2422_v31  ;;  %v2594_v25 = vmul.f32 %v4946_v14, %v2283_v60  ;;  %v2241_v22 = vmul.f32 %v5153_v27, %v2223_v26  ;;  %v2371_v46 = vadd.f32 %v2363_v18, %v2319_v56  ;;  %v2491_v18 = vld [vmem:[#allocation3 + $0xa8] sm:$0xff] }
 0x1b2   : > { %v2657_v3 = vadd.f32 %v5190_v8, %v2639_v7  ;;  %v2583_v34 = vadd.f32 %v2575_v12, %v2545_v32  ;;  %v2293_v10 = vmul.f32 %v5176_v63, %v3245_v48  ;;  %v2632_v54 = vmul.f32 %v5116_v36, %v2335_v28  ;;  %v2388_v12 = vld [vmem:[#allocation3 + $0x30] sm:$0xff] }
 0x1b3   : > { %v2526_v45 = vadd.f32 %v2518_v62, %v2474_v44  ;;  %v2345_v0 = vmul.f32 %v5187_v1, %v3253_v5  ;;  %v2448_v55 = vmul.f32 %v5210_v24, %v3260_v15  ;;  %v2397_v29 = vmul.f32 %v5198_v19, %v2379_v51  ;;  %v3246_v62 = vld [vmem:[%s3686_s15 + $0x78] sm:$0xff]  ;;  %v3261_v51 = vld [vmem:[%s3693_s18 + $0x68] sm:$0xff] }
 0x1b4   : > { %3278 = vmatmul.msk.f32.gmra.mxu2 %vm5771_vm11, %v2657_v3  ;;  %v2621_v60 = vadd.f32 %v2613_v13, %v2583_v34  ;;  %v2301_v31 = vadd.f32 %v2293_v10, %v2241_v22  ;;  %v2500_v33 = vmul.f32 %v5215_v23, %v3268_v2  ;;  %v2423_v42 = vadd.f32 %v2415_v61, %v2371_v46  ;;  %v3254_v22 = vld [vmem:[%s3686_s15 + $0xc0] sm:$0xff]  ;;  %v3269_v10 = vld [vmem:[%s3693_s18 + $0xa8] sm:$0xff] }
 0x1b5   : > { %v2564_v9 = vadd.f32 %v2556_v52, %v2526_v45  ;;  %v2456_v35 = vadd.f32 %v2448_v55, %v2404_v4  ;;  %v2538_v28 = vmul.f32 %v5228_v17, %v2223_v26  ;;  %v2576_v39 = vmul.f32 %v5233_v43, %v3245_v48  ;;  %v2224_v26 = vld [vmem:[%s3686_s15 + $0x30] sm:$0xff] }
 0x1b6   : > { %v2648_v59 = vadd.f32 %v5293_v40, %v2621_v60  ;;  %v2353_v30 = vadd.f32 %v2345_v0, %v2301_v31  ;;  %v2260_v37 = vmul.f32 %v4970_v53, %v2232_v49  ;;  %v2312_v61 = vmul.f32 %v4930_v11, %v2284_v21 }
 0x1b7   : > { %v2602_v13 = vadd.f32 %v2594_v25, %v2564_v9  ;;  %v2508_v47 = vadd.f32 %v2500_v33, %v2456_v35  ;;  %v2364_v4 = vmul.f32 %v5063_v16, %v2336_v58  ;;  %v2614_v32 = vmul.f32 %v5241_v6, %v3253_v5  ;;  %v2380_v5 = vld [vmem:[%s3693_s18 + $0x30] sm:$0xff]  ;;  %v2285_v9 = vld [vmem:[#allocation2 + $0x80] sm:$0xff]  ;;  %v2337_v35 = vld [vmem:[#allocation2 + $0xc8] sm:$0xff] }
 0x1b8   : > { %3287 = vmatmul.msk.f32.gmra.mxu1 %vm5757_vm0, %v2648_v59  ;;  %v2405_v7 = vadd.f32 %v2397_v29, %v2353_v30  ;;  %v2416_v48 = vmul.f32 %v4941_v57, %v2388_v12  ;;  %v2467_v56 = vmul.f32 %v4956_v38, %v2439_v41  ;;  %v2320_v52 = vadd.f32 %v2312_v61, %v2260_v37  ;;  %v2440_v59 = vld [vmem:[#allocation3 + $0x70] sm:$0xff] }
 0x1b9   : > { %v2640_v15 = vadd.f32 %v2632_v54, %v2602_v13  ;;  %v2546_v44 = vadd.f32 %v2538_v28, %v2508_v47  ;;  %v2519_v25 = vmul.f32 %v5111_v50, %v2491_v18  ;;  %v2557_v3 = vmul.f32 %v4935_v20, %v2232_v49  ;;  %v2233_v20 = vld [vmem:[#allocation2 + $0x38] sm:$0xff]  ;;  %v2389_v13 = vld [vmem:[#allocation3 + $0x38] sm:$0xff] }
 0x1ba   : > { %v2475_v2 = vadd.f32 %v2467_v56, %v2423_v42  ;;  %v2595_v34 = vmul.f32 %v4946_v14, %v2284_v21  ;;  %v2242_v46 = vmul.f32 %v5153_v27, %v2224_v26  ;;  %v2372_v55 = vadd.f32 %v2364_v4, %v2320_v52 }
 0x1bb   : > { %v2658_v45 = vadd.f32 %v5190_v8, %v2640_v15  ;;  %v2584_v0 = vadd.f32 %v2576_v39, %v2546_v44  ;;  %v2294_v54 = vmul.f32 %v5176_v63, %v3246_v62  ;;  %v2633_v31 = vmul.f32 %v5116_v36, %v2336_v58 }
 0x1bc   : > { %v2527_v60 = vadd.f32 %v2519_v25, %v2475_v2  ;;  %v2346_v29 = vmul.f32 %v5187_v1, %v3254_v22  ;;  %v2449_v33 = vmul.f32 %v5210_v24, %v3261_v51  ;;  %v2398_v21 = vmul.f32 %v5198_v19, %v2380_v5  ;;  %v3255_v51 = vld [vmem:[%s3686_s15 + $0xc8] sm:$0xff]  ;;  %v3262_v2 = vld [vmem:[%s3693_s18 + $0x70] sm:$0xff] }
 0x1bd   : > { %3279 = vmatmul.msk.f32.gmra.mxu2 %vm5772_vm3, %v2658_v45  ;;  %v2622_v14 = vadd.f32 %v2614_v32, %v2584_v0  ;;  %v2302_v49 = vadd.f32 %v2294_v54, %v2242_v46  ;;  %v2501_v42 = vmul.f32 %v5215_v23, %v3269_v10  ;;  %v2424_v28 = vadd.f32 %v2416_v48, %v2372_v55  ;;  %v2225_v32 = vld [vmem:[%s3686_s15 + $0x38] sm:$0xff] }
 0x1be   : > { %v2565_v12 = vadd.f32 %v2557_v3, %v2527_v60  ;;  %v2457_v41 = vadd.f32 %v2449_v33, %v2405_v7  ;;  %v2539_v58 = vmul.f32 %v5228_v17, %v2224_v26  ;;  %v2577_v37 = vmul.f32 %v5233_v43, %v3246_v62  ;;  %v2492_v26 = vld [vmem:[#allocation3 + $0xb0] sm:$0xff]  ;;  %v3247_v62 = vld [vmem:[%s3686_s15 + $0x80] sm:$0xff] }
 0x1bf   : > { %v2649_v30 = vadd.f32 %v5293_v40, %v2622_v14  ;;  %v2354_v39 = vadd.f32 %v2346_v29, %v2302_v49  ;;  %v2261_v18 = vmul.f32 %v4970_v53, %v2233_v20  ;;  %v2313_v4 = vmul.f32 %v4930_v11, %v2285_v9  ;;  %v2381_v11 = vld [vmem:[%s3693_s18 + $0x38] sm:$0xff] }
 0x1c0   : > { %v2603_v47 = vadd.f32 %v2595_v34, %v2565_v12  ;;  %v2509_v61 = vadd.f32 %v2501_v42, %v2457_v41  ;;  %v2365_v7 = vmul.f32 %v5063_v16, %v2337_v35  ;;  %v2615_v56 = vmul.f32 %v5241_v6, %v3254_v22  ;;  %v3577_v34 = vld [vmem:[%s5558_s3 + $0x6] ss:$0 sm:$0xff]  ;;  %v3579_v12 = vld [vmem:[%s5558_s3 + $0x4] ss:$0 sm:$0xff] }
 0x1c1   : > { %3288 = vmatmul.msk.f32.gmra.mxu1 %vm5773_vm14, %v2649_v30  ;;  %v2406_v48 = vadd.f32 %v2398_v21, %v2354_v39  ;;  %v2468_v53 = vmul.f32 %v4956_v38, %v2440_v59  ;;  %v2321_v52 = vadd.f32 %v2313_v4, %v2261_v18  ;;  %v2417_v25 = vmul.f32 %v4941_v57, %v2389_v13  ;;  %v3270_v38 = vld [vmem:[%s3693_s18 + $0xb0] sm:$0xff]  ;;  %v3271_v59 = vld [vmem:[%s3693_s18 + $0xb8] sm:$0xff]  ;;  %v2531_v18 = vld [vmem:[#allocation2 + $0x40] sm:$0xff] }
 0x1c2   : > { %v2641_v15 = vadd.f32 %v2633_v31, %v2603_v47  ;;  %v2547_v44 = vadd.f32 %v2539_v58, %v2509_v61  ;;  %v2520_v3 = vmul.f32 %v5111_v50, %v2492_v26  ;;  %v2558_v46 = vmul.f32 %v3577_v34, %v2233_v20  ;;  %v2441_v31 = vld [vmem:[#allocation3 + $0x78] sm:$0xff]  ;;  %v3263_v58 = vld [vmem:[%s3693_s18 + $0x78] sm:$0xff] }
 0x1c3   : > { %v2476_v16 = vadd.f32 %v2468_v53, %v2424_v28  ;;  %v2243_v22 = vmul.f32 %v5153_v27, %v2225_v32  ;;  %v2373_v45 = vadd.f32 %v2365_v7, %v2321_v52  ;;  %v2295_v57 = vmul.f32 %v5176_v63, %v3247_v62  ;;  %v3578_v63 = vld [vmem:[%s5558_s3 + $0x7] ss:$0 sm:$0xff]  ;;  %v2493_v21 = vld [vmem:[#allocation3 + $0xb8] sm:$0xff] }
 0x1c4   : > { %v2659_v5 = vadd.f32 %v5190_v8, %v2641_v15  ;;  %v2585_v10 = vadd.f32 %v2577_v37, %v2547_v44  ;;  %v2347_v55 = vmul.f32 %v5187_v1, %v3255_v51  ;;  %v2399_v54 = vmul.f32 %v5198_v19, %v2381_v11  ;;  %v2530_v7 = vld [vmem:[%s3686_s15 + $0x40] sm:$0xff]  ;;  %v3272_v15 = vld [vmem:[%s3686_s15 + $0x88] sm:$0xff] }
 0x1c5   : > { %v2528_v0 = vadd.f32 %v2520_v3, %v2476_v16  ;;  %v2450_v60 = vmul.f32 %v5210_v24, %v3262_v2  ;;  %v2425_v29 = vadd.f32 %v2417_v25, %v2373_v45  ;;  %v2303_v33 = vadd.f32 %v2295_v57, %v2243_v22  ;;  %v2607_v25 = vld [vmem:[#allocation2 + $0xd0] sm:$0xff] }
 0x1c6   : > { %3280 = vmatmul.msk.f32.gmra.mxu2 %vm5774_vm12, %v2659_v5  ;;  %v2623_v27 = vadd.f32 %v2615_v56, %v2585_v10  ;;  %v2502_v20 = vmul.f32 %v5215_v23, %v3270_v38  ;;  %v2596_v1 = vmul.f32 %v3578_v63, %v2285_v9  ;;  %v2540_v19 = vmul.f32 %v5228_v17, %v2225_v32  ;;  %v3273_v16 = vld [vmem:[%s3686_s15 + $0xd0] sm:$0xff] }
 0x1c7   : > { %v2566_v14 = vadd.f32 %v2558_v46, %v2528_v0  ;;  %v2458_v49 = vadd.f32 %v2450_v60, %v2406_v48  ;;  %v2355_v28 = vadd.f32 %v2347_v55, %v2303_v33  ;;  %v2469_v41 = vmul.f32 %v3579_v12, %v2441_v31  ;;  %v2569_v48 = vld [vmem:[#allocation2 + $0x88] sm:$0xff] }
 0x1c8   : > { %v2650_v42 = vadd.f32 %v5293_v40, %v2623_v27  ;;  %v2634_v39 = vmul.f32 %v5116_v36, %v2337_v35  ;;  %v2578_v9 = vmul.f32 %v5233_v43, %v3247_v62  ;;  %v2616_v47 = vmul.f32 %v5241_v6, %v3255_v51 }
 0x1c9   : > { %v2604_v30 = vadd.f32 %v2596_v1, %v2566_v14  ;;  %v2510_v37 = vadd.f32 %v2502_v20, %v2458_v49  ;;  %v2407_v13 = vadd.f32 %v2399_v54, %v2355_v28  ;;  %v2477_v61 = vadd.f32 %v2469_v41, %v2425_v29 }
 0x1ca   : > { %3289 = vmatmul.msk.f32.gmra.mxu1 %vm5775_vm8, %v2650_v42  ;;  %v2521_v4 = vmul.f32 %v5111_v50, %v2493_v21  ;;  %v2451_v35 = vmul.f32 %v5210_v24, %v3263_v58  ;;  %v2503_v56 = vmul.f32 %v5215_v23, %v3271_v59  ;;  %v2559_v62 = vmul.f32 %v3577_v34, %v2531_v18 }
 0x1cb   : > { %v2642_v26 = vadd.f32 %v2634_v39, %v2604_v30  ;;  %v2548_v32 = vadd.f32 %v2540_v19, %v2510_v37  ;;  %v2541_v11 = vmul.f32 %v5228_v17, %v2530_v7  ;;  %v2597_v2 = vmul.f32 %v3578_v63, %v2569_v48 }
 0x1cc   : > { %v2529_v53 = vadd.f32 %v2521_v4, %v2477_v61  ;;  %v2459_v51 = vadd.f32 %v2451_v35, %v2407_v13  ;;  %v2579_v24 = vmul.f32 %v5233_v43, %v3272_v15  ;;  %v2635_v34 = vmul.f32 %v5116_v36, %v2607_v25  ;;  %v5486_v36 = vld [vmem:[%s5562_s7 + $0x3] ss:$0 sm:$0xff] }
 0x1cd   : > { %v2660_v44 = vadd.f32 %v5190_v8, %v2642_v26  ;;  %v2586_v52 = vadd.f32 %v2578_v9, %v2548_v32  ;;  %v2617_v5 = vmul.f32 %v5241_v6, %v3273_v16  ;;  %vm2969_vm7 = vcmask 64512  }
 0x1ce   : > { %v2567_v50 = vadd.f32 %v2559_v62, %v2529_v53  ;;  %v2511_v46 = vadd.f32 %v2503_v56, %v2459_v51 }
 0x1cf   : > { %3281 = vmatmul.msk.f32.gmra.mxu2 %vm5776_vm10, %v2660_v44  ;;  %v2624_v3 = vadd.f32 %v2616_v47, %v2586_v52 }
 0x1d0   : > { %v2605_v23 = vadd.f32 %v2597_v2, %v2567_v50  ;;  %v2549_v38 = vadd.f32 %v2541_v11, %v2511_v46 }
 0x1d1   : > { %v2651_v22 = vadd.f32 %v5293_v40, %v2624_v3 }
 0x1d2   : > { %v2643_v10 = vadd.f32 %v2635_v34, %v2605_v23  ;;  %v2587_v17 = vadd.f32 %v2579_v24, %v2549_v38 }
 0x1d3   : > { %3290 = vmatmul.msk.f32.gmra.mxu1 %vm5777_vm9, %v2651_v22 }
 0x1d4   : > { %v2661_v45 = vadd.f32 %v5190_v8, %v2643_v10  ;;  %v2625_v57 = vadd.f32 %v2617_v5, %v2587_v17 }
 0x1d6   : > { %v2652_v0 = vadd.f32 %v5293_v40, %v2625_v57 }
 0x1d7   : > { %3282 = vmatmul.msk.f32.gmra.mxu2 %vm5778_vm6, %v2661_v45 }
 0x1db   : > { %3291 = vmatmul.msk.f32.gmra.mxu1 %vm5779_vm15, %v2652_v0 }
 0x218   : > { %v2708_v43 = vpop.f32.mrf.mxu2 }
 0x21a   : > { %v2776_v6 = vpop.f32.mrf.mxu1 }
 0x21b   : > { %v2777_v55 = vadd.f32 %v2776_v6, %v2708_v43 }
 0x21d   : > { %v2801_v54 = vadd.f32 %v5486_v36, %v2777_v55 }
 0x21f   : > { %v3292_v60 = vmul.f32 -1.442695, %v2801_v54 }
 0x221   : > { %3543 = vpow2.f32 %v3292_v60 }
 0x222   : > { %v2711_v8 = vpop.f32.mrf.mxu2 }
 0x223   : > { %v2779_v31 = vpop.f32.mrf.mxu1 }
 0x224   : > { %v2780_v27 = vadd.f32 %v2779_v31, %v2711_v8 }
 0x226   : > { %v5490_v29 = vadd.f32 %v5486_v36, %v2780_v27 }
 0x227   : > { %v3544_v40 = vpop.eup %3543 }
 0x228   : > { %v2833_v33 = vadd.f32 1.0, %v3544_v40  ;;  %v3293_v20 = vmul.f32 -1.442695, %v5490_v29 }
 0x22a   : > { %3545 = vrcp.f32 %v2833_v33  ;;  %v2852_v58 = vand.u32 2147483648, %v2833_v33  ;;  %v2850_v30 = vand.u32 2147483647, %v2833_v33  ;;  %vm2846_vm4 = vweird.f32 %v2833_v33 }
 0x22b   : > { %3547 = vpow2.f32 %v3293_v20 }
 0x22c   : > { %v2782_v14 = vpop.f32.mrf.mxu1  ;;  %v2853_v18 = vor.u32 1.1754944e-38, %v2852_v58  ;;  %vm2851_vm2 = vcmp.eq.f32.partialorder %v2850_v30, 8.507059e+37 }
 0x22d   : > { %v2714_v63 = vpop.f32.mrf.mxu2 }
 0x22e   : > { %v2783_v1 = vadd.f32 %v2782_v14, %v2714_v63 }
 0x230   : > { %v3546_v49 = vpop.eup %3545  ;;  %v5494_v19 = vadd.f32 %v5486_v36, %v2783_v1 }
 0x231   : > { %v3548_v21 = vpop.eup %3547  ;;  %v2842_v42 = vmul.f32 %v3546_v49, %v2833_v33  ;;  %vm2847_vm5 = vweird.f32 %v3546_v49 }
 0x232   : > { %v2834_v28 = vadd.f32 1.0, %v3548_v21  ;;  %v3294_v12 = vmul.f32 -1.442695, %v5494_v19  ;;  %vm2848_vm1 = vmor %vm2846_vm4, %vm2847_vm5 }
 0x233   : > { %v2843_v41 = vsub.f32 1.0, %v2842_v42 }
 0x234   : > { %3549 = vrcp.f32 %v2834_v28  ;;  %v2867_v62 = vand.u32 2147483648, %v2834_v28  ;;  %v2865_v52 = vand.u32 2147483647, %v2834_v28  ;;  %vm2861_vm11 = vweird.f32 %v2834_v28 }
 0x235   : > { %v2844_v59 = vmul.f32 %v3546_v49, %v2843_v41  ;;  %3551 = vpow2.f32 %v3294_v12  ;;  %v2785_v39 = vpop.f32.mrf.mxu1 }
 0x236   : > { %v2868_v50 = vor.u32 1.1754944e-38, %v2867_v62  ;;  %vm2866_vm3 = vcmp.eq.f32.partialorder %v2865_v52, 8.507059e+37 }
 0x237   : > { %v2845_v37 = vadd.f32 %v3546_v49, %v2844_v59  ;;  %v2717_v9 = vpop.f32.mrf.mxu2 }
 0x238   : > { %v2786_v13 = vadd.f32 %v2785_v39, %v2717_v9 }
 0x239   : > { %v2849_v47 = vsel %vm2848_vm1, %v3546_v49, %v2845_v37 }
 0x23a   : > { %v3550_v61 = vpop.eup %3549  ;;  %v2854_v4 = vsel %vm2851_vm2, %v2853_v18, %v2849_v47  ;;  %v5504_v7 = vadd.f32 %v5486_v36, %v2786_v13 }
 0x23b   : > { %v3552_v26 = vpop.eup %3551  ;;  %v2961_v32 = vmul.f32 %v2854_v4, %v2801_v54  ;;  %v2857_v48 = vmul.f32 %v3550_v61, %v2834_v28  ;;  %vm2862_vm13 = vweird.f32 %v3550_v61 }
 0x23c   : > { %v2835_v35 = vadd.f32 1.0, %v3552_v26  ;;  %v3295_v56 = vmul.f32 -1.442695, %v5504_v7  ;;  %vm2863_vm0 = vmor %vm2861_vm11, %vm2862_vm13 }
 0x23d   : > { %2970 = vst.msk [vmem:[%s5501_s12] sm:$0xff] %vm2969_vm7, %v2961_v32  ;;  %v2858_v53 = vsub.f32 1.0, %v2857_v48 }
 0x23e   : > { %3553 = vrcp.f32 %v2835_v35  ;;  %v2788_v15 = vpop.f32.mrf.mxu1  ;;  %v2882_v17 = vand.u32 2147483648, %v2835_v35  ;;  %v2880_v57 = vand.u32 2147483647, %v2835_v35  ;;  %vm2876_vm12 = vweird.f32 %v2835_v35 }
 0x23f   : > { %v2859_v44 = vmul.f32 %v3550_v61, %v2858_v53  ;;  %3555 = vpow2.f32 %v3295_v56 }
 0x240   : > { %v2720_v25 = vpop.f32.mrf.mxu2  ;;  %v2883_v55 = vor.u32 1.1754944e-38, %v2882_v17  ;;  %vm2881_vm10 = vcmp.eq.f32.partialorder %v2880_v57, 8.507059e+37 }
 0x241   : > { %v2860_v51 = vadd.f32 %v3550_v61, %v2859_v44  ;;  %v2789_v11 = vadd.f32 %v2788_v15, %v2720_v25 }
 0x243   : > { %v2864_v2 = vsel %vm2863_vm0, %v3550_v61, %v2860_v51  ;;  %v5510_v16 = vadd.f32 %v5486_v36, %v2789_v11 }
 0x244   : > { %v3554_v3 = vpop.eup %3553  ;;  %v2869_v46 = vsel %vm2866_vm3, %v2868_v50, %v2864_v2 }
 0x245   : > { %v3556_v24 = vpop.eup %3555  ;;  %v2962_v23 = vmul.f32 %v2869_v46, %v5490_v29  ;;  %v2872_v34 = vmul.f32 %v3554_v3, %v2835_v35  ;;  %v3296_v22 = vmul.f32 -1.442695, %v5510_v16  ;;  %vm2877_vm14 = vweird.f32 %v3554_v3 }
 0x246   : > { %v2836_v38 = vadd.f32 1.0, %v3556_v24  ;;  %vm2878_vm8 = vmor %vm2876_vm12, %vm2877_vm14 }
 0x247   : > { %2971 = vst.msk [vmem:[%s5501_s12 + $0x8] sm:$0xff] %vm2969_vm7, %v2962_v23  ;;  %v2873_v5 = vsub.f32 1.0, %v2872_v34  ;;  %3557 = vpow2.f32 %v3296_v22  ;;  %v2791_v10 = vpop.f32.mrf.mxu1 }
 0x248   : > { %3559 = vrcp.f32 %v2836_v38  ;;  %v2897_v1 = vand.u32 2147483648, %v2836_v38  ;;  %v2895_v42 = vand.u32 2147483647, %v2836_v38  ;;  %vm2891_vm6 = vweird.f32 %v2836_v38 }
 0x249   : > { %v2874_v45 = vmul.f32 %v3554_v3, %v2873_v5  ;;  %v2723_v0 = vpop.f32.mrf.mxu2 }
 0x24a   : > { %v2792_v43 = vadd.f32 %v2791_v10, %v2723_v0  ;;  %vm2896_vm5 = vcmp.eq.f32.partialorder %v2895_v42, 8.507059e+37 }
 0x24b   : > { %v2875_v6 = vadd.f32 %v3554_v3, %v2874_v45 }
 0x24c   : > { %v5517_v54 = vadd.f32 %v5486_v36, %v2792_v43 }
 0x24d   : > { %v3558_v60 = vpop.eup %3557  ;;  %v2879_v8 = vsel %vm2878_vm8, %v3554_v3, %v2875_v6 }
 0x24e   : > { %v3560_v31 = vpop.eup %3559  ;;  %v2884_v27 = vsel %vm2881_vm10, %v2883_v55, %v2879_v8  ;;  %v2837_v29 = vadd.f32 1.0, %v3558_v60  ;;  %v3297_v40 = vmul.f32 -1.442695, %v5517_v54 }
 0x24f   : > { %v2963_v33 = vmul.f32 %v2884_v27, %v5494_v19  ;;  %v2887_v20 = vmul.f32 %v3560_v31, %v2836_v38  ;;  %vm2892_vm9 = vweird.f32 %v3560_v31  ;;  %v2898_v19 = vor.u32 1.1754944e-38, %v2897_v1 }
 0x250   : > { %3561 = vrcp.f32 %v2837_v29  ;;  %v2794_v14 = vpop.f32.mrf.mxu1  ;;  %vm2893_vm15 = vmor %vm2891_vm6, %vm2892_vm9  ;;  %v2912_v4 = vand.u32 2147483648, %v2837_v29  ;;  %v2910_v48 = vand.u32 2147483647, %v2837_v29  ;;  %vm2906_vm1 = vweird.f32 %v2837_v29 }
 0x251   : > { %2972 = vst.msk [vmem:[%s5501_s12 + $0x10] sm:$0xff] %vm2969_vm7, %v2963_v33  ;;  %v2888_v63 = vsub.f32 1.0, %v2887_v20  ;;  %3563 = vpow2.f32 %v3297_v40 }
 0x252   : > { %v2726_v49 = vpop.f32.mrf.mxu2  ;;  %v2913_v62 = vor.u32 1.1754944e-38, %v2912_v4  ;;  %vm2911_vm13 = vcmp.eq.f32.partialorder %v2910_v48, 8.507059e+37 }
 0x253   : > { %v2889_v21 = vmul.f32 %v3560_v31, %v2888_v63  ;;  %v2795_v28 = vadd.f32 %v2794_v14, %v2726_v49 }
 0x255   : > { %v2890_v12 = vadd.f32 %v3560_v31, %v2889_v21  ;;  %v5524_v41 = vadd.f32 %v5486_v36, %v2795_v28 }
 0x256   : > { %v3562_v58 = vpop.eup %3561 }
 0x257   : > { %v3564_v59 = vpop.eup %3563  ;;  %v2894_v30 = vsel %vm2893_vm15, %v3560_v31, %v2890_v12  ;;  %v2902_v39 = vmul.f32 %v3562_v58, %v2837_v29  ;;  %v3298_v37 = vmul.f32 -1.442695, %v5524_v41  ;;  %vm2907_vm4 = vweird.f32 %v3562_v58 }
 0x258   : > { %v2899_v9 = vsel %vm2896_vm5, %v2898_v19, %v2894_v30  ;;  %v2838_v18 = vadd.f32 1.0, %v3564_v59  ;;  %v2797_v13 = vpop.f32.mrf.mxu1  ;;  %vm2908_vm2 = vmor %vm2906_vm1, %vm2907_vm4 }
 0x259   : > { %v2964_v47 = vmul.f32 %v2899_v9, %v5504_v7  ;;  %v2903_v61 = vsub.f32 1.0, %v2902_v39  ;;  %3565 = vpow2.f32 %v3298_v37 }
 0x25a   : > { %3567 = vrcp.f32 %v2838_v18  ;;  %v2729_v26 = vpop.f32.mrf.mxu2  ;;  %v2925_v46 = vand.u32 2147483647, %v2838_v18  ;;  %vm2921_vm0 = vweird.f32 %v2838_v18 }
 0x25b   : > { %2973 = vst.msk [vmem:[%s5501_s12 + $0x18] sm:$0xff] %vm2969_vm7, %v2964_v47  ;;  %v2904_v32 = vmul.f32 %v3562_v58, %v2903_v61  ;;  %v2798_v35 = vadd.f32 %v2797_v13, %v2729_v26 }
 0x25c   : > { %vm2926_vm14 = vcmp.eq.f32.partialorder %v2925_v46, 8.507059e+37 }
 0x25d   : > { %v2905_v56 = vadd.f32 %v3562_v58, %v2904_v32  ;;  %v5531_v53 = vadd.f32 %v5486_v36, %v2798_v35  ;;  %v2927_v36 = vand.u32 2147483648, %v2838_v18 }
 0x25f   : > { %v3566_v7 = vpop.eup %3565  ;;  %v2909_v15 = vsel %vm2908_vm2, %v3562_v58, %v2905_v56  ;;  %v3299_v44 = vmul.f32 -1.442695, %v5531_v53  ;;  %v2928_v22 = vor.u32 1.1754944e-38, %v2927_v36 }
 0x260   : > { %v3568_v52 = vpop.eup %3567  ;;  %v2914_v25 = vsel %vm2911_vm13, %v2913_v62, %v2909_v15  ;;  %v2839_v51 = vadd.f32 1.0, %v3566_v7 }
 0x261   : > { %v2965_v11 = vmul.f32 %v2914_v25, %v5510_v16  ;;  %v2917_v50 = vmul.f32 %v3568_v52, %v2838_v18  ;;  %3569 = vpow2.f32 %v3299_v44  ;;  %vm2922_vm11 = vweird.f32 %v3568_v52 }
 0x262   : > { %3571 = vrcp.f32 %v2839_v51  ;;  %vm2923_vm3 = vmor %vm2921_vm0, %vm2922_vm11  ;;  %v2942_v57 = vand.u32 2147483648, %v2839_v51  ;;  %v2940_v43 = vand.u32 2147483647, %v2839_v51  ;;  %vm2936_vm8 = vweird.f32 %v2839_v51 }
 0x263   : > { %2974 = vst.msk [vmem:[%s5501_s12 + $0x20] sm:$0xff] %vm2969_vm7, %v2965_v11  ;;  %v2918_v2 = vsub.f32 1.0, %v2917_v50 }
 0x264   : > { %v2943_v60 = vor.u32 1.1754944e-38, %v2942_v57  ;;  %vm2941_vm9 = vcmp.eq.f32.partialorder %v2940_v43, 8.507059e+37 }
 0x265   : > { %v2919_v3 = vmul.f32 %v3568_v52, %v2918_v2 }
 0x267   : > { %v3570_v24 = vpop.eup %3569  ;;  %v2920_v23 = vadd.f32 %v3568_v52, %v2919_v3 }
 0x268   : > { %v3572_v34 = vpop.eup %3571  ;;  %v2840_v38 = vadd.f32 1.0, %v3570_v24 }
 0x269   : > { %v2924_v5 = vsel %vm2923_vm3, %v3568_v52, %v2920_v23  ;;  %v2932_v16 = vmul.f32 %v3572_v34, %v2839_v51  ;;  %vm2937_vm12 = vweird.f32 %v3572_v34 }
 0x26a   : > { %v2929_v10 = vsel %vm2926_vm14, %v2928_v22, %v2924_v5  ;;  %3573 = vrcp.f32 %v2840_v38  ;;  %vm2938_vm10 = vmor %vm2936_vm8, %vm2937_vm12  ;;  %v2957_v40 = vand.u32 2147483648, %v2840_v38  ;;  %v2955_v20 = vand.u32 2147483647, %v2840_v38 }
 0x26b   : > { %v2966_v17 = vmul.f32 %v2929_v10, %v5517_v54  ;;  %v2933_v45 = vsub.f32 1.0, %v2932_v16  ;;  %vm2951_vm15 = vweird.f32 %v2840_v38 }
 0x26c   : > { %v2958_v63 = vor.u32 1.1754944e-38, %v2957_v40  ;;  %vm2956_vm4 = vcmp.eq.f32.partialorder %v2955_v20, 8.507059e+37 }
 0x26d   : > { %2975 = vst.msk [vmem:[%s5501_s12 + $0x28] sm:$0xff] %vm2969_vm7, %v2966_v17  ;;  %v2934_v0 = vmul.f32 %v3572_v34, %v2933_v45 }
 0x26f   : > { %v2935_v6 = vadd.f32 %v3572_v34, %v2934_v0 }
 0x270   : > { %v3574_v55 = vpop.eup %3573 }
 0x271   : > { %v2939_v8 = vsel %vm2938_vm10, %v3572_v34, %v2935_v6  ;;  %v2947_v31 = vmul.f32 %v3574_v55, %v2840_v38  ;;  %vm2952_vm6 = vweird.f32 %v3574_v55 }
 0x272   : > { %v2944_v27 = vsel %vm2941_vm9, %v2943_v60, %v2939_v8  ;;  %vm2953_vm5 = vmor %vm2951_vm15, %vm2952_vm6 }
 0x273   : > { %v2967_v54 = vmul.f32 %v2944_v27, %v5524_v41  ;;  %v2948_v29 = vsub.f32 1.0, %v2947_v31 }
 0x275   : > { %2976 = vst.msk [vmem:[%s5501_s12 + $0x30] sm:$0xff] %vm2969_vm7, %v2967_v54  ;;  %v2949_v33 = vmul.f32 %v3574_v55, %v2948_v29 }
 0x277   : > { %v2950_v14 = vadd.f32 %v3574_v55, %v2949_v33 }
 0x279   : > { %v2954_v1 = vsel %vm2953_vm5, %v3574_v55, %v2950_v14 }
 0x27a   : > { %v2959_v49 = vsel %vm2956_vm4, %v2958_v63, %v2954_v1 }
 0x27b   : > { %v2968_v21 = vmul.f32 %v2959_v49, %v5531_v53 }
 0x27d   : > { %2977 = vst.msk [vmem:[%s5501_s12 + $0x38] sm:$0xff] %vm2969_vm7, %v2968_v21 }
 0x27e PF: > { %s18_s29 = sadd.s32 1, %s3602_s29   ;;  %s5780_s27 = smov %s3598_s28 }
 0x27f   : > { %p15_p5 = scmp.ge.s32.totalorder %s18_s29, 4   ;;  %s5781_s28 = smov %s5783_s30 }
 0x281   :  { %17 = sbr.rel (!%p15_p5) target bundleno = 2 (0x2), region = 93 }

</bundles_post_ra>
